<compile_context>
chip_gen: v7x
topology: tpu7x:2x2x1
jax: 0.10.0
libtpu: 0.0.40
codegen_flags: <defaults>
</compile_context>

<pallas_src>
import functools

import jax
import jax.numpy as jnp
from jax import lax
from jax.experimental import pallas as pl
from jax.experimental.pallas import tpu as pltpu

LN_EPS = 1e-5


def _round_up(v, m):
    return (v + m - 1) // m * m


def _cdiv(a, b):
    return -(-a // b)


# ----------------------------- hardware-aware planning -----------------------------
def _tpu_chip_info():
    """Static (trace-time) hardware facts used to plan block sizes."""
    kind = ""
    try:
        kind = jax.devices()[0].device_kind.lower()
    except Exception:
        pass
    is_v6 = "v6" in kind
    is_v7 = ("v7" in kind) or ("7x" in kind)
    vmem_capacity = None
    try:
        vmem_capacity = int(pltpu.get_tpu_info().vmem_capacity_bytes)
    except Exception:
        vmem_capacity = None
    if vmem_capacity is None or vmem_capacity <= 0:
        vmem_capacity = (64 << 20) if is_v7 else (128 << 20)
    return {
        "two_tc": is_v7,                 # v7x: 2 TensorCores per chip
        "bf16_eup": is_v6 or is_v7,      # bf16 transcendentals supported (EUP)
        "big_mxu": is_v6 or is_v7,       # 256-row MXU
        "vmem_capacity": vmem_capacity,
    }


def _plan_blocks(bn, t, fs, hp, pp, p, num_layers, chip):
    """Pick (BM, num_blocks, BN_pad, Tc, T_pad, vmem_limit_bytes)."""
    # Generation-aware scoped-VMEM limit (~100 MiB on v5e/v6e, ~52 MiB on v7x).
    vmem_limit = max(16 << 20, min(100 << 20, chip["vmem_capacity"] - (12 << 20)))

    # Constant weight buffers (the BlockSpec pipeline double-buffers them).
    w_bytes = 0
    for l in range(num_layers):
        f_in = fs if l == 0 else hp
        w_bytes += (f_in + hp) * 4 * hp * 2 + 4 * hp * 4   # wih+whh (bf16) + bias (f32)
    w_bytes += hp * pp * 2 + pp * 4 + 2 * fs * 4           # wproj, bproj, LN params
    budget = int(vmem_limit * 0.80) - 2 * w_bytes

    bn16 = _round_up(bn, 16)
    bm = min(256 if chip["big_mxu"] else 128, bn16)

    # Per sequence, per time step, block-resident bytes (excluding the gx chunk).
    per_seq_t = (fs * 4 * 2       # f32 input block (double-buffered)
                 + p * 4 * 2      # f32 output block, last dim == P (double-buffered)
                 + hp * 2         # bf16 h_scr history
                 + fs * 6)        # LayerNorm / bf16-cast temporaries (slack)

    def max_tc(bm_):
        rem = budget - t * bm_ * per_seq_t
        # gx chunk counted twice: f32 scratch + the matmul-result temporary.
        return rem // max(bm_ * 4 * hp * 4 * 2, 1)

    while bm > 16 and max_tc(bm) < 8:
        bm -= 16

    if max_tc(bm) >= t:
        tc, t_pad = t, t
    else:
        tc = max(8, (int(max_tc(bm)) // 8) * 8)
        t_pad = _round_up(t, tc)

    num_blocks = _cdiv(bn16, bm)
    if chip["two_tc"] and bn16 >= 32 and num_blocks % 2 == 1:
        # Target an even block count so both TensorCores stay busy (shrinking BM
        # never breaks the VMEM fit).
        bm = _round_up(_cdiv(bn16, num_blocks + 1), 16)
        num_blocks = _cdiv(bn16, bm)
        if num_blocks % 2 == 1:
            num_blocks += 1            # catch-all: append one padding block
    bn_pad = num_blocks * bm
    return bm, num_blocks, bn_pad, tc, t_pad, int(vmem_limit)


# ------------------------------- weight preparation --------------------------------
def _prepare_kernel_params(params, FS, H, Hp, P, Pp, num_layers):
    """Pad / realign weights for the kernel.

    Gate blocks are lane-aligned at multiples of Hp; matmul weights are bf16
    (MXU-native); biases / LayerNorm params stay f32.  Padded rows/cols are zero,
    which keeps padded hidden units exactly 0 through the recurrence.
    """
    kp = {
        "ln_gamma": params["ln_gamma"].astype(jnp.float32),
        "ln_beta": params["ln_beta"].astype(jnp.float32),
    }
    for l in range(num_layers):
        wih, whh, b = params[f"wih_{l}"], params[f"whh_{l}"], params[f"b_{l}"]
        f_in = wih.shape[0]
        f_in_p = f_in if l == 0 else Hp
        wih_p = jnp.zeros((f_in_p, 4 * Hp), jnp.float32)
        whh_p = jnp.zeros((Hp, 4 * Hp), jnp.float32)
        b_p = jnp.zeros((1, 4 * Hp), jnp.float32)
        for g in range(4):
            wih_p = wih_p.at[:f_in, g * Hp:g * Hp + H].set(wih[:, g * H:(g + 1) * H])
            whh_p = whh_p.at[:H, g * Hp:g * Hp + H].set(whh[:, g * H:(g + 1) * H])
            b_p = b_p.at[:, g * Hp:g * Hp + H].set(b[:, g * H:(g + 1) * H])
        kp[f"wih_{l}"] = wih_p.astype(jnp.bfloat16)
        kp[f"whh_{l}"] = whh_p.astype(jnp.bfloat16)
        kp[f"b_{l}"] = b_p
    wproj_p = jnp.zeros((Hp, Pp), jnp.float32).at[:H, :P].set(params["wproj"])
    bproj_p = jnp.zeros((1, Pp), jnp.float32).at[:, :P].set(params["bproj"])
    kp["wproj"] = wproj_p.astype(jnp.bfloat16)
    kp["bproj"] = bproj_p
    return kp


# ------------------------------------ kernel ---------------------------------------
def _lstm_seq_kernel(num_layers, tc, gates_bf16, x_ref, gamma_ref, beta_ref, *rest):
    """One block of BM sequences: pre-LayerNorm -> stacked LSTM -> projection.

    rest = [wih_0, whh_0, b_0, ..., wih_{L-1}, whh_{L-1}, b_{L-1},
            wproj, bproj, out_ref, h_scr, gx_scr]
    """
    layer_refs = rest[: 3 * num_layers]
    wproj_ref, bproj_ref, out_ref, h_scr, gx_scr = rest[3 * num_layers:]

    T, BM, _ = x_ref.shape
    Hp = h_scr.shape[2]            # padded hidden size (multiple of 128)
    Pp = wproj_ref.shape[1]        # padded projection size (lane-dense matmul only)
    P = out_ref.shape[2]           # true projection size written back to HBM
    num_chunks = T // tc
    gate_dt = jnp.bfloat16 if gates_bf16 else jnp.float32

    # --- pre layer norm over the feature (lane) axis; PyTorch LayerNorm (biased var) ---
    x = x_ref[...]                                       # (T, BM, FS) f32
    mean = jnp.mean(x, axis=-1, keepdims=True)
    var = jnp.mean(jnp.square(x - mean), axis=-1, keepdims=True)
    x = (x - mean) * lax.rsqrt(var + LN_EPS)
    x_bf = (x * gamma_ref[...] + beta_ref[...]).astype(jnp.bfloat16)

    for l in range(num_layers):
        wih = layer_refs[3 * l][...]                     # (F_l, 4Hp) bf16
        whh = layer_refs[3 * l + 1][...]                 # (Hp, 4Hp) bf16
        b = layer_refs[3 * l + 2][...]                   # (1, 4Hp)  f32 (= b_ih + b_hh)
        f_in = wih.shape[0]

        h = jnp.zeros((BM, Hp), jnp.bfloat16)            # only consumed as bf16 operand
        c = jnp.zeros((BM, Hp), jnp.float32)

        for ck in range(num_chunks):
            t0 = ck * tc
            # Input contribution for this time chunk in one big MXU matmul (f32 accum).
            chunk_in = x_bf[t0:t0 + tc] if l == 0 else h_scr[t0:t0 + tc]
            gx = jnp.dot(chunk_in.reshape(tc * BM, f_in), wih,
                         preferred_element_type=jnp.float32) + b
            gx_scr[...] = gx.reshape(tc, BM, 4 * Hp)

            def step(t, carry, whh=whh, t0=t0):
                h, c = carry                             # (BM, Hp) bf16 / f32
                g = gx_scr[t] + jnp.dot(h, whh, preferred_element_type=jnp.float32)
                g = g.astype(gate_dt)                    # bf16 gates on v6e/v7x (EUP 2x)
                # PyTorch LSTM gate order i, f, g, o — each slice lane-aligned at Hp.
                i_g = jax.nn.sigmoid(g[:, 0 * Hp:1 * Hp])
                f_g = jax.nn.sigmoid(g[:, 1 * Hp:2 * Hp])
                g_g = jnp.tanh(g[:, 2 * Hp:3 * Hp])
                o_g = jax.nn.sigmoid(g[:, 3 * Hp:4 * Hp])
                c_new = f_g * c + i_g * g_g              # f32 accumulation
                h_new = (o_g * jnp.tanh(c_new.astype(gate_dt))).astype(jnp.bfloat16)
                h_scr[t0 + t] = h_new                    # bf16 full-tile store
                return (h_new, c_new)

            carry = (h, c)
            if tc <= 32:
                # Fully unroll short recurrences: scheduler can overlap MXU/EUP/VPU.
                for t in range(tc):
                    carry = step(t, carry)
            else:
                carry = lax.fori_loop(0, tc, step, carry, unroll=8)
            h, c = carry

    # --- projection (nn.Linear); Identity output activation.  Chunked so temporaries
    # stay bounded; lane-dense (Pp) matmul in VMEM, exact-P store back to HBM. ---
    for ck in range(num_chunks):
        t0 = ck * tc
        yin = h_scr[t0:t0 + tc]                          # (tc, BM, Hp) bf16
        y = jnp.dot(yin.reshape(tc * BM, Hp), wproj_ref[...],
                    preferred_element_type=jnp.float32) + bproj_ref[...]
        out_ref[t0:t0 + tc] = y.reshape(tc, BM, Pp)[:, :, :P].astype(out_ref.dtype)


# ------------------------------------ wrapper ---------------------------------------
def _subband_rearrange(out_bft, B, N, df_order, num_spks):
    """einops: '(b n) (c fc df s) t -> b df s (n fc) t c' with c=2."""
    BN, F, T = out_bft.shape
    c2 = 2
    fc = F // (c2 * df_order * num_spks)
    o = out_bft.reshape(B, N, c2, fc, df_order, num_spks, T)
    o = jnp.transpose(o, (0, 4, 5, 1, 3, 6, 2))
    return o.reshape(B, df_order, num_spks, N * fc, T, c2)


def subband_sequence_model_forward(x, params, *, df_order, num_spks, hidden_size,
                                   num_layers):
    """x: (B, num_subbands, num_channels=1, sb_freq_size, seq_len)."""
    B, N, C, FS, T = x.shape
    assert C == 1, "Only mono audio is supported."
    BN = B * N
    H = hidden_size
    P = params["wproj"].shape[1]
    Hp = _round_up(H, 128)
    Pp = _round_up(P, 128)

    chip = _tpu_chip_info()
    BM, num_blocks, BN_pad, TC, T_pad, vmem_limit = _plan_blocks(
        BN, T, FS, Hp, Pp, P, num_layers, chip)

    # 'b n c fs t -> (b n) (c fs) t' then time-major (T, BN, FS): per-time-step
    # recurrence reads/writes whole (BM, lane) tiles.  Batch padded to BN_pad and time
    # padded to a multiple of the gx chunk (causal LSTM -> padding sliced off below).
    xk = jnp.transpose(x.reshape(BN, FS, T).astype(jnp.float32), (2, 0, 1))
    if T_pad != T or BN_pad != BN:
        xk = jnp.pad(xk, ((0, T_pad - T), (0, BN_pad - BN), (0, 0)))

    kp = _prepare_kernel_params(params, FS, H, Hp, P, Pp, num_layers)

    in_specs = [
        pl.BlockSpec((T_pad, BM, FS), lambda i: (0, i, 0)),
        pl.BlockSpec((1, FS), lambda i: (0, 0)),
        pl.BlockSpec((1, FS), lambda i: (0, 0)),
    ]
    args = [xk, kp["ln_gamma"], kp["ln_beta"]]
    for l in range(num_layers):
        wih, whh, b = kp[f"wih_{l}"], kp[f"whh_{l}"], kp[f"b_{l}"]
        in_specs += [
            pl.BlockSpec(wih.shape, lambda i: (0, 0)),
            pl.BlockSpec(whh.shape, lambda i: (0, 0)),
            pl.BlockSpec(b.shape, lambda i: (0, 0)),
        ]
        args += [wih, whh, b]
    in_specs += [
        pl.BlockSpec(kp["wproj"].shape, lambda i: (0, 0)),
        pl.BlockSpec(kp["bproj"].shape, lambda i: (0, 0)),
    ]
    args += [kp["wproj"], kp["bproj"]]

    kernel = functools.partial(_lstm_seq_kernel, num_layers, TC, chip["bf16_eup"])

    out = pl.pallas_call(
        kernel,
        out_shape=jax.ShapeDtypeStruct((T_pad, BN_pad, P), jnp.float32),
        grid=(num_blocks,),
        in_specs=in_specs,
        out_specs=pl.BlockSpec((T_pad, BM, P), lambda i: (0, i, 0)),
        scratch_shapes=[
            pltpu.VMEM((T_pad, BM, Hp), jnp.bfloat16),   # h_scr: layer output history
            pltpu.VMEM((TC, BM, 4 * Hp), jnp.float32),   # gx_scr: chunked gate precompute
        ],
        compiler_params=pltpu.CompilerParams(
            dimension_semantics=("parallel",),
            vmem_limit_bytes=vmem_limit),
    )(*args)

    # (T_pad, BN_pad, P) -> PyTorch 'b f t' with batch/time padding stripped.
    out_bft = jnp.transpose(out[:T, :BN, :], (1, 2, 0))
    all_layer_outputs = []  # LSTM branch of SequenceModel returns []
    return _subband_rearrange(out_bft, B, N, df_order, num_spks), all_layer_outputs


# ----------------------------- pure-JAX f32 reference -------------------------------
def reference_forward(x, params, *, df_order, num_spks, hidden_size, num_layers):
    B, N, C, FS, T = x.shape
    H = hidden_size
    seq = jnp.transpose(x.reshape(B * N, FS, T), (0, 2, 1))  # (BN, T, F)
    mean = seq.mean(-1, keepdims=True)
    var = jnp.square(seq - mean).mean(-1, keepdims=True)
    seq = (seq - mean) / jnp.sqrt(var + LN_EPS) * params["ln_gamma"] + params["ln_beta"]

    for l in range(num_layers):
        wih, whh, b = params[f"wih_{l}"], params[f"whh_{l}"], params[f"b_{l}"]
        gx = seq @ wih + b  # (BN, T, 4H)

        def step(carry, g):
            h, c = carry
            g = g + h @ whh
            i_g = jax.nn.sigmoid(g[:, :H])
            f_g = jax.nn.sigmoid(g[:, H:2 * H])
            g_g = jnp.tanh(g[:, 2 * H:3 * H])
            o_g = jax.nn.sigmoid(g[:, 3 * H:])
            c = f_g * c + i_g * g_g
            h = o_g * jnp.tanh(c)
            return (h, c), h

        h0 = jnp.zeros((seq.shape[0], H), jnp.float32)
        _, outs = lax.scan(step, (h0, h0), jnp.transpose(gx, (1, 0, 2)))
        seq = jnp.transpose(outs, (1, 0, 2))

    out = seq @ params["wproj"] + params["bproj"]
    out_bft = jnp.transpose(out, (0, 2, 1))
    return _subband_rearrange(out_bft, B, N, df_order, num_spks)


# ------------------------------- parameter init --------------------------------
def init_params(key, input_size, hidden_size, num_layers, proj_size):
    H = hidden_size
    bound = 1.0 / (H ** 0.5)
    keys = jax.random.split(key, 4 * num_layers + 4)
    params = {
        "ln_gamma": 1.0 + 0.1 * jax.random.normal(keys[0], (1, input_size), jnp.float32),
        "ln_beta": 0.1 * jax.random.normal(keys[1], (1, input_size), jnp.float32),
    }
    k = 2
    for l in range(num_layers):
        in_l = input_size if l == 0 else H
        params[f"wih_{l}"] = jax.random.uniform(
            keys[k], (in_l, 4 * H), jnp.float32, -bound, bound); k += 1
        params[f"whh_{l}"] = jax.random.uniform(
            keys[k], (H, 4 * H), jnp.float32, -bound, bound); k += 1
        b_ih = jax.random.uniform(keys[k], (1, 4 * H), jnp.float32, -bound, bound); k += 1
        b_hh = jax.random.uniform(keys[k], (1, 4 * H), jnp.float32, -bound, bound); k += 1
        params[f"b_{l}"] = b_ih + b_hh
    params["wproj"] = jax.random.uniform(
        keys[k], (H, proj_size), jnp.float32, -bound, bound); k += 1
    params["bproj"] = jax.random.uniform(
        keys[k], (1, proj_size), jnp.float32, -bound, bound)
    return params


if __name__ == "__main__":
    # Small, module-consistent shapes.
    B, N, C, FS, T = 2, 3, 1, 16, 8   # batch, subbands, channels(=1), sb_freq, seq_len
    H, L = 32, 2                      # hidden_size, num_layers
    DF, SPK, FC = 3, 1, 2             # df_order, num_spks, center-freq bins
    P = 2 * FC * DF * SPK             # proj_size = c(2) * fc * df * spks = 12

    key = jax.random.PRNGKey(0)
    kx, kp = jax.random.split(key)
    x = jax.random.normal(kx, (B, N, C, FS, T), jnp.float32)
    params = init_params(kp, FS, H, L, P)

    fwd = jax.jit(functools.partial(
        subband_sequence_model_forward,
        df_order=DF, num_spks=SPK, hidden_size=H, num_layers=L))
    out, aux = fwd(x, params)
    out = jax.block_until_ready(out)
    assert out.shape == (B, DF, SPK, N * FC, T, 2), out.shape
    assert bool(jnp.isfinite(out).all()), "non-finite values in kernel output"

    # True f32 reference (no bf16 rounding of reference weights).  The kernel runs
    # matmuls / (on v6e+) gate nonlinearities in bf16 as a deliberate trade-off, so a
    # modest tolerance is used here.
    ref = reference_forward(
        x, params, df_order=DF, num_spks=SPK, hidden_size=H, num_layers=L)
    max_err = float(jnp.abs(out - ref).max())
    assert jnp.allclose(out, ref, rtol=5e-2, atol=5e-2), f"max_err={max_err}"

    print("KERNEL_OK")
</pallas_src>

<mosaic_0001>
module attributes {stable_mosaic.version = 11 : i64} {
  func.func @_lstm_seq_kernel(%arg0: i32, %arg1: memref<8x16x16xf32, #tpu.memory_space<vmem>>, %arg2: memref<1x16xf32, #tpu.memory_space<vmem>>, %arg3: memref<1x16xf32, #tpu.memory_space<vmem>>, %arg4: memref<16x512xbf16, #tpu.memory_space<vmem>>, %arg5: memref<128x512xbf16, #tpu.memory_space<vmem>>, %arg6: memref<1x512xf32, #tpu.memory_space<vmem>>, %arg7: memref<128x512xbf16, #tpu.memory_space<vmem>>, %arg8: memref<128x512xbf16, #tpu.memory_space<vmem>>, %arg9: memref<1x512xf32, #tpu.memory_space<vmem>>, %arg10: memref<128x128xbf16, #tpu.memory_space<vmem>>, %arg11: memref<1x128xf32, #tpu.memory_space<vmem>>, %arg12: memref<8x16x12xf32, #tpu.memory_space<vmem>>, %arg13: memref<8x16x128xbf16, #tpu.memory_space<vmem>>, %arg14: memref<8x16x512xf32, #tpu.memory_space<vmem>>) attributes {dimension_semantics = [#tpu.dimension_semantics<parallel>], iteration_bounds = array<i64: 1>, scalar_prefetch = 0 : i64, scratch_operands = 2 : i64, tpu.core_type = #tpu.core_type<tc>, window_params = [{transform_indices = @transform_0, window_bounds = array<i64: 8, 16, 16>}, {pipeline_mode = #tpu.pipeline_mode<synchronous>, transform_indices = @transform_1, window_bounds = array<i64: 1, 16>}, {pipeline_mode = #tpu.pipeline_mode<synchronous>, transform_indices = @transform_2, window_bounds = array<i64: 1, 16>}, {pipeline_mode = #tpu.pipeline_mode<synchronous>, transform_indices = @transform_3, window_bounds = array<i64: 16, 512>}, {pipeline_mode = #tpu.pipeline_mode<synchronous>, transform_indices = @transform_4, window_bounds = array<i64: 128, 512>}, {pipeline_mode = #tpu.pipeline_mode<synchronous>, transform_indices = @transform_5, window_bounds = array<i64: 1, 512>}, {pipeline_mode = #tpu.pipeline_mode<synchronous>, transform_indices = @transform_6, window_bounds = array<i64: 128, 512>}, {pipeline_mode = #tpu.pipeline_mode<synchronous>, transform_indices = @transform_7, window_bounds = array<i64: 128, 512>}, {pipeline_mode = #tpu.pipeline_mode<synchronous>, transform_indices = @transform_8, window_bounds = array<i64: 1, 512>}, {pipeline_mode = #tpu.pipeline_mode<synchronous>, transform_indices = @transform_9, window_bounds = array<i64: 128, 128>}, {pipeline_mode = #tpu.pipeline_mode<synchronous>, transform_indices = @transform_10, window_bounds = array<i64: 1, 128>}, {transform_indices = @transform_11, window_bounds = array<i64: 8, 16, 12>}]} {
    %c0 = arith.constant 0 : index
    %c0_0 = arith.constant 0 : index
    %c0_1 = arith.constant 0 : index
    %0 = vector.load %arg1[%c0, %c0_0, %c0_1] : memref<8x16x16xf32, #tpu.memory_space<vmem>>, vector<8x16x16xf32>
    %cst = arith.constant dense<0.000000e+00> : vector<8x16xf32>
    %1 = vector.multi_reduction <add>, %0, %cst [2] : vector<8x16x16xf32> to vector<8x16xf32>
    %2 = vector.shape_cast %1 : vector<8x16xf32> to vector<8x16x1xf32>
    %cst_2 = arith.constant 1.600000e+01 : f32
    %3 = vector.broadcast %cst_2 : f32 to vector<8x16x1xf32>
    %4 = arith.divf %2, %3 : vector<8x16x1xf32>
    %5 = vector.broadcast %4 : vector<8x16x1xf32> to vector<8x16x16xf32>
    %6 = arith.subf %0, %5 : vector<8x16x16xf32>
    %7 = arith.mulf %6, %6 : vector<8x16x16xf32>
    %cst_3 = arith.constant dense<0.000000e+00> : vector<8x16xf32>
    %8 = vector.multi_reduction <add>, %7, %cst_3 [2] : vector<8x16x16xf32> to vector<8x16xf32>
    %9 = vector.shape_cast %8 : vector<8x16xf32> to vector<8x16x1xf32>
    %cst_4 = arith.constant 1.600000e+01 : f32
    %10 = vector.broadcast %cst_4 : f32 to vector<8x16x1xf32>
    %11 = arith.divf %9, %10 : vector<8x16x1xf32>
    %12 = vector.broadcast %4 : vector<8x16x1xf32> to vector<8x16x16xf32>
    %13 = arith.subf %0, %12 : vector<8x16x16xf32>
    %cst_5 = arith.constant 9.99999974E-6 : f32
    %14 = vector.broadcast %cst_5 : f32 to vector<8x16x1xf32>
    %15 = arith.addf %11, %14 : vector<8x16x1xf32>
    %16 = math.rsqrt %15 : vector<8x16x1xf32>
    %17 = vector.broadcast %16 : vector<8x16x1xf32> to vector<8x16x16xf32>
    %18 = arith.mulf %13, %17 : vector<8x16x16xf32>
    %c0_6 = arith.constant 0 : index
    %c0_7 = arith.constant 0 : index
    %19 = vector.load %arg2[%c0_6, %c0_7] : memref<1x16xf32, #tpu.memory_space<vmem>>, vector<1x16xf32>
    %20 = vector.shape_cast %19 : vector<1x16xf32> to vector<1x1x16xf32>
    %21 = vector.broadcast %20 : vector<1x1x16xf32> to vector<8x16x16xf32>
    %22 = arith.mulf %18, %21 : vector<8x16x16xf32>
    %c0_8 = arith.constant 0 : index
    %c0_9 = arith.constant 0 : index
    %23 = vector.load %arg3[%c0_8, %c0_9] : memref<1x16xf32, #tpu.memory_space<vmem>>, vector<1x16xf32>
    %24 = vector.shape_cast %23 : vector<1x16xf32> to vector<1x1x16xf32>
    %25 = vector.broadcast %24 : vector<1x1x16xf32> to vector<8x16x16xf32>
    %26 = arith.addf %22, %25 : vector<8x16x16xf32>
    %27 = arith.truncf %26 : vector<8x16x16xf32> to vector<8x16x16xbf16>
    %c0_10 = arith.constant 0 : index
    %c0_11 = arith.constant 0 : index
    %28 = vector.load %arg4[%c0_10, %c0_11] : memref<16x512xbf16, #tpu.memory_space<vmem>>, vector<16x512xbf16>
    %c0_12 = arith.constant 0 : index
    %c0_13 = arith.constant 0 : index
    %29 = vector.load %arg5[%c0_12, %c0_13] : memref<128x512xbf16, #tpu.memory_space<vmem>>, vector<128x512xbf16>
    %c0_14 = arith.constant 0 : index
    %c0_15 = arith.constant 0 : index
    %30 = vector.load %arg6[%c0_14, %c0_15] : memref<1x512xf32, #tpu.memory_space<vmem>>, vector<1x512xf32>
    %cst_16 = arith.constant 0.000000e+00 : bf16
    %31 = vector.broadcast %cst_16 : bf16 to vector<16x128xbf16>
    %cst_17 = arith.constant 0.000000e+00 : f32
    %32 = vector.broadcast %cst_17 : f32 to vector<16x128xf32>
    %33 = vector.shape_cast %27 : vector<8x16x16xbf16> to vector<128x16xbf16>
    %cst_18 = arith.constant dense<0.000000e+00> : vector<128x512xf32>
    %34 = tpu.matmul %33, %28, %cst_18 {dimension_numbers = #tpu.dot_dimension_numbers<[1], [0], [0], [1], [0, 0, 1, 1], [], []>} : vector<128x16xbf16>, vector<16x512xbf16>, vector<128x512xf32> -> vector<128x512xf32>
    %35 = vector.broadcast %30 : vector<1x512xf32> to vector<128x512xf32>
    %36 = arith.addf %34, %35 : vector<128x512xf32>
    %37 = vector.shape_cast %36 : vector<128x512xf32> to vector<8x16x512xf32>
    %c0_19 = arith.constant 0 : index
    %c0_20 = arith.constant 0 : index
    %c0_21 = arith.constant 0 : index
    %38 = vector.load %arg14[%c0_19, %c0_20, %c0_21] : memref<8x16x512xf32, #tpu.memory_space<vmem>>, vector<8x16x512xf32>
    tpu.vector_store %arg14[%c0_19, %c0_20, %c0_21], %37 {strides = array<i32>} : memref<8x16x512xf32, #tpu.memory_space<vmem>>, vector<8x16x512xf32>,
    %c0_22 = arith.constant 0 : index
    %c0_23 = arith.constant 0 : index
    %c0_24 = arith.constant 0 : index
    %39 = vector.load %arg14[%c0_22, %c0_23, %c0_24] : memref<8x16x512xf32, #tpu.memory_space<vmem>>, vector<1x16x512xf32>
    %40 = vector.shape_cast %39 : vector<1x16x512xf32> to vector<16x512xf32>
    %cst_25 = arith.constant dense<0.000000e+00> : vector<16x512xf32>
    %41 = tpu.matmul %31, %29, %cst_25 {dimension_numbers = #tpu.dot_dimension_numbers<[1], [0], [0], [1], [0, 0, 1, 1], [], []>} : vector<16x128xbf16>, vector<128x512xbf16>, vector<16x512xf32> -> vector<16x512xf32>
    %42 = arith.addf %40, %41 : vector<16x512xf32>
    %43 = vector.extract_strided_slice %42 {offsets = [0, 0], sizes = [16, 128], strides = [1, 1]} : vector<16x512xf32> to vector<16x128xf32>
    %44 = arith.negf %43 : vector<16x128xf32>
    %45 = math.exp %44 : vector<16x128xf32>
    %cst_26 = arith.constant 1.000000e+00 : f32
    %46 = vector.broadcast %cst_26 : f32 to vector<16x128xf32>
    %47 = arith.addf %46, %45 : vector<16x128xf32>
    %48 = arith.divf %46, %47 : vector<16x128xf32>
    %49 = vector.extract_strided_slice %42 {offsets = [0, 128], sizes = [16, 128], strides = [1, 1]} : vector<16x512xf32> to vector<16x128xf32>
    %50 = arith.negf %49 : vector<16x128xf32>
    %51 = math.exp %50 : vector<16x128xf32>
    %cst_27 = arith.constant 1.000000e+00 : f32
    %52 = vector.broadcast %cst_27 : f32 to vector<16x128xf32>
    %53 = arith.addf %52, %51 : vector<16x128xf32>
    %54 = arith.divf %52, %53 : vector<16x128xf32>
    %55 = vector.extract_strided_slice %42 {offsets = [0, 256], sizes = [16, 128], strides = [1, 1]} : vector<16x512xf32> to vector<16x128xf32>
    %56 = math.tanh %55 : vector<16x128xf32>
    %57 = vector.extract_strided_slice %42 {offsets = [0, 384], sizes = [16, 128], strides = [1, 1]} : vector<16x512xf32> to vector<16x128xf32>
    %58 = arith.negf %57 : vector<16x128xf32>
    %59 = math.exp %58 : vector<16x128xf32>
    %cst_28 = arith.constant 1.000000e+00 : f32
    %60 = vector.broadcast %cst_28 : f32 to vector<16x128xf32>
    %61 = arith.addf %60, %59 : vector<16x128xf32>
    %62 = arith.divf %60, %61 : vector<16x128xf32>
    %63 = arith.mulf %54, %32 : vector<16x128xf32>
    %64 = arith.mulf %48, %56 : vector<16x128xf32>
    %65 = arith.addf %63, %64 : vector<16x128xf32>
    %66 = math.tanh %65 : vector<16x128xf32>
    %67 = arith.mulf %62, %66 : vector<16x128xf32>
    %68 = arith.truncf %67 : vector<16x128xf32> to vector<16x128xbf16>
    %c0_29 = arith.constant 0 : index
    %c0_30 = arith.constant 0 : index
    %c0_31 = arith.constant 0 : index
    %69 = vector.load %arg13[%c0_29, %c0_30, %c0_31] : memref<8x16x128xbf16, #tpu.memory_space<vmem>>, vector<1x16x128xbf16>
    %70 = vector.shape_cast %69 : vector<1x16x128xbf16> to vector<16x128xbf16>
    %71 = vector.shape_cast %68 : vector<16x128xbf16> to vector<1x16x128xbf16>
    tpu.vector_store %arg13[%c0_29, %c0_30, %c0_31], %71 {strides = array<i32>} : memref<8x16x128xbf16, #tpu.memory_space<vmem>>, vector<1x16x128xbf16>,
    %c1 = arith.constant 1 : index
    %c0_32 = arith.constant 0 : index
    %c0_33 = arith.constant 0 : index
    %72 = vector.load %arg14[%c1, %c0_32, %c0_33] : memref<8x16x512xf32, #tpu.memory_space<vmem>>, vector<1x16x512xf32>
    %73 = vector.shape_cast %72 : vector<1x16x512xf32> to vector<16x512xf32>
    %cst_34 = arith.constant dense<0.000000e+00> : vector<16x512xf32>
    %74 = tpu.matmul %68, %29, %cst_34 {dimension_numbers = #tpu.dot_dimension_numbers<[1], [0], [0], [1], [0, 0, 1, 1], [], []>} : vector<16x128xbf16>, vector<128x512xbf16>, vector<16x512xf32> -> vector<16x512xf32>
    %75 = arith.addf %73, %74 : vector<16x512xf32>
    %76 = vector.extract_strided_slice %75 {offsets = [0, 0], sizes = [16, 128], strides = [1, 1]} : vector<16x512xf32> to vector<16x128xf32>
    %77 = arith.negf %76 : vector<16x128xf32>
    %78 = math.exp %77 : vector<16x128xf32>
    %cst_35 = arith.constant 1.000000e+00 : f32
    %79 = vector.broadcast %cst_35 : f32 to vector<16x128xf32>
    %80 = arith.addf %79, %78 : vector<16x128xf32>
    %81 = arith.divf %79, %80 : vector<16x128xf32>
    %82 = vector.extract_strided_slice %75 {offsets = [0, 128], sizes = [16, 128], strides = [1, 1]} : vector<16x512xf32> to vector<16x128xf32>
    %83 = arith.negf %82 : vector<16x128xf32>
    %84 = math.exp %83 : vector<16x128xf32>
    %cst_36 = arith.constant 1.000000e+00 : f32
    %85 = vector.broadcast %cst_36 : f32 to vector<16x128xf32>
    %86 = arith.addf %85, %84 : vector<16x128xf32>
    %87 = arith.divf %85, %86 : vector<16x128xf32>
    %88 = vector.extract_strided_slice %75 {offsets = [0, 256], sizes = [16, 128], strides = [1, 1]} : vector<16x512xf32> to vector<16x128xf32>
    %89 = math.tanh %88 : vector<16x128xf32>
    %90 = vector.extract_strided_slice %75 {offsets = [0, 384], sizes = [16, 128], strides = [1, 1]} : vector<16x512xf32> to vector<16x128xf32>
    %91 = arith.negf %90 : vector<16x128xf32>
    %92 = math.exp %91 : vector<16x128xf32>
    %cst_37 = arith.constant 1.000000e+00 : f32
    %93 = vector.broadcast %cst_37 : f32 to vector<16x128xf32>
    %94 = arith.addf %93, %92 : vector<16x128xf32>
    %95 = arith.divf %93, %94 : vector<16x128xf32>
    %96 = arith.mulf %87, %65 : vector<16x128xf32>
    %97 = arith.mulf %81, %89 : vector<16x128xf32>
    %98 = arith.addf %96, %97 : vector<16x128xf32>
    %99 = math.tanh %98 : vector<16x128xf32>
    %100 = arith.mulf %95, %99 : vector<16x128xf32>
    %101 = arith.truncf %100 : vector<16x128xf32> to vector<16x128xbf16>
    %c1_38 = arith.constant 1 : index
    %c0_39 = arith.constant 0 : index
    %c0_40 = arith.constant 0 : index
    %102 = vector.load %arg13[%c1_38, %c0_39, %c0_40] : memref<8x16x128xbf16, #tpu.memory_space<vmem>>, vector<1x16x128xbf16>
    %103 = vector.shape_cast %102 : vector<1x16x128xbf16> to vector<16x128xbf16>
    %104 = vector.shape_cast %101 : vector<16x128xbf16> to vector<1x16x128xbf16>
    tpu.vector_store %arg13[%c1_38, %c0_39, %c0_40], %104 {strides = array<i32>} : memref<8x16x128xbf16, #tpu.memory_space<vmem>>, vector<1x16x128xbf16>,
    %c2 = arith.constant 2 : index
    %c0_41 = arith.constant 0 : index
    %c0_42 = arith.constant 0 : index
    %105 = vector.load %arg14[%c2, %c0_41, %c0_42] : memref<8x16x512xf32, #tpu.memory_space<vmem>>, vector<1x16x512xf32>
    %106 = vector.shape_cast %105 : vector<1x16x512xf32> to vector<16x512xf32>
    %cst_43 = arith.constant dense<0.000000e+00> : vector<16x512xf32>
    %107 = tpu.matmul %101, %29, %cst_43 {dimension_numbers = #tpu.dot_dimension_numbers<[1], [0], [0], [1], [0, 0, 1, 1], [], []>} : vector<16x128xbf16>, vector<128x512xbf16>, vector<16x512xf32> -> vector<16x512xf32>
    %108 = arith.addf %106, %107 : vector<16x512xf32>
    %109 = vector.extract_strided_slice %108 {offsets = [0, 0], sizes = [16, 128], strides = [1, 1]} : vector<16x512xf32> to vector<16x128xf32>
    %110 = arith.negf %109 : vector<16x128xf32>
    %111 = math.exp %110 : vector<16x128xf32>
    %cst_44 = arith.constant 1.000000e+00 : f32
    %112 = vector.broadcast %cst_44 : f32 to vector<16x128xf32>
    %113 = arith.addf %112, %111 : vector<16x128xf32>
    %114 = arith.divf %112, %113 : vector<16x128xf32>
    %115 = vector.extract_strided_slice %108 {offsets = [0, 128], sizes = [16, 128], strides = [1, 1]} : vector<16x512xf32> to vector<16x128xf32>
    %116 = arith.negf %115 : vector<16x128xf32>
    %117 = math.exp %116 : vector<16x128xf32>
    %cst_45 = arith.constant 1.000000e+00 : f32
    %118 = vector.broadcast %cst_45 : f32 to vector<16x128xf32>
    %119 = arith.addf %118, %117 : vector<16x128xf32>
    %120 = arith.divf %118, %119 : vector<16x128xf32>
    %121 = vector.extract_strided_slice %108 {offsets = [0, 256], sizes = [16, 128], strides = [1, 1]} : vector<16x512xf32> to vector<16x128xf32>
    %122 = math.tanh %121 : vector<16x128xf32>
    %123 = vector.extract_strided_slice %108 {offsets = [0, 384], sizes = [16, 128], strides = [1, 1]} : vector<16x512xf32> to vector<16x128xf32>
    %124 = arith.negf %123 : vector<16x128xf32>
    %125 = math.exp %124 : vector<16x128xf32>
    %cst_46 = arith.constant 1.000000e+00 : f32
    %126 = vector.broadcast %cst_46 : f32 to vector<16x128xf32>
    %127 = arith.addf %126, %125 : vector<16x128xf32>
    %128 = arith.divf %126, %127 : vector<16x128xf32>
    %129 = arith.mulf %120, %98 : vector<16x128xf32>
    %130 = arith.mulf %114, %122 : vector<16x128xf32>
    %131 = arith.addf %129, %130 : vector<16x128xf32>
    %132 = math.tanh %131 : vector<16x128xf32>
    %133 = arith.mulf %128, %132 : vector<16x128xf32>
    %134 = arith.truncf %133 : vector<16x128xf32> to vector<16x128xbf16>
    %c2_47 = arith.constant 2 : index
    %c0_48 = arith.constant 0 : index
    %c0_49 = arith.constant 0 : index
    %135 = vector.load %arg13[%c2_47, %c0_48, %c0_49] : memref<8x16x128xbf16, #tpu.memory_space<vmem>>, vector<1x16x128xbf16>
    %136 = vector.shape_cast %135 : vector<1x16x128xbf16> to vector<16x128xbf16>
    %137 = vector.shape_cast %134 : vector<16x128xbf16> to vector<1x16x128xbf16>
    tpu.vector_store %arg13[%c2_47, %c0_48, %c0_49], %137 {strides = array<i32>} : memref<8x16x128xbf16, #tpu.memory_space<vmem>>, vector<1x16x128xbf16>,
    %c3 = arith.constant 3 : index
    %c0_50 = arith.constant 0 : index
    %c0_51 = arith.constant 0 : index
    %138 = vector.load %arg14[%c3, %c0_50, %c0_51] : memref<8x16x512xf32, #tpu.memory_space<vmem>>, vector<1x16x512xf32>
    %139 = vector.shape_cast %138 : vector<1x16x512xf32> to vector<16x512xf32>
    %cst_52 = arith.constant dense<0.000000e+00> : vector<16x512xf32>
    %140 = tpu.matmul %134, %29, %cst_52 {dimension_numbers = #tpu.dot_dimension_numbers<[1], [0], [0], [1], [0, 0, 1, 1], [], []>} : vector<16x128xbf16>, vector<128x512xbf16>, vector<16x512xf32> -> vector<16x512xf32>
    %141 = arith.addf %139, %140 : vector<16x512xf32>
    %142 = vector.extract_strided_slice %141 {offsets = [0, 0], sizes = [16, 128], strides = [1, 1]} : vector<16x512xf32> to vector<16x128xf32>
    %143 = arith.negf %142 : vector<16x128xf32>
    %144 = math.exp %143 : vector<16x128xf32>
    %cst_53 = arith.constant 1.000000e+00 : f32
    %145 = vector.broadcast %cst_53 : f32 to vector<16x128xf32>
    %146 = arith.addf %145, %144 : vector<16x128xf32>
    %147 = arith.divf %145, %146 : vector<16x128xf32>
    %148 = vector.extract_strided_slice %141 {offsets = [0, 128], sizes = [16, 128], strides = [1, 1]} : vector<16x512xf32> to vector<16x128xf32>
    %149 = arith.negf %148 : vector<16x128xf32>
    %150 = math.exp %149 : vector<16x128xf32>
    %cst_54 = arith.constant 1.000000e+00 : f32
    %151 = vector.broadcast %cst_54 : f32 to vector<16x128xf32>
    %152 = arith.addf %151, %150 : vector<16x128xf32>
    %153 = arith.divf %151, %152 : vector<16x128xf32>
    %154 = vector.extract_strided_slice %141 {offsets = [0, 256], sizes = [16, 128], strides = [1, 1]} : vector<16x512xf32> to vector<16x128xf32>
    %155 = math.tanh %154 : vector<16x128xf32>
    %156 = vector.extract_strided_slice %141 {offsets = [0, 384], sizes = [16, 128], strides = [1, 1]} : vector<16x512xf32> to vector<16x128xf32>
    %157 = arith.negf %156 : vector<16x128xf32>
    %158 = math.exp %157 : vector<16x128xf32>
    %cst_55 = arith.constant 1.000000e+00 : f32
    %159 = vector.broadcast %cst_55 : f32 to vector<16x128xf32>
    %160 = arith.addf %159, %158 : vector<16x128xf32>
    %161 = arith.divf %159, %160 : vector<16x128xf32>
    %162 = arith.mulf %153, %131 : vector<16x128xf32>
    %163 = arith.mulf %147, %155 : vector<16x128xf32>
    %164 = arith.addf %162, %163 : vector<16x128xf32>
    %165 = math.tanh %164 : vector<16x128xf32>
    %166 = arith.mulf %161, %165 : vector<16x128xf32>
    %167 = arith.truncf %166 : vector<16x128xf32> to vector<16x128xbf16>
    %c3_56 = arith.constant 3 : index
    %c0_57 = arith.constant 0 : index
    %c0_58 = arith.constant 0 : index
    %168 = vector.load %arg13[%c3_56, %c0_57, %c0_58] : memref<8x16x128xbf16, #tpu.memory_space<vmem>>, vector<1x16x128xbf16>
    %169 = vector.shape_cast %168 : vector<1x16x128xbf16> to vector<16x128xbf16>
    %170 = vector.shape_cast %167 : vector<16x128xbf16> to vector<1x16x128xbf16>
    tpu.vector_store %arg13[%c3_56, %c0_57, %c0_58], %170 {strides = array<i32>} : memref<8x16x128xbf16, #tpu.memory_space<vmem>>, vector<1x16x128xbf16>,
    %c4 = arith.constant 4 : index
    %c0_59 = arith.constant 0 : index
    %c0_60 = arith.constant 0 : index
    %171 = vector.load %arg14[%c4, %c0_59, %c0_60] : memref<8x16x512xf32, #tpu.memory_space<vmem>>, vector<1x16x512xf32>
    %172 = vector.shape_cast %171 : vector<1x16x512xf32> to vector<16x512xf32>
    %cst_61 = arith.constant dense<0.000000e+00> : vector<16x512xf32>
    %173 = tpu.matmul %167, %29, %cst_61 {dimension_numbers = #tpu.dot_dimension_numbers<[1], [0], [0], [1], [0, 0, 1, 1], [], []>} : vector<16x128xbf16>, vector<128x512xbf16>, vector<16x512xf32> -> vector<16x512xf32>
    %174 = arith.addf %172, %173 : vector<16x512xf32>
    %175 = vector.extract_strided_slice %174 {offsets = [0, 0], sizes = [16, 128], strides = [1, 1]} : vector<16x512xf32> to vector<16x128xf32>
    %176 = arith.negf %175 : vector<16x128xf32>
    %177 = math.exp %176 : vector<16x128xf32>
    %cst_62 = arith.constant 1.000000e+00 : f32
    %178 = vector.broadcast %cst_62 : f32 to vector<16x128xf32>
    %179 = arith.addf %178, %177 : vector<16x128xf32>
    %180 = arith.divf %178, %179 : vector<16x128xf32>
    %181 = vector.extract_strided_slice %174 {offsets = [0, 128], sizes = [16, 128], strides = [1, 1]} : vector<16x512xf32> to vector<16x128xf32>
    %182 = arith.negf %181 : vector<16x128xf32>
    %183 = math.exp %182 : vector<16x128xf32>
    %cst_63 = arith.constant 1.000000e+00 : f32
    %184 = vector.broadcast %cst_63 : f32 to vector<16x128xf32>
    %185 = arith.addf %184, %183 : vector<16x128xf32>
    %186 = arith.divf %184, %185 : vector<16x128xf32>
    %187 = vector.extract_strided_slice %174 {offsets = [0, 256], sizes = [16, 128], strides = [1, 1]} : vector<16x512xf32> to vector<16x128xf32>
    %188 = math.tanh %187 : vector<16x128xf32>
    %189 = vector.extract_strided_slice %174 {offsets = [0, 384], sizes = [16, 128], strides = [1, 1]} : vector<16x512xf32> to vector<16x128xf32>
    %190 = arith.negf %189 : vector<16x128xf32>
    %191 = math.exp %190 : vector<16x128xf32>
    %cst_64 = arith.constant 1.000000e+00 : f32
    %192 = vector.broadcast %cst_64 : f32 to vector<16x128xf32>
    %193 = arith.addf %192, %191 : vector<16x128xf32>
    %194 = arith.divf %192, %193 : vector<16x128xf32>
    %195 = arith.mulf %186, %164 : vector<16x128xf32>
    %196 = arith.mulf %180, %188 : vector<16x128xf32>
    %197 = arith.addf %195, %196 : vector<16x128xf32>
    %198 = math.tanh %197 : vector<16x128xf32>
    %199 = arith.mulf %194, %198 : vector<16x128xf32>
    %200 = arith.truncf %199 : vector<16x128xf32> to vector<16x128xbf16>
    %c4_65 = arith.constant 4 : index
    %c0_66 = arith.constant 0 : index
    %c0_67 = arith.constant 0 : index
    %201 = vector.load %arg13[%c4_65, %c0_66, %c0_67] : memref<8x16x128xbf16, #tpu.memory_space<vmem>>, vector<1x16x128xbf16>
    %202 = vector.shape_cast %201 : vector<1x16x128xbf16> to vector<16x128xbf16>
    %203 = vector.shape_cast %200 : vector<16x128xbf16> to vector<1x16x128xbf16>
    tpu.vector_store %arg13[%c4_65, %c0_66, %c0_67], %203 {strides = array<i32>} : memref<8x16x128xbf16, #tpu.memory_space<vmem>>, vector<1x16x128xbf16>,
    %c5 = arith.constant 5 : index
    %c0_68 = arith.constant 0 : index
    %c0_69 = arith.constant 0 : index
    %204 = vector.load %arg14[%c5, %c0_68, %c0_69] : memref<8x16x512xf32, #tpu.memory_space<vmem>>, vector<1x16x512xf32>
    %205 = vector.shape_cast %204 : vector<1x16x512xf32> to vector<16x512xf32>
    %cst_70 = arith.constant dense<0.000000e+00> : vector<16x512xf32>
    %206 = tpu.matmul %200, %29, %cst_70 {dimension_numbers = #tpu.dot_dimension_numbers<[1], [0], [0], [1], [0, 0, 1, 1], [], []>} : vector<16x128xbf16>, vector<128x512xbf16>, vector<16x512xf32> -> vector<16x512xf32>
    %207 = arith.addf %205, %206 : vector<16x512xf32>
    %208 = vector.extract_strided_slice %207 {offsets = [0, 0], sizes = [16, 128], strides = [1, 1]} : vector<16x512xf32> to vector<16x128xf32>
    %209 = arith.negf %208 : vector<16x128xf32>
    %210 = math.exp %209 : vector<16x128xf32>
    %cst_71 = arith.constant 1.000000e+00 : f32
    %211 = vector.broadcast %cst_71 : f32 to vector<16x128xf32>
    %212 = arith.addf %211, %210 : vector<16x128xf32>
    %213 = arith.divf %211, %212 : vector<16x128xf32>
    %214 = vector.extract_strided_slice %207 {offsets = [0, 128], sizes = [16, 128], strides = [1, 1]} : vector<16x512xf32> to vector<16x128xf32>
    %215 = arith.negf %214 : vector<16x128xf32>
    %216 = math.exp %215 : vector<16x128xf32>
    %cst_72 = arith.constant 1.000000e+00 : f32
    %217 = vector.broadcast %cst_72 : f32 to vector<16x128xf32>
    %218 = arith.addf %217, %216 : vector<16x128xf32>
    %219 = arith.divf %217, %218 : vector<16x128xf32>
    %220 = vector.extract_strided_slice %207 {offsets = [0, 256], sizes = [16, 128], strides = [1, 1]} : vector<16x512xf32> to vector<16x128xf32>
    %221 = math.tanh %220 : vector<16x128xf32>
    %222 = vector.extract_strided_slice %207 {offsets = [0, 384], sizes = [16, 128], strides = [1, 1]} : vector<16x512xf32> to vector<16x128xf32>
    %223 = arith.negf %222 : vector<16x128xf32>
    %224 = math.exp %223 : vector<16x128xf32>
    %cst_73 = arith.constant 1.000000e+00 : f32
    %225 = vector.broadcast %cst_73 : f32 to vector<16x128xf32>
    %226 = arith.addf %225, %224 : vector<16x128xf32>
    %227 = arith.divf %225, %226 : vector<16x128xf32>
    %228 = arith.mulf %219, %197 : vector<16x128xf32>
    %229 = arith.mulf %213, %221 : vector<16x128xf32>
    %230 = arith.addf %228, %229 : vector<16x128xf32>
    %231 = math.tanh %230 : vector<16x128xf32>
    %232 = arith.mulf %227, %231 : vector<16x128xf32>
    %233 = arith.truncf %232 : vector<16x128xf32> to vector<16x128xbf16>
    %c5_74 = arith.constant 5 : index
    %c0_75 = arith.constant 0 : index
    %c0_76 = arith.constant 0 : index
    %234 = vector.load %arg13[%c5_74, %c0_75, %c0_76] : memref<8x16x128xbf16, #tpu.memory_space<vmem>>, vector<1x16x128xbf16>
    %235 = vector.shape_cast %234 : vector<1x16x128xbf16> to vector<16x128xbf16>
    %236 = vector.shape_cast %233 : vector<16x128xbf16> to vector<1x16x128xbf16>
    tpu.vector_store %arg13[%c5_74, %c0_75, %c0_76], %236 {strides = array<i32>} : memref<8x16x128xbf16, #tpu.memory_space<vmem>>, vector<1x16x128xbf16>,
    %c6 = arith.constant 6 : index
    %c0_77 = arith.constant 0 : index
    %c0_78 = arith.constant 0 : index
    %237 = vector.load %arg14[%c6, %c0_77, %c0_78] : memref<8x16x512xf32, #tpu.memory_space<vmem>>, vector<1x16x512xf32>
    %238 = vector.shape_cast %237 : vector<1x16x512xf32> to vector<16x512xf32>
    %cst_79 = arith.constant dense<0.000000e+00> : vector<16x512xf32>
    %239 = tpu.matmul %233, %29, %cst_79 {dimension_numbers = #tpu.dot_dimension_numbers<[1], [0], [0], [1], [0, 0, 1, 1], [], []>} : vector<16x128xbf16>, vector<128x512xbf16>, vector<16x512xf32> -> vector<16x512xf32>
    %240 = arith.addf %238, %239 : vector<16x512xf32>
    %241 = vector.extract_strided_slice %240 {offsets = [0, 0], sizes = [16, 128], strides = [1, 1]} : vector<16x512xf32> to vector<16x128xf32>
    %242 = arith.negf %241 : vector<16x128xf32>
    %243 = math.exp %242 : vector<16x128xf32>
    %cst_80 = arith.constant 1.000000e+00 : f32
    %244 = vector.broadcast %cst_80 : f32 to vector<16x128xf32>
    %245 = arith.addf %244, %243 : vector<16x128xf32>
    %246 = arith.divf %244, %245 : vector<16x128xf32>
    %247 = vector.extract_strided_slice %240 {offsets = [0, 128], sizes = [16, 128], strides = [1, 1]} : vector<16x512xf32> to vector<16x128xf32>
    %248 = arith.negf %247 : vector<16x128xf32>
    %249 = math.exp %248 : vector<16x128xf32>
    %cst_81 = arith.constant 1.000000e+00 : f32
    %250 = vector.broadcast %cst_81 : f32 to vector<16x128xf32>
    %251 = arith.addf %250, %249 : vector<16x128xf32>
    %252 = arith.divf %250, %251 : vector<16x128xf32>
    %253 = vector.extract_strided_slice %240 {offsets = [0, 256], sizes = [16, 128], strides = [1, 1]} : vector<16x512xf32> to vector<16x128xf32>
    %254 = math.tanh %253 : vector<16x128xf32>
    %255 = vector.extract_strided_slice %240 {offsets = [0, 384], sizes = [16, 128], strides = [1, 1]} : vector<16x512xf32> to vector<16x128xf32>
    %256 = arith.negf %255 : vector<16x128xf32>
    %257 = math.exp %256 : vector<16x128xf32>
    %cst_82 = arith.constant 1.000000e+00 : f32
    %258 = vector.broadcast %cst_82 : f32 to vector<16x128xf32>
    %259 = arith.addf %258, %257 : vector<16x128xf32>
    %260 = arith.divf %258, %259 : vector<16x128xf32>
    %261 = arith.mulf %252, %230 : vector<16x128xf32>
    %262 = arith.mulf %246, %254 : vector<16x128xf32>
    %263 = arith.addf %261, %262 : vector<16x128xf32>
    %264 = math.tanh %263 : vector<16x128xf32>
    %265 = arith.mulf %260, %264 : vector<16x128xf32>
    %266 = arith.truncf %265 : vector<16x128xf32> to vector<16x128xbf16>
    %c6_83 = arith.constant 6 : index
    %c0_84 = arith.constant 0 : index
    %c0_85 = arith.constant 0 : index
    %267 = vector.load %arg13[%c6_83, %c0_84, %c0_85] : memref<8x16x128xbf16, #tpu.memory_space<vmem>>, vector<1x16x128xbf16>
    %268 = vector.shape_cast %267 : vector<1x16x128xbf16> to vector<16x128xbf16>
    %269 = vector.shape_cast %266 : vector<16x128xbf16> to vector<1x16x128xbf16>
    tpu.vector_store %arg13[%c6_83, %c0_84, %c0_85], %269 {strides = array<i32>} : memref<8x16x128xbf16, #tpu.memory_space<vmem>>, vector<1x16x128xbf16>,
    %c7 = arith.constant 7 : index
    %c0_86 = arith.constant 0 : index
    %c0_87 = arith.constant 0 : index
    %270 = vector.load %arg14[%c7, %c0_86, %c0_87] : memref<8x16x512xf32, #tpu.memory_space<vmem>>, vector<1x16x512xf32>
    %271 = vector.shape_cast %270 : vector<1x16x512xf32> to vector<16x512xf32>
    %cst_88 = arith.constant dense<0.000000e+00> : vector<16x512xf32>
    %272 = tpu.matmul %266, %29, %cst_88 {dimension_numbers = #tpu.dot_dimension_numbers<[1], [0], [0], [1], [0, 0, 1, 1], [], []>} : vector<16x128xbf16>, vector<128x512xbf16>, vector<16x512xf32> -> vector<16x512xf32>
    %273 = arith.addf %271, %272 : vector<16x512xf32>
    %274 = vector.extract_strided_slice %273 {offsets = [0, 0], sizes = [16, 128], strides = [1, 1]} : vector<16x512xf32> to vector<16x128xf32>
    %275 = arith.negf %274 : vector<16x128xf32>
    %276 = math.exp %275 : vector<16x128xf32>
    %cst_89 = arith.constant 1.000000e+00 : f32
    %277 = vector.broadcast %cst_89 : f32 to vector<16x128xf32>
    %278 = arith.addf %277, %276 : vector<16x128xf32>
    %279 = arith.divf %277, %278 : vector<16x128xf32>
    %280 = vector.extract_strided_slice %273 {offsets = [0, 128], sizes = [16, 128], strides = [1, 1]} : vector<16x512xf32> to vector<16x128xf32>
    %281 = arith.negf %280 : vector<16x128xf32>
    %282 = math.exp %281 : vector<16x128xf32>
    %cst_90 = arith.constant 1.000000e+00 : f32
    %283 = vector.broadcast %cst_90 : f32 to vector<16x128xf32>
    %284 = arith.addf %283, %282 : vector<16x128xf32>
    %285 = arith.divf %283, %284 : vector<16x128xf32>
    %286 = vector.extract_strided_slice %273 {offsets = [0, 256], sizes = [16, 128], strides = [1, 1]} : vector<16x512xf32> to vector<16x128xf32>
    %287 = math.tanh %286 : vector<16x128xf32>
    %288 = vector.extract_strided_slice %273 {offsets = [0, 384], sizes = [16, 128], strides = [1, 1]} : vector<16x512xf32> to vector<16x128xf32>
    %289 = arith.negf %288 : vector<16x128xf32>
    %290 = math.exp %289 : vector<16x128xf32>
    %cst_91 = arith.constant 1.000000e+00 : f32
    %291 = vector.broadcast %cst_91 : f32 to vector<16x128xf32>
    %292 = arith.addf %291, %290 : vector<16x128xf32>
    %293 = arith.divf %291, %292 : vector<16x128xf32>
    %294 = arith.mulf %285, %263 : vector<16x128xf32>
    %295 = arith.mulf %279, %287 : vector<16x128xf32>
    %296 = arith.addf %294, %295 : vector<16x128xf32>
    %297 = math.tanh %296 : vector<16x128xf32>
    %298 = arith.mulf %293, %297 : vector<16x128xf32>
    %299 = arith.truncf %298 : vector<16x128xf32> to vector<16x128xbf16>
    %c7_92 = arith.constant 7 : index
    %c0_93 = arith.constant 0 : index
    %c0_94 = arith.constant 0 : index
    %300 = vector.load %arg13[%c7_92, %c0_93, %c0_94] : memref<8x16x128xbf16, #tpu.memory_space<vmem>>, vector<1x16x128xbf16>
    %301 = vector.shape_cast %300 : vector<1x16x128xbf16> to vector<16x128xbf16>
    %302 = vector.shape_cast %299 : vector<16x128xbf16> to vector<1x16x128xbf16>
    tpu.vector_store %arg13[%c7_92, %c0_93, %c0_94], %302 {strides = array<i32>} : memref<8x16x128xbf16, #tpu.memory_space<vmem>>, vector<1x16x128xbf16>,
    %c0_95 = arith.constant 0 : index
    %c0_96 = arith.constant 0 : index
    %303 = vector.load %arg7[%c0_95, %c0_96] : memref<128x512xbf16, #tpu.memory_space<vmem>>, vector<128x512xbf16>
    %c0_97 = arith.constant 0 : index
    %c0_98 = arith.constant 0 : index
    %304 = vector.load %arg8[%c0_97, %c0_98] : memref<128x512xbf16, #tpu.memory_space<vmem>>, vector<128x512xbf16>
    %c0_99 = arith.constant 0 : index
    %c0_100 = arith.constant 0 : index
    %305 = vector.load %arg9[%c0_99, %c0_100] : memref<1x512xf32, #tpu.memory_space<vmem>>, vector<1x512xf32>
    %cst_101 = arith.constant 0.000000e+00 : bf16
    %306 = vector.broadcast %cst_101 : bf16 to vector<16x128xbf16>
    %cst_102 = arith.constant 0.000000e+00 : f32
    %307 = vector.broadcast %cst_102 : f32 to vector<16x128xf32>
    %c0_103 = arith.constant 0 : index
    %c0_104 = arith.constant 0 : index
    %c0_105 = arith.constant 0 : index
    %308 = vector.load %arg13[%c0_103, %c0_104, %c0_105] : memref<8x16x128xbf16, #tpu.memory_space<vmem>>, vector<8x16x128xbf16>
    %309 = vector.shape_cast %308 : vector<8x16x128xbf16> to vector<128x128xbf16>
    %cst_106 = arith.constant dense<0.000000e+00> : vector<128x512xf32>
    %310 = tpu.matmul %309, %303, %cst_106 {dimension_numbers = #tpu.dot_dimension_numbers<[1], [0], [0], [1], [0, 0, 1, 1], [], []>} : vector<128x128xbf16>, vector<128x512xbf16>, vector<128x512xf32> -> vector<128x512xf32>
    %311 = vector.broadcast %305 : vector<1x512xf32> to vector<128x512xf32>
    %312 = arith.addf %310, %311 : vector<128x512xf32>
    %313 = vector.shape_cast %312 : vector<128x512xf32> to vector<8x16x512xf32>
    %c0_107 = arith.constant 0 : index
    %c0_108 = arith.constant 0 : index
    %c0_109 = arith.constant 0 : index
    %314 = vector.load %arg14[%c0_107, %c0_108, %c0_109] : memref<8x16x512xf32, #tpu.memory_space<vmem>>, vector<8x16x512xf32>
    tpu.vector_store %arg14[%c0_107, %c0_108, %c0_109], %313 {strides = array<i32>} : memref<8x16x512xf32, #tpu.memory_space<vmem>>, vector<8x16x512xf32>,
    %c0_110 = arith.constant 0 : index
    %c0_111 = arith.constant 0 : index
    %c0_112 = arith.constant 0 : index
    %315 = vector.load %arg14[%c0_110, %c0_111, %c0_112] : memref<8x16x512xf32, #tpu.memory_space<vmem>>, vector<1x16x512xf32>
    %316 = vector.shape_cast %315 : vector<1x16x512xf32> to vector<16x512xf32>
    %cst_113 = arith.constant dense<0.000000e+00> : vector<16x512xf32>
    %317 = tpu.matmul %306, %304, %cst_113 {dimension_numbers = #tpu.dot_dimension_numbers<[1], [0], [0], [1], [0, 0, 1, 1], [], []>} : vector<16x128xbf16>, vector<128x512xbf16>, vector<16x512xf32> -> vector<16x512xf32>
    %318 = arith.addf %316, %317 : vector<16x512xf32>
    %319 = vector.extract_strided_slice %318 {offsets = [0, 0], sizes = [16, 128], strides = [1, 1]} : vector<16x512xf32> to vector<16x128xf32>
    %320 = arith.negf %319 : vector<16x128xf32>
    %321 = math.exp %320 : vector<16x128xf32>
    %cst_114 = arith.constant 1.000000e+00 : f32
    %322 = vector.broadcast %cst_114 : f32 to vector<16x128xf32>
    %323 = arith.addf %322, %321 : vector<16x128xf32>
    %324 = arith.divf %322, %323 : vector<16x128xf32>
    %325 = vector.extract_strided_slice %318 {offsets = [0, 128], sizes = [16, 128], strides = [1, 1]} : vector<16x512xf32> to vector<16x128xf32>
    %326 = arith.negf %325 : vector<16x128xf32>
    %327 = math.exp %326 : vector<16x128xf32>
    %cst_115 = arith.constant 1.000000e+00 : f32
    %328 = vector.broadcast %cst_115 : f32 to vector<16x128xf32>
    %329 = arith.addf %328, %327 : vector<16x128xf32>
    %330 = arith.divf %328, %329 : vector<16x128xf32>
    %331 = vector.extract_strided_slice %318 {offsets = [0, 256], sizes = [16, 128], strides = [1, 1]} : vector<16x512xf32> to vector<16x128xf32>
    %332 = math.tanh %331 : vector<16x128xf32>
    %333 = vector.extract_strided_slice %318 {offsets = [0, 384], sizes = [16, 128], strides = [1, 1]} : vector<16x512xf32> to vector<16x128xf32>
    %334 = arith.negf %333 : vector<16x128xf32>
    %335 = math.exp %334 : vector<16x128xf32>
    %cst_116 = arith.constant 1.000000e+00 : f32
    %336 = vector.broadcast %cst_116 : f32 to vector<16x128xf32>
    %337 = arith.addf %336, %335 : vector<16x128xf32>
    %338 = arith.divf %336, %337 : vector<16x128xf32>
    %339 = arith.mulf %330, %307 : vector<16x128xf32>
    %340 = arith.mulf %324, %332 : vector<16x128xf32>
    %341 = arith.addf %339, %340 : vector<16x128xf32>
    %342 = math.tanh %341 : vector<16x128xf32>
    %343 = arith.mulf %338, %342 : vector<16x128xf32>
    %344 = arith.truncf %343 : vector<16x128xf32> to vector<16x128xbf16>
    %c0_117 = arith.constant 0 : index
    %c0_118 = arith.constant 0 : index
    %c0_119 = arith.constant 0 : index
    %345 = vector.load %arg13[%c0_117, %c0_118, %c0_119] : memref<8x16x128xbf16, #tpu.memory_space<vmem>>, vector<1x16x128xbf16>
    %346 = vector.shape_cast %345 : vector<1x16x128xbf16> to vector<16x128xbf16>
    %347 = vector.shape_cast %344 : vector<16x128xbf16> to vector<1x16x128xbf16>
    tpu.vector_store %arg13[%c0_117, %c0_118, %c0_119], %347 {strides = array<i32>} : memref<8x16x128xbf16, #tpu.memory_space<vmem>>, vector<1x16x128xbf16>,
    %c1_120 = arith.constant 1 : index
    %c0_121 = arith.constant 0 : index
    %c0_122 = arith.constant 0 : index
    %348 = vector.load %arg14[%c1_120, %c0_121, %c0_122] : memref<8x16x512xf32, #tpu.memory_space<vmem>>, vector<1x16x512xf32>
    %349 = vector.shape_cast %348 : vector<1x16x512xf32> to vector<16x512xf32>
    %cst_123 = arith.constant dense<0.000000e+00> : vector<16x512xf32>
    %350 = tpu.matmul %344, %304, %cst_123 {dimension_numbers = #tpu.dot_dimension_numbers<[1], [0], [0], [1], [0, 0, 1, 1], [], []>} : vector<16x128xbf16>, vector<128x512xbf16>, vector<16x512xf32> -> vector<16x512xf32>
    %351 = arith.addf %349, %350 : vector<16x512xf32>
    %352 = vector.extract_strided_slice %351 {offsets = [0, 0], sizes = [16, 128], strides = [1, 1]} : vector<16x512xf32> to vector<16x128xf32>
    %353 = arith.negf %352 : vector<16x128xf32>
    %354 = math.exp %353 : vector<16x128xf32>
    %cst_124 = arith.constant 1.000000e+00 : f32
    %355 = vector.broadcast %cst_124 : f32 to vector<16x128xf32>
    %356 = arith.addf %355, %354 : vector<16x128xf32>
    %357 = arith.divf %355, %356 : vector<16x128xf32>
    %358 = vector.extract_strided_slice %351 {offsets = [0, 128], sizes = [16, 128], strides = [1, 1]} : vector<16x512xf32> to vector<16x128xf32>
    %359 = arith.negf %358 : vector<16x128xf32>
    %360 = math.exp %359 : vector<16x128xf32>
    %cst_125 = arith.constant 1.000000e+00 : f32
    %361 = vector.broadcast %cst_125 : f32 to vector<16x128xf32>
    %362 = arith.addf %361, %360 : vector<16x128xf32>
    %363 = arith.divf %361, %362 : vector<16x128xf32>
    %364 = vector.extract_strided_slice %351 {offsets = [0, 256], sizes = [16, 128], strides = [1, 1]} : vector<16x512xf32> to vector<16x128xf32>
    %365 = math.tanh %364 : vector<16x128xf32>
    %366 = vector.extract_strided_slice %351 {offsets = [0, 384], sizes = [16, 128], strides = [1, 1]} : vector<16x512xf32> to vector<16x128xf32>
    %367 = arith.negf %366 : vector<16x128xf32>
    %368 = math.exp %367 : vector<16x128xf32>
    %cst_126 = arith.constant 1.000000e+00 : f32
    %369 = vector.broadcast %cst_126 : f32 to vector<16x128xf32>
    %370 = arith.addf %369, %368 : vector<16x128xf32>
    %371 = arith.divf %369, %370 : vector<16x128xf32>
    %372 = arith.mulf %363, %341 : vector<16x128xf32>
    %373 = arith.mulf %357, %365 : vector<16x128xf32>
    %374 = arith.addf %372, %373 : vector<16x128xf32>
    %375 = math.tanh %374 : vector<16x128xf32>
    %376 = arith.mulf %371, %375 : vector<16x128xf32>
    %377 = arith.truncf %376 : vector<16x128xf32> to vector<16x128xbf16>
    %c1_127 = arith.constant 1 : index
    %c0_128 = arith.constant 0 : index
    %c0_129 = arith.constant 0 : index
    %378 = vector.load %arg13[%c1_127, %c0_128, %c0_129] : memref<8x16x128xbf16, #tpu.memory_space<vmem>>, vector<1x16x128xbf16>
    %379 = vector.shape_cast %378 : vector<1x16x128xbf16> to vector<16x128xbf16>
    %380 = vector.shape_cast %377 : vector<16x128xbf16> to vector<1x16x128xbf16>
    tpu.vector_store %arg13[%c1_127, %c0_128, %c0_129], %380 {strides = array<i32>} : memref<8x16x128xbf16, #tpu.memory_space<vmem>>, vector<1x16x128xbf16>,
    %c2_130 = arith.constant 2 : index
    %c0_131 = arith.constant 0 : index
    %c0_132 = arith.constant 0 : index
    %381 = vector.load %arg14[%c2_130, %c0_131, %c0_132] : memref<8x16x512xf32, #tpu.memory_space<vmem>>, vector<1x16x512xf32>
    %382 = vector.shape_cast %381 : vector<1x16x512xf32> to vector<16x512xf32>
    %cst_133 = arith.constant dense<0.000000e+00> : vector<16x512xf32>
    %383 = tpu.matmul %377, %304, %cst_133 {dimension_numbers = #tpu.dot_dimension_numbers<[1], [0], [0], [1], [0, 0, 1, 1], [], []>} : vector<16x128xbf16>, vector<128x512xbf16>, vector<16x512xf32> -> vector<16x512xf32>
    %384 = arith.addf %382, %383 : vector<16x512xf32>
    %385 = vector.extract_strided_slice %384 {offsets = [0, 0], sizes = [16, 128], strides = [1, 1]} : vector<16x512xf32> to vector<16x128xf32>
    %386 = arith.negf %385 : vector<16x128xf32>
    %387 = math.exp %386 : vector<16x128xf32>
    %cst_134 = arith.constant 1.000000e+00 : f32
    %388 = vector.broadcast %cst_134 : f32 to vector<16x128xf32>
    %389 = arith.addf %388, %387 : vector<16x128xf32>
    %390 = arith.divf %388, %389 : vector<16x128xf32>
    %391 = vector.extract_strided_slice %384 {offsets = [0, 128], sizes = [16, 128], strides = [1, 1]} : vector<16x512xf32> to vector<16x128xf32>
    %392 = arith.negf %391 : vector<16x128xf32>
    %393 = math.exp %392 : vector<16x128xf32>
    %cst_135 = arith.constant 1.000000e+00 : f32
    %394 = vector.broadcast %cst_135 : f32 to vector<16x128xf32>
    %395 = arith.addf %394, %393 : vector<16x128xf32>
    %396 = arith.divf %394, %395 : vector<16x128xf32>
    %397 = vector.extract_strided_slice %384 {offsets = [0, 256], sizes = [16, 128], strides = [1, 1]} : vector<16x512xf32> to vector<16x128xf32>
    %398 = math.tanh %397 : vector<16x128xf32>
    %399 = vector.extract_strided_slice %384 {offsets = [0, 384], sizes = [16, 128], strides = [1, 1]} : vector<16x512xf32> to vector<16x128xf32>
    %400 = arith.negf %399 : vector<16x128xf32>
    %401 = math.exp %400 : vector<16x128xf32>
    %cst_136 = arith.constant 1.000000e+00 : f32
    %402 = vector.broadcast %cst_136 : f32 to vector<16x128xf32>
    %403 = arith.addf %402, %401 : vector<16x128xf32>
    %404 = arith.divf %402, %403 : vector<16x128xf32>
    %405 = arith.mulf %396, %374 : vector<16x128xf32>
    %406 = arith.mulf %390, %398 : vector<16x128xf32>
    %407 = arith.addf %405, %406 : vector<16x128xf32>
    %408 = math.tanh %407 : vector<16x128xf32>
    %409 = arith.mulf %404, %408 : vector<16x128xf32>
    %410 = arith.truncf %409 : vector<16x128xf32> to vector<16x128xbf16>
    %c2_137 = arith.constant 2 : index
    %c0_138 = arith.constant 0 : index
    %c0_139 = arith.constant 0 : index
    %411 = vector.load %arg13[%c2_137, %c0_138, %c0_139] : memref<8x16x128xbf16, #tpu.memory_space<vmem>>, vector<1x16x128xbf16>
    %412 = vector.shape_cast %411 : vector<1x16x128xbf16> to vector<16x128xbf16>
    %413 = vector.shape_cast %410 : vector<16x128xbf16> to vector<1x16x128xbf16>
    tpu.vector_store %arg13[%c2_137, %c0_138, %c0_139], %413 {strides = array<i32>} : memref<8x16x128xbf16, #tpu.memory_space<vmem>>, vector<1x16x128xbf16>,
    %c3_140 = arith.constant 3 : index
    %c0_141 = arith.constant 0 : index
    %c0_142 = arith.constant 0 : index
    %414 = vector.load %arg14[%c3_140, %c0_141, %c0_142] : memref<8x16x512xf32, #tpu.memory_space<vmem>>, vector<1x16x512xf32>
    %415 = vector.shape_cast %414 : vector<1x16x512xf32> to vector<16x512xf32>
    %cst_143 = arith.constant dense<0.000000e+00> : vector<16x512xf32>
    %416 = tpu.matmul %410, %304, %cst_143 {dimension_numbers = #tpu.dot_dimension_numbers<[1], [0], [0], [1], [0, 0, 1, 1], [], []>} : vector<16x128xbf16>, vector<128x512xbf16>, vector<16x512xf32> -> vector<16x512xf32>
    %417 = arith.addf %415, %416 : vector<16x512xf32>
    %418 = vector.extract_strided_slice %417 {offsets = [0, 0], sizes = [16, 128], strides = [1, 1]} : vector<16x512xf32> to vector<16x128xf32>
    %419 = arith.negf %418 : vector<16x128xf32>
    %420 = math.exp %419 : vector<16x128xf32>
    %cst_144 = arith.constant 1.000000e+00 : f32
    %421 = vector.broadcast %cst_144 : f32 to vector<16x128xf32>
    %422 = arith.addf %421, %420 : vector<16x128xf32>
    %423 = arith.divf %421, %422 : vector<16x128xf32>
    %424 = vector.extract_strided_slice %417 {offsets = [0, 128], sizes = [16, 128], strides = [1, 1]} : vector<16x512xf32> to vector<16x128xf32>
    %425 = arith.negf %424 : vector<16x128xf32>
    %426 = math.exp %425 : vector<16x128xf32>
    %cst_145 = arith.constant 1.000000e+00 : f32
    %427 = vector.broadcast %cst_145 : f32 to vector<16x128xf32>
    %428 = arith.addf %427, %426 : vector<16x128xf32>
    %429 = arith.divf %427, %428 : vector<16x128xf32>
    %430 = vector.extract_strided_slice %417 {offsets = [0, 256], sizes = [16, 128], strides = [1, 1]} : vector<16x512xf32> to vector<16x128xf32>
    %431 = math.tanh %430 : vector<16x128xf32>
    %432 = vector.extract_strided_slice %417 {offsets = [0, 384], sizes = [16, 128], strides = [1, 1]} : vector<16x512xf32> to vector<16x128xf32>
    %433 = arith.negf %432 : vector<16x128xf32>
    %434 = math.exp %433 : vector<16x128xf32>
    %cst_146 = arith.constant 1.000000e+00 : f32
    %435 = vector.broadcast %cst_146 : f32 to vector<16x128xf32>
    %436 = arith.addf %435, %434 : vector<16x128xf32>
    %437 = arith.divf %435, %436 : vector<16x128xf32>
    %438 = arith.mulf %429, %407 : vector<16x128xf32>
    %439 = arith.mulf %423, %431 : vector<16x128xf32>
    %440 = arith.addf %438, %439 : vector<16x128xf32>
    %441 = math.tanh %440 : vector<16x128xf32>
    %442 = arith.mulf %437, %441 : vector<16x128xf32>
    %443 = arith.truncf %442 : vector<16x128xf32> to vector<16x128xbf16>
    %c3_147 = arith.constant 3 : index
    %c0_148 = arith.constant 0 : index
    %c0_149 = arith.constant 0 : index
    %444 = vector.load %arg13[%c3_147, %c0_148, %c0_149] : memref<8x16x128xbf16, #tpu.memory_space<vmem>>, vector<1x16x128xbf16>
    %445 = vector.shape_cast %444 : vector<1x16x128xbf16> to vector<16x128xbf16>
    %446 = vector.shape_cast %443 : vector<16x128xbf16> to vector<1x16x128xbf16>
    tpu.vector_store %arg13[%c3_147, %c0_148, %c0_149], %446 {strides = array<i32>} : memref<8x16x128xbf16, #tpu.memory_space<vmem>>, vector<1x16x128xbf16>,
    %c4_150 = arith.constant 4 : index
    %c0_151 = arith.constant 0 : index
    %c0_152 = arith.constant 0 : index
    %447 = vector.load %arg14[%c4_150, %c0_151, %c0_152] : memref<8x16x512xf32, #tpu.memory_space<vmem>>, vector<1x16x512xf32>
    %448 = vector.shape_cast %447 : vector<1x16x512xf32> to vector<16x512xf32>
    %cst_153 = arith.constant dense<0.000000e+00> : vector<16x512xf32>
    %449 = tpu.matmul %443, %304, %cst_153 {dimension_numbers = #tpu.dot_dimension_numbers<[1], [0], [0], [1], [0, 0, 1, 1], [], []>} : vector<16x128xbf16>, vector<128x512xbf16>, vector<16x512xf32> -> vector<16x512xf32>
    %450 = arith.addf %448, %449 : vector<16x512xf32>
    %451 = vector.extract_strided_slice %450 {offsets = [0, 0], sizes = [16, 128], strides = [1, 1]} : vector<16x512xf32> to vector<16x128xf32>
    %452 = arith.negf %451 : vector<16x128xf32>
    %453 = math.exp %452 : vector<16x128xf32>
    %cst_154 = arith.constant 1.000000e+00 : f32
    %454 = vector.broadcast %cst_154 : f32 to vector<16x128xf32>
    %455 = arith.addf %454, %453 : vector<16x128xf32>
    %456 = arith.divf %454, %455 : vector<16x128xf32>
    %457 = vector.extract_strided_slice %450 {offsets = [0, 128], sizes = [16, 128], strides = [1, 1]} : vector<16x512xf32> to vector<16x128xf32>
    %458 = arith.negf %457 : vector<16x128xf32>
    %459 = math.exp %458 : vector<16x128xf32>
    %cst_155 = arith.constant 1.000000e+00 : f32
    %460 = vector.broadcast %cst_155 : f32 to vector<16x128xf32>
    %461 = arith.addf %460, %459 : vector<16x128xf32>
    %462 = arith.divf %460, %461 : vector<16x128xf32>
    %463 = vector.extract_strided_slice %450 {offsets = [0, 256], sizes = [16, 128], strides = [1, 1]} : vector<16x512xf32> to vector<16x128xf32>
    %464 = math.tanh %463 : vector<16x128xf32>
    %465 = vector.extract_strided_slice %450 {offsets = [0, 384], sizes = [16, 128], strides = [1, 1]} : vector<16x512xf32> to vector<16x128xf32>
    %466 = arith.negf %465 : vector<16x128xf32>
    %467 = math.exp %466 : vector<16x128xf32>
    %cst_156 = arith.constant 1.000000e+00 : f32
    %468 = vector.broadcast %cst_156 : f32 to vector<16x128xf32>
    %469 = arith.addf %468, %467 : vector<16x128xf32>
    %470 = arith.divf %468, %469 : vector<16x128xf32>
    %471 = arith.mulf %462, %440 : vector<16x128xf32>
    %472 = arith.mulf %456, %464 : vector<16x128xf32>
    %473 = arith.addf %471, %472 : vector<16x128xf32>
    %474 = math.tanh %473 : vector<16x128xf32>
    %475 = arith.mulf %470, %474 : vector<16x128xf32>
    %476 = arith.truncf %475 : vector<16x128xf32> to vector<16x128xbf16>
    %c4_157 = arith.constant 4 : index
    %c0_158 = arith.constant 0 : index
    %c0_159 = arith.constant 0 : index
    %477 = vector.load %arg13[%c4_157, %c0_158, %c0_159] : memref<8x16x128xbf16, #tpu.memory_space<vmem>>, vector<1x16x128xbf16>
    %478 = vector.shape_cast %477 : vector<1x16x128xbf16> to vector<16x128xbf16>
    %479 = vector.shape_cast %476 : vector<16x128xbf16> to vector<1x16x128xbf16>
    tpu.vector_store %arg13[%c4_157, %c0_158, %c0_159], %479 {strides = array<i32>} : memref<8x16x128xbf16, #tpu.memory_space<vmem>>, vector<1x16x128xbf16>,
    %c5_160 = arith.constant 5 : index
    %c0_161 = arith.constant 0 : index
    %c0_162 = arith.constant 0 : index
    %480 = vector.load %arg14[%c5_160, %c0_161, %c0_162] : memref<8x16x512xf32, #tpu.memory_space<vmem>>, vector<1x16x512xf32>
    %481 = vector.shape_cast %480 : vector<1x16x512xf32> to vector<16x512xf32>
    %cst_163 = arith.constant dense<0.000000e+00> : vector<16x512xf32>
    %482 = tpu.matmul %476, %304, %cst_163 {dimension_numbers = #tpu.dot_dimension_numbers<[1], [0], [0], [1], [0, 0, 1, 1], [], []>} : vector<16x128xbf16>, vector<128x512xbf16>, vector<16x512xf32> -> vector<16x512xf32>
    %483 = arith.addf %481, %482 : vector<16x512xf32>
    %484 = vector.extract_strided_slice %483 {offsets = [0, 0], sizes = [16, 128], strides = [1, 1]} : vector<16x512xf32> to vector<16x128xf32>
    %485 = arith.negf %484 : vector<16x128xf32>
    %486 = math.exp %485 : vector<16x128xf32>
    %cst_164 = arith.constant 1.000000e+00 : f32
    %487 = vector.broadcast %cst_164 : f32 to vector<16x128xf32>
    %488 = arith.addf %487, %486 : vector<16x128xf32>
    %489 = arith.divf %487, %488 : vector<16x128xf32>
    %490 = vector.extract_strided_slice %483 {offsets = [0, 128], sizes = [16, 128], strides = [1, 1]} : vector<16x512xf32> to vector<16x128xf32>
    %491 = arith.negf %490 : vector<16x128xf32>
    %492 = math.exp %491 : vector<16x128xf32>
    %cst_165 = arith.constant 1.000000e+00 : f32
    %493 = vector.broadcast %cst_165 : f32 to vector<16x128xf32>
    %494 = arith.addf %493, %492 : vector<16x128xf32>
    %495 = arith.divf %493, %494 : vector<16x128xf32>
    %496 = vector.extract_strided_slice %483 {offsets = [0, 256], sizes = [16, 128], strides = [1, 1]} : vector<16x512xf32> to vector<16x128xf32>
    %497 = math.tanh %496 : vector<16x128xf32>
    %498 = vector.extract_strided_slice %483 {offsets = [0, 384], sizes = [16, 128], strides = [1, 1]} : vector<16x512xf32> to vector<16x128xf32>
    %499 = arith.negf %498 : vector<16x128xf32>
    %500 = math.exp %499 : vector<16x128xf32>
    %cst_166 = arith.constant 1.000000e+00 : f32
    %501 = vector.broadcast %cst_166 : f32 to vector<16x128xf32>
    %502 = arith.addf %501, %500 : vector<16x128xf32>
    %503 = arith.divf %501, %502 : vector<16x128xf32>
    %504 = arith.mulf %495, %473 : vector<16x128xf32>
    %505 = arith.mulf %489, %497 : vector<16x128xf32>
    %506 = arith.addf %504, %505 : vector<16x128xf32>
    %507 = math.tanh %506 : vector<16x128xf32>
    %508 = arith.mulf %503, %507 : vector<16x128xf32>
    %509 = arith.truncf %508 : vector<16x128xf32> to vector<16x128xbf16>
    %c5_167 = arith.constant 5 : index
    %c0_168 = arith.constant 0 : index
    %c0_169 = arith.constant 0 : index
    %510 = vector.load %arg13[%c5_167, %c0_168, %c0_169] : memref<8x16x128xbf16, #tpu.memory_space<vmem>>, vector<1x16x128xbf16>
    %511 = vector.shape_cast %510 : vector<1x16x128xbf16> to vector<16x128xbf16>
    %512 = vector.shape_cast %509 : vector<16x128xbf16> to vector<1x16x128xbf16>
    tpu.vector_store %arg13[%c5_167, %c0_168, %c0_169], %512 {strides = array<i32>} : memref<8x16x128xbf16, #tpu.memory_space<vmem>>, vector<1x16x128xbf16>,
    %c6_170 = arith.constant 6 : index
    %c0_171 = arith.constant 0 : index
    %c0_172 = arith.constant 0 : index
    %513 = vector.load %arg14[%c6_170, %c0_171, %c0_172] : memref<8x16x512xf32, #tpu.memory_space<vmem>>, vector<1x16x512xf32>
    %514 = vector.shape_cast %513 : vector<1x16x512xf32> to vector<16x512xf32>
    %cst_173 = arith.constant dense<0.000000e+00> : vector<16x512xf32>
    %515 = tpu.matmul %509, %304, %cst_173 {dimension_numbers = #tpu.dot_dimension_numbers<[1], [0], [0], [1], [0, 0, 1, 1], [], []>} : vector<16x128xbf16>, vector<128x512xbf16>, vector<16x512xf32> -> vector<16x512xf32>
    %516 = arith.addf %514, %515 : vector<16x512xf32>
    %517 = vector.extract_strided_slice %516 {offsets = [0, 0], sizes = [16, 128], strides = [1, 1]} : vector<16x512xf32> to vector<16x128xf32>
    %518 = arith.negf %517 : vector<16x128xf32>
    %519 = math.exp %518 : vector<16x128xf32>
    %cst_174 = arith.constant 1.000000e+00 : f32
    %520 = vector.broadcast %cst_174 : f32 to vector<16x128xf32>
    %521 = arith.addf %520, %519 : vector<16x128xf32>
    %522 = arith.divf %520, %521 : vector<16x128xf32>
    %523 = vector.extract_strided_slice %516 {offsets = [0, 128], sizes = [16, 128], strides = [1, 1]} : vector<16x512xf32> to vector<16x128xf32>
    %524 = arith.negf %523 : vector<16x128xf32>
    %525 = math.exp %524 : vector<16x128xf32>
    %cst_175 = arith.constant 1.000000e+00 : f32
    %526 = vector.broadcast %cst_175 : f32 to vector<16x128xf32>
    %527 = arith.addf %526, %525 : vector<16x128xf32>
    %528 = arith.divf %526, %527 : vector<16x128xf32>
    %529 = vector.extract_strided_slice %516 {offsets = [0, 256], sizes = [16, 128], strides = [1, 1]} : vector<16x512xf32> to vector<16x128xf32>
    %530 = math.tanh %529 : vector<16x128xf32>
    %531 = vector.extract_strided_slice %516 {offsets = [0, 384], sizes = [16, 128], strides = [1, 1]} : vector<16x512xf32> to vector<16x128xf32>
    %532 = arith.negf %531 : vector<16x128xf32>
    %533 = math.exp %532 : vector<16x128xf32>
    %cst_176 = arith.constant 1.000000e+00 : f32
    %534 = vector.broadcast %cst_176 : f32 to vector<16x128xf32>
    %535 = arith.addf %534, %533 : vector<16x128xf32>
    %536 = arith.divf %534, %535 : vector<16x128xf32>
    %537 = arith.mulf %528, %506 : vector<16x128xf32>
    %538 = arith.mulf %522, %530 : vector<16x128xf32>
    %539 = arith.addf %537, %538 : vector<16x128xf32>
    %540 = math.tanh %539 : vector<16x128xf32>
    %541 = arith.mulf %536, %540 : vector<16x128xf32>
    %542 = arith.truncf %541 : vector<16x128xf32> to vector<16x128xbf16>
    %c6_177 = arith.constant 6 : index
    %c0_178 = arith.constant 0 : index
    %c0_179 = arith.constant 0 : index
    %543 = vector.load %arg13[%c6_177, %c0_178, %c0_179] : memref<8x16x128xbf16, #tpu.memory_space<vmem>>, vector<1x16x128xbf16>
    %544 = vector.shape_cast %543 : vector<1x16x128xbf16> to vector<16x128xbf16>
    %545 = vector.shape_cast %542 : vector<16x128xbf16> to vector<1x16x128xbf16>
    tpu.vector_store %arg13[%c6_177, %c0_178, %c0_179], %545 {strides = array<i32>} : memref<8x16x128xbf16, #tpu.memory_space<vmem>>, vector<1x16x128xbf16>,
    %c7_180 = arith.constant 7 : index
    %c0_181 = arith.constant 0 : index
    %c0_182 = arith.constant 0 : index
    %546 = vector.load %arg14[%c7_180, %c0_181, %c0_182] : memref<8x16x512xf32, #tpu.memory_space<vmem>>, vector<1x16x512xf32>
    %547 = vector.shape_cast %546 : vector<1x16x512xf32> to vector<16x512xf32>
    %cst_183 = arith.constant dense<0.000000e+00> : vector<16x512xf32>
    %548 = tpu.matmul %542, %304, %cst_183 {dimension_numbers = #tpu.dot_dimension_numbers<[1], [0], [0], [1], [0, 0, 1, 1], [], []>} : vector<16x128xbf16>, vector<128x512xbf16>, vector<16x512xf32> -> vector<16x512xf32>
    %549 = arith.addf %547, %548 : vector<16x512xf32>
    %550 = vector.extract_strided_slice %549 {offsets = [0, 0], sizes = [16, 128], strides = [1, 1]} : vector<16x512xf32> to vector<16x128xf32>
    %551 = arith.negf %550 : vector<16x128xf32>
    %552 = math.exp %551 : vector<16x128xf32>
    %cst_184 = arith.constant 1.000000e+00 : f32
    %553 = vector.broadcast %cst_184 : f32 to vector<16x128xf32>
    %554 = arith.addf %553, %552 : vector<16x128xf32>
    %555 = arith.divf %553, %554 : vector<16x128xf32>
    %556 = vector.extract_strided_slice %549 {offsets = [0, 128], sizes = [16, 128], strides = [1, 1]} : vector<16x512xf32> to vector<16x128xf32>
    %557 = arith.negf %556 : vector<16x128xf32>
    %558 = math.exp %557 : vector<16x128xf32>
    %cst_185 = arith.constant 1.000000e+00 : f32
    %559 = vector.broadcast %cst_185 : f32 to vector<16x128xf32>
    %560 = arith.addf %559, %558 : vector<16x128xf32>
    %561 = arith.divf %559, %560 : vector<16x128xf32>
    %562 = vector.extract_strided_slice %549 {offsets = [0, 256], sizes = [16, 128], strides = [1, 1]} : vector<16x512xf32> to vector<16x128xf32>
    %563 = math.tanh %562 : vector<16x128xf32>
    %564 = vector.extract_strided_slice %549 {offsets = [0, 384], sizes = [16, 128], strides = [1, 1]} : vector<16x512xf32> to vector<16x128xf32>
    %565 = arith.negf %564 : vector<16x128xf32>
    %566 = math.exp %565 : vector<16x128xf32>
    %cst_186 = arith.constant 1.000000e+00 : f32
    %567 = vector.broadcast %cst_186 : f32 to vector<16x128xf32>
    %568 = arith.addf %567, %566 : vector<16x128xf32>
    %569 = arith.divf %567, %568 : vector<16x128xf32>
    %570 = arith.mulf %561, %539 : vector<16x128xf32>
    %571 = arith.mulf %555, %563 : vector<16x128xf32>
    %572 = arith.addf %570, %571 : vector<16x128xf32>
    %573 = math.tanh %572 : vector<16x128xf32>
    %574 = arith.mulf %569, %573 : vector<16x128xf32>
    %575 = arith.truncf %574 : vector<16x128xf32> to vector<16x128xbf16>
    %c7_187 = arith.constant 7 : index
    %c0_188 = arith.constant 0 : index
    %c0_189 = arith.constant 0 : index
    %576 = vector.load %arg13[%c7_187, %c0_188, %c0_189] : memref<8x16x128xbf16, #tpu.memory_space<vmem>>, vector<1x16x128xbf16>
    %577 = vector.shape_cast %576 : vector<1x16x128xbf16> to vector<16x128xbf16>
    %578 = vector.shape_cast %575 : vector<16x128xbf16> to vector<1x16x128xbf16>
    tpu.vector_store %arg13[%c7_187, %c0_188, %c0_189], %578 {strides = array<i32>} : memref<8x16x128xbf16, #tpu.memory_space<vmem>>, vector<1x16x128xbf16>,
    %c0_190 = arith.constant 0 : index
    %c0_191 = arith.constant 0 : index
    %c0_192 = arith.constant 0 : index
    %579 = vector.load %arg13[%c0_190, %c0_191, %c0_192] : memref<8x16x128xbf16, #tpu.memory_space<vmem>>, vector<8x16x128xbf16>
    %580 = vector.shape_cast %579 : vector<8x16x128xbf16> to vector<128x128xbf16>
    %c0_193 = arith.constant 0 : index
    %c0_194 = arith.constant 0 : index
    %581 = vector.load %arg10[%c0_193, %c0_194] : memref<128x128xbf16, #tpu.memory_space<vmem>>, vector<128x128xbf16>
    %cst_195 = arith.constant dense<0.000000e+00> : vector<128x128xf32>
    %582 = tpu.matmul %580, %581, %cst_195 {dimension_numbers = #tpu.dot_dimension_numbers<[1], [0], [0], [1], [0, 0, 1, 1], [], []>} : vector<128x128xbf16>, vector<128x128xbf16>, vector<128x128xf32> -> vector<128x128xf32>
    %c0_196 = arith.constant 0 : index
    %c0_197 = arith.constant 0 : index
    %583 = vector.load %arg11[%c0_196, %c0_197] : memref<1x128xf32, #tpu.memory_space<vmem>>, vector<1x128xf32>
    %584 = vector.broadcast %583 : vector<1x128xf32> to vector<128x128xf32>
    %585 = arith.addf %582, %584 : vector<128x128xf32>
    %586 = vector.shape_cast %585 : vector<128x128xf32> to vector<8x16x128xf32>
    %587 = vector.extract_strided_slice %586 {offsets = [0, 0, 0], sizes = [8, 16, 12], strides = [1, 1, 1]} : vector<8x16x128xf32> to vector<8x16x12xf32>
    %c0_198 = arith.constant 0 : index
    %c0_199 = arith.constant 0 : index
    %c0_200 = arith.constant 0 : index
    %588 = vector.load %arg12[%c0_198, %c0_199, %c0_200] : memref<8x16x12xf32, #tpu.memory_space<vmem>>, vector<8x16x12xf32>
    tpu.vector_store %arg12[%c0_198, %c0_199, %c0_200], %587 {strides = array<i32>} : memref<8x16x12xf32, #tpu.memory_space<vmem>>, vector<8x16x12xf32>,
    return
  }
  func.func @transform_0(%arg0: i32) -> (i32, i32, i32) {
    %c0_i32 = arith.constant 0 : i32
    %c0_i32_0 = arith.constant 0 : i32
    %c0_i32_1 = arith.constant 0 : i32
    return %c0_i32, %arg0, %c0_i32_0 : i32, i32, i32
  }
  func.func @transform_1(%arg0: i32) -> (i32, i32) {
    %c0_i32 = arith.constant 0 : i32
    %c0_i32_0 = arith.constant 0 : i32
    %c0_i32_1 = arith.constant 0 : i32
    return %c0_i32, %c0_i32_0 : i32, i32
  }
  func.func @transform_2(%arg0: i32) -> (i32, i32) {
    %c0_i32 = arith.constant 0 : i32
    %c0_i32_0 = arith.constant 0 : i32
    %c0_i32_1 = arith.constant 0 : i32
    return %c0_i32, %c0_i32_0 : i32, i32
  }
  func.func @transform_3(%arg0: i32) -> (i32, i32) {
    %c0_i32 = arith.constant 0 : i32
    %c0_i32_0 = arith.constant 0 : i32
    %c0_i32_1 = arith.constant 0 : i32
    return %c0_i32, %c0_i32_0 : i32, i32
  }
  func.func @transform_4(%arg0: i32) -> (i32, i32) {
    %c0_i32 = arith.constant 0 : i32
    %c0_i32_0 = arith.constant 0 : i32
    %c0_i32_1 = arith.constant 0 : i32
    return %c0_i32, %c0_i32_0 : i32, i32
  }
  func.func @transform_5(%arg0: i32) -> (i32, i32) {
    %c0_i32 = arith.constant 0 : i32
    %c0_i32_0 = arith.constant 0 : i32
    %c0_i32_1 = arith.constant 0 : i32
    return %c0_i32, %c0_i32_0 : i32, i32
  }
  func.func @transform_6(%arg0: i32) -> (i32, i32) {
    %c0_i32 = arith.constant 0 : i32
    %c0_i32_0 = arith.constant 0 : i32
    %c0_i32_1 = arith.constant 0 : i32
    return %c0_i32, %c0_i32_0 : i32, i32
  }
  func.func @transform_7(%arg0: i32) -> (i32, i32) {
    %c0_i32 = arith.constant 0 : i32
    %c0_i32_0 = arith.constant 0 : i32
    %c0_i32_1 = arith.constant 0 : i32
    return %c0_i32, %c0_i32_0 : i32, i32
  }
  func.func @transform_8(%arg0: i32) -> (i32, i32) {
    %c0_i32 = arith.constant 0 : i32
    %c0_i32_0 = arith.constant 0 : i32
    %c0_i32_1 = arith.constant 0 : i32
    return %c0_i32, %c0_i32_0 : i32, i32
  }
  func.func @transform_9(%arg0: i32) -> (i32, i32) {
    %c0_i32 = arith.constant 0 : i32
    %c0_i32_0 = arith.constant 0 : i32
    %c0_i32_1 = arith.constant 0 : i32
    return %c0_i32, %c0_i32_0 : i32, i32
  }
  func.func @transform_10(%arg0: i32) -> (i32, i32) {
    %c0_i32 = arith.constant 0 : i32
    %c0_i32_0 = arith.constant 0 : i32
    %c0_i32_1 = arith.constant 0 : i32
    return %c0_i32, %c0_i32_0 : i32, i32
  }
  func.func @transform_11(%arg0: i32) -> (i32, i32, i32) {
    %c0_i32 = arith.constant 0 : i32
    %c0_i32_0 = arith.constant 0 : i32
    %c0_i32_1 = arith.constant 0 : i32
    return %c0_i32, %arg0, %c0_i32_0 : i32, i32, i32
  }
}

</mosaic_0001>

<bundles_post_ra>
// kernel: subband_sequence_model_forward.1
= control target key start
LH: loop header
LB: loop body
LE: loop exit
PB: predicated region body
PF: predicated region fallthrough
CT: control target
= control target key end

     0   :  { %16 = vsyncpa [#allocation5], 0  ;;  %s7722_s0 = inlined_call_operand.hbm [shape: f32[8,16,16], index: 0, kind: input, shape index: {}]   ;;  %s7723_s1 = inlined_call_operand.hbm [shape: f32[1,16], index: 1, kind: input, shape index: {}]   ;;  %s7724_s2 = inlined_call_operand.hbm [shape: f32[1,16], index: 2, kind: input, shape index: {}]   ;;  %s7725_s3 = inlined_call_operand.hbm [shape: bf16[16,512], index: 3, kind: input, shape index: {}]   ;;  %s7726_s4 = inlined_call_operand.hbm [shape: bf16[128,512], index: 4, kind: input, shape index: {}]   ;;  %s7727_s5 = inlined_call_operand.hbm [shape: f32[1,512], index: 5, kind: input, shape index: {}]   ;;  %s7728_s6 = inlined_call_operand.hbm [shape: bf16[128,512], index: 6, kind: input, shape index: {}]   ;;  %s7729_s7 = inlined_call_operand.hbm [shape: bf16[128,512], index: 7, kind: input, shape index: {}]   ;;  %s7730_s8 = inlined_call_operand.hbm [shape: f32[1,512], index: 8, kind: input, shape index: {}]   ;;  %s7731_s9 = inlined_call_operand.hbm [shape: bf16[128,128], index: 9, kind: input, shape index: {}]   ;;  %s7732_s10 = inlined_call_operand.hbm [shape: f32[1,128], index: 10, kind: input, shape index: {}]   ;;  %s7733_s11 = inlined_call_operand.hbm [shape: f32[8,16,12], index: 11, kind: output, shape index: {}]  }
   0x1   :  { %17 = vsyncpa [#allocation8], 0 }
   0x2   :  { %18 = vsyncpa [#allocation11], 0 }
   0x3   :  { %19 = vsyncpa [#allocation14], 0 }
   0x4   :  { %20 = vsyncpa [#allocation17], 0 }
   0x5   :  { %21 = vsyncpa [#allocation20], 0 }
   0x6   :  { %22 = vsyncpa [#allocation6], 0  ;;  %s5968_s17 = smov [#allocation7]   ;;  %s5969_s19 = smov [#allocation10]  }
   0x7   :  { %s41_s18 = sshll.u32 %s5968_s17, 4  ;;  %s60_s20 = sshll.u32 %s5969_s19, 4  ;;  %s42_s18 = int_to_ptr.vmem [resolvable:$true] %s41_s18  ;;  %s6047_s20 = int_to_ptr.vmem [resolvable:$true] %s60_s20 }
   0x8   :  { %s5690_s23 = scalar_lea.hbm %s7723_s1, 16 }
   0x9   :  { %p5691_p0 = scmp.ne.s32.totalorder %s7723_s1, %s5690_s23  ;;  %p5694_p1 = scmp.lt.u32.totalorder %s5690_s23, %s7723_s1 }
   0xb   :  { %p5696_p2 = pnand %p5694_p1, %p5691_p0 }
   0xd   :  { %5699 = shalt.err (!%p5696_p2)
}
   0xe   :  { %s5700_s28 = scalar_lea.vmem %s42_s18, 16  ;;  %s5704_s29 = scalar_lea.vmem %s42_s18, 32 }
   0xf   :  { %p5701_p3 = scmp.ne.s32.totalorder %s42_s18, %s5700_s28  ;;  %p5705_p4 = scmp.lt.s32.totalorder %s42_s18, %s42_s18 }
  0x10   :  { %p5706_p5 = scmp.lt.s32.totalorder %s5704_s29, %s5700_s28 }
  0x12   :  { %p5707_p6 = por %p5706_p5, %p5705_p4 }
  0x14   :  { %p5708_p7 = pnand %p5707_p6, %p5701_p3 }
  0x16   :  { %5711 = shalt.err (!%p5708_p7)
}
  0x17   :  { %44 = dma.hbm_to_vmem [thread:$0]  %s7723_s1, 16, %s42_s18, [#allocation8]  }
  0x18   :  { %s5712_s15 = scalar_lea.hbm %s7725_s3, 512 }
  0x19   :  { %p5713_p8 = scmp.ne.s32.totalorder %s7725_s3, %s5712_s15  ;;  %p5716_p9 = scmp.lt.u32.totalorder %s5712_s15, %s7725_s3 }
  0x1b   :  { %p5718_p10 = pnand %p5716_p9, %p5713_p8 }
  0x1d   :  { %5721 = shalt.err (!%p5718_p10)
}
  0x1e   :  { %s5722_s22 = scalar_lea.vmem %s6047_s20, 512  ;;  %p5727_p12 = scmp.lt.s32.totalorder %s6047_s20, %s6047_s20 }
  0x1f   :  { %p5723_p11 = scmp.ne.s32.totalorder %s6047_s20, %s5722_s22  ;;  %p5728_p13 = scmp.lt.s32.totalorder %s5722_s22, %s5722_s22 }
  0x21   :  { %p5729_p0 = por %p5728_p13, %p5727_p12 }
  0x23   :  { %p5730_p1 = pnand %p5729_p0, %p5723_p11 }
  0x25   :  { %5733 = shalt.err (!%p5730_p1)
}
  0x26   :  { %s5970_s1 = smov 256   ;;  %s5971_s18 = smov 16  }
  0x27   :  { %66 = dma.hbm_to_vmem [thread:$0]  %s7725_s3, 512, %s6047_s20, [#allocation11], %s5970_s1, %s5970_s1, %s5971_s18  }
  0x28   :  { %s5972_s25 = smov [#allocation13]   ;;  %s5973_s27 = smov [#allocation16]  }
  0x29   :  { %s85_s26 = sshll.u32 %s5972_s25, 4  ;;  %s106_s28 = sshll.u32 %s5973_s27, 4  ;;  %s86_s26 = int_to_ptr.vmem [resolvable:$true] %s85_s26  ;;  %s6081_s28 = int_to_ptr.vmem [resolvable:$true] %s106_s28 }
  0x2a   :  { %s5734_s12 = scalar_lea.hbm %s7727_s5, 64 }
  0x2b   :  { %p5735_p2 = scmp.ne.s32.totalorder %s7727_s5, %s5734_s12  ;;  %p5738_p3 = scmp.lt.u32.totalorder %s5734_s12, %s7727_s5 }
  0x2d   :  { %p5740_p4 = pnand %p5738_p3, %p5735_p2 }
  0x2f   :  { %5743 = shalt.err (!%p5740_p4)
}
  0x30   :  { %s5744_s3 = scalar_lea.vmem %s86_s26, 64  ;;  %p5749_p6 = scmp.lt.s32.totalorder %s86_s26, %s86_s26 }
  0x31   :  { %p5745_p5 = scmp.ne.s32.totalorder %s86_s26, %s5744_s3  ;;  %p5750_p7 = scmp.lt.s32.totalorder %s5744_s3, %s5744_s3 }
  0x33   :  { %p5751_p8 = por %p5750_p7, %p5749_p6 }
  0x35   :  { %p5752_p9 = pnand %p5751_p8, %p5745_p5 }
  0x37   :  { %5755 = shalt.err (!%p5752_p9)
}
  0x38   :  { %88 = dma.hbm_to_vmem [thread:$0]  %s7727_s5, 64, %s86_s26, [#allocation14]  }
  0x39   :  { %s5756_s22 = scalar_lea.hbm %s7729_s7, 4096 }
  0x3a   :  { %p5757_p10 = scmp.ne.s32.totalorder %s7729_s7, %s5756_s22  ;;  %p5760_p11 = scmp.lt.u32.totalorder %s5756_s22, %s7729_s7 }
  0x3c   :  { %p5762_p12 = pnand %p5760_p11, %p5757_p10 }
  0x3e   :  { %5765 = shalt.err (!%p5762_p12)
}
  0x3f   :  { %s5766_s29 = scalar_lea.vmem %s6081_s28, 4096  ;;  %p5771_p0 = scmp.lt.s32.totalorder %s6081_s28, %s6081_s28 }
  0x40   :  { %p5767_p13 = scmp.ne.s32.totalorder %s6081_s28, %s5766_s29  ;;  %p5772_p1 = scmp.lt.s32.totalorder %s5766_s29, %s5766_s29 }
  0x42   :  { %p5773_p2 = por %p5772_p1, %p5771_p0 }
  0x44   :  { %p5774_p3 = pnand %p5773_p2, %p5767_p13 }
  0x46   :  { %5777 = shalt.err (!%p5774_p3)
}
  0x47   :  { %112 = dma.hbm_to_vmem [thread:$0]  %s7729_s7, 4096, %s6081_s28, [#allocation17], %s5970_s1, %s5970_s1, %s5971_s18  }
  0x48   :  { %s5974_s30 = smov [#allocation19]   ;;  %s5778_s15 = scalar_lea.hbm %s7731_s9, 1024 }
  0x49   :  { %s128_s12 = sshll.u32 %s5974_s30, 4  ;;  %p5779_p4 = scmp.ne.s32.totalorder %s7731_s9, %s5778_s15  ;;  %s129_s12 = int_to_ptr.vmem [resolvable:$true] %s128_s12 }
  0x4a   :  { %p5782_p5 = scmp.lt.u32.totalorder %s5778_s15, %s7731_s9 }
  0x4c   :  { %p5784_p6 = pnand %p5782_p5, %p5779_p4 }
  0x4e   :  { %5787 = shalt.err (!%p5784_p6)
}
  0x4f   :  { %s5788_s19 = scalar_lea.vmem %s129_s12, 1024  ;;  %p5793_p8 = scmp.lt.s32.totalorder %s129_s12, %s129_s12 }
  0x50   :  { %p5789_p7 = scmp.ne.s32.totalorder %s129_s12, %s5788_s19  ;;  %p5794_p9 = scmp.lt.s32.totalorder %s5788_s19, %s5788_s19 }
  0x52   :  { %p5795_p10 = por %p5794_p9, %p5793_p8 }
  0x54   :  { %p5796_p11 = pnand %p5795_p10, %p5789_p7 }
  0x56   :  { %5799 = shalt.err (!%p5796_p11)
}
  0x57   :  { %s5975_s7 = smov 64   ;;  %s5976_s28 = smov 4  }
  0x58   :  { %134 = dma.hbm_to_vmem [thread:$0]  %s7731_s9, 1024, %s129_s12, [#allocation20], %s5975_s7, %s5975_s7, %s5976_s28  }
  0x59   :  { %s5977_s23 = smov [#allocation4]   ;;  %s5800_s29 = scalar_lea.hbm %s7722_s0, 2048 }
  0x5a   :  { %s28_s24 = sshll.u32 %s5977_s23, 4  ;;  %p5801_p12 = scmp.ne.s32.totalorder %s7722_s0, %s5800_s29  ;;  %s29_s24 = int_to_ptr.vmem [resolvable:$true] %s28_s24 }
  0x5b   :  { %p5804_p13 = scmp.lt.u32.totalorder %s5800_s29, %s7722_s0 }
  0x5d   :  { %p5806_p0 = pnand %p5804_p13, %p5801_p12 }
  0x5f   :  { %5809 = shalt.err (!%p5806_p0)
}
  0x60   :  { %s5810_s14 = scalar_lea.vmem %s29_s24, 2048  ;;  %p5815_p2 = scmp.lt.s32.totalorder %s29_s24, %s29_s24 }
  0x61   :  { %p5811_p1 = scmp.ne.s32.totalorder %s29_s24, %s5810_s14  ;;  %p5816_p3 = scmp.lt.s32.totalorder %s5810_s14, %s5810_s14 }
  0x63   :  { %p5817_p4 = por %p5816_p3, %p5815_p2 }
  0x65   :  { %p5818_p5 = pnand %p5817_p4, %p5811_p1 }
  0x67   :  { %5821 = shalt.err (!%p5818_p5)
}
  0x68   :  { %s5978_s9 = smov 128   ;;  %s5979_s12 = smov 8  }
  0x69   :  { %34 = dma.hbm_to_vmem [thread:$0]  %s7722_s0, 2048, %s29_s24, [#allocation5], %s5978_s9, %s5978_s9, %s5979_s12  }
  0x6a   :  { %s5980_s3 = smov [#allocation9]   ;;  %s5981_s17 = smov [#allocation12]  }
  0x6b   :  { %s51_s20 = sshll.u32 %s5980_s3, 4  ;;  %s72_s19 = sshll.u32 %s5981_s17, 4  ;;  %s52_s20 = int_to_ptr.vmem [resolvable:$true] %s51_s20  ;;  %s6142_s19 = int_to_ptr.vmem [resolvable:$true] %s72_s19 }
  0x6c   :  { %s5822_s21 = scalar_lea.hbm %s7724_s2, 16 }
  0x6d   :  { %p5823_p6 = scmp.ne.s32.totalorder %s7724_s2, %s5822_s21  ;;  %p5826_p7 = scmp.lt.u32.totalorder %s5822_s21, %s7724_s2 }
  0x6f   :  { %p5828_p8 = pnand %p5826_p7, %p5823_p6 }
  0x71   :  { %5831 = shalt.err (!%p5828_p8)
}
  0x72   :  { %s5832_s0 = scalar_lea.vmem %s52_s20, 16  ;;  %s5836_s24 = scalar_lea.vmem %s52_s20, 32 }
  0x73   :  { %p5833_p9 = scmp.ne.s32.totalorder %s52_s20, %s5832_s0  ;;  %p5837_p10 = scmp.lt.s32.totalorder %s52_s20, %s52_s20 }
  0x74   :  { %p5838_p11 = scmp.lt.s32.totalorder %s5836_s24, %s5832_s0 }
  0x76   :  { %p5839_p12 = por %p5838_p11, %p5837_p10 }
  0x78   :  { %p5840_p13 = pnand %p5839_p12, %p5833_p9 }
  0x7a   :  { %5843 = shalt.err (!%p5840_p13)
}
  0x7b   :  { %54 = dma.hbm_to_vmem [thread:$0]  %s7724_s2, 16, %s52_s20, [#allocation8]  }
  0x7c   :  { %s5844_s13 = scalar_lea.hbm %s7726_s4, 4096 }
  0x7d   :  { %p5845_p0 = scmp.ne.s32.totalorder %s7726_s4, %s5844_s13  ;;  %p5848_p1 = scmp.lt.u32.totalorder %s5844_s13, %s7726_s4 }
  0x7f   :  { %p5850_p2 = pnand %p5848_p1, %p5845_p0 }
  0x81   :  { %5853 = shalt.err (!%p5850_p2)
}
  0x82   :  { %s5854_s17 = scalar_lea.vmem %s6142_s19, 4096  ;;  %p5859_p4 = scmp.lt.s32.totalorder %s6142_s19, %s6142_s19 }
  0x83   :  { %p5855_p3 = scmp.ne.s32.totalorder %s6142_s19, %s5854_s17  ;;  %p5860_p5 = scmp.lt.s32.totalorder %s5854_s17, %s5854_s17 }
  0x85   :  { %p5861_p6 = por %p5860_p5, %p5859_p4 }
  0x87   :  { %p5862_p7 = pnand %p5861_p6, %p5855_p3 }
  0x89   :  { %5865 = shalt.err (!%p5862_p7)
}
  0x8a   :  { %78 = dma.hbm_to_vmem [thread:$0]  %s7726_s4, 4096, %s6142_s19, [#allocation11], %s5970_s1, %s5970_s1, %s5971_s18  }
  0x8b   :  { %s5982_s7 = smov [#allocation15]   ;;  %s5983_s21 = smov [#allocation18]  }
  0x8c   :  { %s94_s28 = sshll.u32 %s5982_s7, 4  ;;  %s119_s22 = sshll.u32 %s5983_s21, 4  ;;  %s95_s28 = int_to_ptr.vmem [resolvable:$true] %s94_s28  ;;  %s120_s22 = int_to_ptr.vmem [resolvable:$true] %s119_s22 }
  0x8d   :  { %s5866_s27 = scalar_lea.hbm %s7728_s6, 4096 }
  0x8e   :  { %p5867_p8 = scmp.ne.s32.totalorder %s7728_s6, %s5866_s27  ;;  %p5870_p9 = scmp.lt.u32.totalorder %s5866_s27, %s7728_s6 }
  0x90   :  { %p5872_p10 = pnand %p5870_p9, %p5867_p8 }
  0x92   :  { %5875 = shalt.err (!%p5872_p10)
}
  0x93   :  { %s5876_s4 = scalar_lea.vmem %s95_s28, 4096  ;;  %p5881_p12 = scmp.lt.s32.totalorder %s95_s28, %s95_s28 }
  0x94   :  { %p5877_p11 = scmp.ne.s32.totalorder %s95_s28, %s5876_s4  ;;  %p5882_p13 = scmp.lt.s32.totalorder %s5876_s4, %s5876_s4 }
  0x96   :  { %p5883_p0 = por %p5882_p13, %p5881_p12 }
  0x98   :  { %p5884_p1 = pnand %p5883_p0, %p5877_p11 }
  0x9a   :  { %5887 = shalt.err (!%p5884_p1)
}
  0x9b   :  { %100 = dma.hbm_to_vmem [thread:$0]  %s7728_s6, 4096, %s95_s28, [#allocation14], %s5970_s1, %s5970_s1, %s5971_s18  }
  0x9c   :  { %s5888_s14 = scalar_lea.hbm %s7730_s8, 64 }
  0x9d   :  { %p5889_p2 = scmp.ne.s32.totalorder %s7730_s8, %s5888_s14  ;;  %p5892_p3 = scmp.lt.u32.totalorder %s5888_s14, %s7730_s8 }
  0x9f   :  { %p5894_p4 = pnand %p5892_p3, %p5889_p2 }
  0xa1   :  { %5897 = shalt.err (!%p5894_p4)
}
  0xa2   :  { %s5898_s2 = scalar_lea.vmem %s120_s22, 64  ;;  %p5903_p6 = scmp.lt.s32.totalorder %s120_s22, %s120_s22 }
  0xa3   :  { %p5899_p5 = scmp.ne.s32.totalorder %s120_s22, %s5898_s2  ;;  %p5904_p7 = scmp.lt.s32.totalorder %s5898_s2, %s5898_s2 }
  0xa5   :  { %p5905_p8 = por %p5904_p7, %p5903_p6 }
  0xa7   :  { %p5906_p9 = pnand %p5905_p8, %p5899_p5 }
  0xa9   :  { %5909 = shalt.err (!%p5906_p9)
}
  0xaa   :  { %122 = dma.hbm_to_vmem [thread:$0]  %s7730_s8, 64, %s120_s22, [#allocation17]  }
  0xab   :  { %s5984_s18 = smov [#allocation21]   ;;  %s5910_s21 = scalar_lea.hbm %s7732_s10, 16 }
  0xac   :  { %s141_s20 = sshll.u32 %s5984_s18, 4  ;;  %p5911_p10 = scmp.ne.s32.totalorder %s7732_s10, %s5910_s21  ;;  %s142_s20 = int_to_ptr.vmem [resolvable:$true] %s141_s20 }
  0xad   :  { %p5914_p11 = scmp.lt.u32.totalorder %s5910_s21, %s7732_s10 }
  0xaf   :  { %p5916_p12 = pnand %p5914_p11, %p5911_p10 }
  0xb1   :  { %5919 = shalt.err (!%p5916_p12)
}
  0xb2   :  { %s5920_s24 = scalar_lea.vmem %s142_s20, 16  ;;  %s5924_s8 = scalar_lea.vmem %s142_s20, 32 }
  0xb3   :  { %p5921_p13 = scmp.ne.s32.totalorder %s142_s20, %s5920_s24  ;;  %p5925_p0 = scmp.lt.s32.totalorder %s142_s20, %s142_s20 }
  0xb4   :  { %p5926_p1 = scmp.lt.s32.totalorder %s5924_s8, %s5920_s24 }
  0xb6   :  { %p5927_p2 = por %p5926_p1, %p5925_p0 }
  0xb8   :  { %p5928_p3 = pnand %p5927_p2, %p5921_p13 }
  0xba   :  { %5931 = shalt.err (!%p5928_p3)
}
  0xbb   :  { %144 = dma.hbm_to_vmem [thread:$0]  %s7732_s10, 16, %s142_s20, [#allocation20]  }
  0xbc   :  { %5954 = dma.done.wait [#allocation5], 2048  }
  0xbd   :  { %5955 = vsyncadd [#allocation5], 4294965248 }
  0xbe   :  { %5956 = dma.done.wait [#allocation8], 32  }
  0xbf   :  { %5957 = vsyncadd [#allocation8], 4294967264 }
  0xc0   :  { %5958 = dma.done.wait [#allocation11], 4608  }
  0xc1   :  { %5959 = vsyncadd [#allocation11], 4294962688 }
  0xc2   :  { %5960 = dma.done.wait [#allocation14], 4160  }
  0xc3   :  { %5961 = vsyncadd [#allocation14], 4294963136 }
  0xc4   :  { %5962 = dma.done.wait [#allocation17], 4160  }
  0xc5   :  { %5963 = vsyncadd [#allocation17], 4294963136 }
  0xc6   :  { %5964 = dma.done.wait [#allocation20], 1040  }
  0xc7   :  { %5965 = vsyncadd [#allocation20], 4294966256  ;;  %vm195_vm0 = vcmask 130048   ;;  %v187_v0 = vld [vmem:[#allocation4 + $0x40] sm:$0xff]  ;;  %v189_v1 = vld [vmem:[#allocation4 + $0x50] sm:$0xff]  ;;  %vm4337_vm1 = vcmask 97280  }
  0xc8   :  { %v188_v2 = vld [vmem:[#allocation4 + $0x48] sm:$0xff]  ;;  %v220_v3 = vsel %vm195_vm0, %v187_v0, 0.0  ;;  %v226_v4 = vsel %vm195_vm0, %v189_v1, 0.0  ;;  %v190_v5 = vld [vmem:[#allocation4 + $0x58] sm:$0xff]  ;;  %v191_v8 = vld [vmem:[#allocation4 + $0x60] sm:$0xff]  ;;  %s5986_s10 = smov [#allocation22]  }
  0xc9   :  { %221 = vadd.xlane.f32.xlu0 %v220_v3  ;;  %227 = vadd.xlane.f32.xlu1 %v226_v4  ;;  %v223_v6 = vsel %vm195_vm0, %v188_v2, 0.0  ;;  %v229_v7 = vsel %vm195_vm0, %v190_v5, 0.0  ;;  %v192_v9 = vld [vmem:[#allocation4 + $0x68] sm:$0xff]  ;;  %v6219_v10 = vld [vmem:[#allocation4 + $0x70] sm:$0xff]  ;;  %v6221_v11 = vld [vmem:[#allocation4 + $0x78] sm:$0xff]  ;;  %v232_v12 = vsel %vm195_vm0, %v191_v8, 0.0 }
  0xca   :  { %v235_v13 = vsel %vm195_vm0, %v192_v9, 0.0  ;;  %v6225_v14 = vld [vmem:[#allocation4] sm:$0xff]  ;;  %v6227_v15 = vld [vmem:[#allocation4 + $0x8] sm:$0xff]  ;;  %v238_v16 = vsel %vm195_vm0, %v6219_v10, 0.0  ;;  %v241_v17 = vsel %vm195_vm0, %v6221_v11, 0.0  ;;  %v6233_v18 = vld [vmem:[#allocation4 + $0x10] sm:$0xff] }
  0xcb   :  { %v6235_v19 = vld [vmem:[#allocation4 + $0x18] sm:$0xff]  ;;  %v196_v20 = vsel %vm195_vm0, %v6225_v14, 0.0  ;;  %v199_v21 = vsel %vm195_vm0, %v6227_v15, 0.0  ;;  %v6241_v22 = vld [vmem:[#allocation4 + $0x20] sm:$0xff]  ;;  %v6243_v23 = vld [vmem:[#allocation4 + $0x28] sm:$0xff]  ;;  %v202_v24 = vsel %vm195_vm0, %v6233_v18, 0.0 }
  0xcc   :  { %v205_v25 = vsel %vm195_vm0, %v6235_v19, 0.0  ;;  %v6249_v26 = vld [vmem:[#allocation4 + $0x30] sm:$0xff]  ;;  %v6251_v27 = vld [vmem:[#allocation4 + $0x38] sm:$0xff]  ;;  %v208_v28 = vsel %vm195_vm0, %v6241_v22, 0.0  ;;  %v211_v29 = vsel %vm195_vm0, %v6243_v23, 0.0  ;;  %s4359_s5 = sshll.u32 %s5986_s10, 4  ;;  %s4360_s5 = int_to_ptr.vmem [resolvable:$true] %s4359_s5 }
  0xcd   :  { %224 = vadd.xlane.f32.xlu0 %v223_v6  ;;  %230 = vadd.xlane.f32.xlu1 %v229_v7  ;;  %v214_v30 = vsel %vm195_vm0, %v6249_v26, 0.0  ;;  %v217_v31 = vsel %vm195_vm0, %v6251_v27, 0.0  ;;  %s5932_s4 = scalar_lea.vmem %s4360_s5, 2048  ;;  %p5937_p5 = scmp.lt.s32.totalorder %s4360_s5, %s4360_s5 }
  0xce   :  { %p5933_p4 = scmp.ne.s32.totalorder %s4360_s5, %s5932_s4  ;;  %p5938_p6 = scmp.lt.s32.totalorder %s5932_s4, %s5932_s4 }
  0xd0   :  { %p5939_p7 = por %p5938_p6, %p5937_p5 }
  0xd1   :  { %233 = vadd.xlane.f32.xlu0 %v232_v12  ;;  %236 = vadd.xlane.f32.xlu1 %v235_v13 }
  0xd2   :  { %p5940_p8 = pnand %p5939_p7, %p5933_p4 }
  0xd5   :  { %239 = vadd.xlane.f32.xlu0 %v238_v16  ;;  %242 = vadd.xlane.f32.xlu1 %v241_v17 }
  0xd9   :  { %197 = vadd.xlane.f32.xlu0 %v196_v20  ;;  %200 = vadd.xlane.f32.xlu1 %v199_v21 }
  0xdd   :  { %203 = vadd.xlane.f32.xlu0 %v202_v24  ;;  %206 = vadd.xlane.f32.xlu1 %v205_v25 }
  0xe1   :  { %209 = vadd.xlane.f32.xlu0 %v208_v28  ;;  %212 = vadd.xlane.f32.xlu1 %v211_v29 }
  0xe5   :  { %215 = vadd.xlane.f32.xlu0 %v214_v30  ;;  %218 = vadd.xlane.f32.xlu1 %v217_v31 }
 0x156   :  { %v222_v32 = vpop.xlane.xlu0 %221  ;;  %v228_v33 = vpop.xlane.xlu1 %227 }
 0x157   :  { %v253_v34 = vmul.f32 0.0625, %v222_v32  ;;  %v255_v35 = vmul.f32 0.0625, %v228_v33 }
 0x159   :  { %v6261_v36 = vsub.f32 %v187_v0, %v253_v34  ;;  %v6263_v37 = vsub.f32 %v189_v1, %v255_v35 }
 0x15a   :  { %v225_v38 = vpop.xlane.xlu0 %224  ;;  %v231_v39 = vpop.xlane.xlu1 %230 }
 0x15b   :  { %v254_v40 = vmul.f32 0.0625, %v225_v38  ;;  %v256_v41 = vmul.f32 0.0625, %v231_v39  ;;  %v285_v42 = vmul.f32 %v6261_v36, %v6261_v36  ;;  %v287_v43 = vmul.f32 %v6263_v37, %v6263_v37 }
 0x15d   :  { %v6269_v44 = vsub.f32 %v188_v2, %v254_v40  ;;  %v6271_v45 = vsub.f32 %v190_v5, %v256_v41  ;;  %v317_v46 = vsel %vm195_vm0, %v285_v42, 0.0  ;;  %v323_v49 = vsel %vm195_vm0, %v287_v43, 0.0 }
 0x15e   :  { %v234_v47 = vpop.xlane.xlu0 %233  ;;  %318 = vadd.xlane.f32.xlu0 %v317_v46  ;;  %v237_v48 = vpop.xlane.xlu1 %236 }
 0x15f   :  { %v257_v50 = vmul.f32 0.0625, %v234_v47  ;;  %v258_v51 = vmul.f32 0.0625, %v237_v48  ;;  %v286_v52 = vmul.f32 %v6269_v44, %v6269_v44  ;;  %v288_v53 = vmul.f32 %v6271_v45, %v6271_v45 }
 0x161   :  { %v6279_v54 = vsub.f32 %v191_v8, %v257_v50  ;;  %v6281_v55 = vsub.f32 %v192_v9, %v258_v51  ;;  %v320_v56 = vsel %vm195_vm0, %v286_v52, 0.0  ;;  %v326_v59 = vsel %vm195_vm0, %v288_v53, 0.0  ;;  %v4926_v53 = vld [vmem:[#allocation10] ss:$16 sps:$4 sm:$0xff]  }
 0x162   :  { %v240_v57 = vpop.xlane.xlu0 %239  ;;  %321 = vadd.xlane.f32.xlu1 %v320_v56  ;;  %324 = vadd.xlane.f32.xlu0 %v323_v49  ;;  %v243_v58 = vpop.xlane.xlu1 %242  ;;  %v7734_v56 = vmov 0  }
 0x163   :  { %v259_v60 = vmul.f32 0.0625, %v240_v57  ;;  %v260_v61 = vmul.f32 0.0625, %v243_v58  ;;  %v289_v62 = vmul.f32 %v6279_v54, %v6279_v54  ;;  %v290_v63 = vmul.f32 %v6281_v55, %v6281_v55  ;;  %633 = vmatprep.mubr.bf16.mxu1 %v7734_v56  ;;  %593 = vmatprep.mubr.bf16.mxu0 %v7734_v56  ;;  %v4929_v57 = vld [vmem:[#allocation10 + $0xc] ss:$16 sps:$4 sm:$0xff]   ;;  %v6353_v58 = vld [vmem:[#allocation12 + $0x4] ss:$16 sps:$4 sm:$0xff]  }
 0x165   :  { %v6290_v0 = vsub.f32 %v6219_v10, %v259_v60  ;;  %v6293_v1 = vsub.f32 %v6221_v11, %v260_v61  ;;  %v329_v2 = vsel %vm195_vm0, %v289_v62, 0.0  ;;  %v332_v4 = vsel %vm195_vm0, %v290_v63, 0.0 }
 0x166   :  { %327 = vadd.xlane.f32.xlu1 %v326_v59  ;;  %330 = vadd.xlane.f32.xlu0 %v329_v2  ;;  %v198_v3 = vpop.xlane.xlu0 %197  ;;  %v201_v5 = vpop.xlane.xlu1 %200 }
 0x167   :  { %v245_v6 = vmul.f32 0.0625, %v198_v3  ;;  %v246_v7 = vmul.f32 0.0625, %v201_v5  ;;  %v291_v8 = vmul.f32 %v6290_v0, %v6290_v0  ;;  %v292_v9 = vmul.f32 %v6293_v1, %v6293_v1 }
 0x169   :  { %v6302_v10 = vsub.f32 %v6225_v14, %v245_v6  ;;  %v6305_v11 = vsub.f32 %v6227_v15, %v246_v7  ;;  %v335_v12 = vsel %vm195_vm0, %v291_v8, 0.0  ;;  %v338_v16 = vsel %vm195_vm0, %v292_v9, 0.0 }
 0x16a   :  { %333 = vadd.xlane.f32.xlu1 %v332_v4  ;;  %336 = vadd.xlane.f32.xlu0 %v335_v12  ;;  %v204_v13 = vpop.xlane.xlu0 %203  ;;  %v207_v17 = vpop.xlane.xlu1 %206 }
 0x16b   :  { %v247_v20 = vmul.f32 0.0625, %v204_v13  ;;  %v248_v21 = vmul.f32 0.0625, %v207_v17  ;;  %v277_v24 = vmul.f32 %v6302_v10, %v6302_v10  ;;  %v278_v14 = vmul.f32 %v6305_v11, %v6305_v11 }
 0x16d   :  { %v6314_v25 = vsub.f32 %v6233_v18, %v247_v20  ;;  %v6317_v15 = vsub.f32 %v6235_v19, %v248_v21  ;;  %v293_v28 = vsel %vm195_vm0, %v277_v24, 0.0  ;;  %v296_v30 = vsel %vm195_vm0, %v278_v14, 0.0 }
 0x16e   :  { %339 = vadd.xlane.f32.xlu1 %v338_v16  ;;  %294 = vadd.xlane.f32.xlu0 %v293_v28  ;;  %v210_v29 = vpop.xlane.xlu0 %209  ;;  %v213_v31 = vpop.xlane.xlu1 %212 }
 0x16f   :  { %v249_v32 = vmul.f32 0.0625, %v210_v29  ;;  %v250_v33 = vmul.f32 0.0625, %v213_v31  ;;  %v279_v34 = vmul.f32 %v6314_v25, %v6314_v25  ;;  %v280_v18 = vmul.f32 %v6317_v15, %v6317_v15 }
 0x171   :  { %v6326_v35 = vsub.f32 %v6241_v22, %v249_v32  ;;  %v6329_v19 = vsub.f32 %v6243_v23, %v250_v33  ;;  %v299_v38 = vsel %vm195_vm0, %v279_v34, 0.0  ;;  %v302_v40 = vsel %vm195_vm0, %v280_v18, 0.0 }
 0x172   :  { %297 = vadd.xlane.f32.xlu1 %v296_v30  ;;  %300 = vadd.xlane.f32.xlu0 %v299_v38  ;;  %v216_v39 = vpop.xlane.xlu0 %215  ;;  %v219_v41 = vpop.xlane.xlu1 %218  ;;  %v6357_v30 = vld [vmem:[#allocation7] ss:$0 sm:$0xff] }
 0x173   :  { %v251_v42 = vmul.f32 0.0625, %v216_v39  ;;  %v252_v43 = vmul.f32 0.0625, %v219_v41  ;;  %v281_v46 = vmul.f32 %v6326_v35, %v6326_v35  ;;  %v282_v22 = vmul.f32 %v6329_v19, %v6329_v19 }
 0x175   :  { %v6338_v47 = vsub.f32 %v6249_v26, %v251_v42  ;;  %v6341_v23 = vsub.f32 %v6251_v27, %v252_v43  ;;  %v305_v48 = vsel %vm195_vm0, %v281_v46, 0.0  ;;  %v308_v49 = vsel %vm195_vm0, %v282_v22, 0.0  ;;  %v4924_v27 = vld [vmem:[#allocation10 + $0x4] ss:$16 sps:$4 sm:$0xff]   ;;  %v6361_v43 = vld [vmem:[#allocation9] ss:$0 sm:$0xff] }
 0x176   :  { %303 = vadd.xlane.f32.xlu1 %v302_v40  ;;  %306 = vadd.xlane.f32.xlu0 %v305_v48 }
 0x177   :  { %v283_v50 = vmul.f32 %v6338_v47, %v6338_v47  ;;  %v284_v51 = vmul.f32 %v6341_v23, %v6341_v23  ;;  %4647 = vmatprep.subr.bf16.mxu1 %v4924_v27  ;;  %561 = vmatprep.subr.bf16.mxu0 %v4924_v27 }
 0x178   :  { %4648 = vmatpush1.bf16.msra.mxu1 %v4926_v53  ;;  %562 = vmatpush1.bf16.msra.mxu0 %v4926_v53 }
 0x179   :  { %v311_v52 = vsel %vm195_vm0, %v283_v50, 0.0  ;;  %v314_v26 = vsel %vm195_vm0, %v284_v51, 0.0  ;;  %674 = vmatprep.subr.bf16.mxu1 %v4929_v57  ;;  %1019 = vmatprep.subr.bf16.mxu0 %v6353_v58 }
 0x17a   :  { %309 = vadd.xlane.f32.xlu1 %v308_v49  ;;  %312 = vadd.xlane.f32.xlu0 %v311_v52 }
 0x17e   :  { %315 = vadd.xlane.f32.xlu1 %v314_v26 }
 0x1eb   :  { %v319_v59 = vpop.xlane.xlu0 %318 }
 0x1ec   :  { %v349_v60 = vmul.f32 0.0625, %v319_v59 }
 0x1ee   :  { %v365_v61 = vadd.f32 1e-05, %v349_v60 }
 0x1ef   :  { %v322_v62 = vpop.xlane.xlu1 %321  ;;  %v325_v63 = vpop.xlane.xlu0 %324 }
 0x1f0   :  { %5082 = vrsqrt.f32 %v365_v61  ;;  %v350_v2 = vmul.f32 0.0625, %v322_v62  ;;  %v351_v3 = vmul.f32 0.0625, %v325_v63  ;;  %v4927_v61 = vld [vmem:[#allocation10 + $0x8] ss:$16 sps:$4 sm:$0xff]  }
 0x1f2   :  { %v366_v4 = vadd.f32 1e-05, %v350_v2  ;;  %v367_v5 = vadd.f32 1e-05, %v351_v3  ;;  %v6371_v2 = vld [vmem:[#allocation12 + $0xc] ss:$16 sps:$4 sm:$0xff]  }
 0x1f3   :  { %v328_v6 = vpop.xlane.xlu1 %327  ;;  %v331_v7 = vpop.xlane.xlu0 %330 }
 0x1f4   :  { %5084 = vrsqrt.f32 %v366_v4  ;;  %v352_v8 = vmul.f32 0.0625, %v328_v6  ;;  %v353_v9 = vmul.f32 0.0625, %v331_v7 }
 0x1f5   :  { %5086 = vrsqrt.f32 %v367_v5 }
 0x1f6   :  { %v368_v12 = vadd.f32 1e-05, %v352_v8  ;;  %v369_v20 = vadd.f32 1e-05, %v353_v9 }
 0x1f7   :  { %v334_v13 = vpop.xlane.xlu1 %333  ;;  %v337_v16 = vpop.xlane.xlu0 %336 }
 0x1f8   :  { %5088 = vrsqrt.f32 %v368_v12  ;;  %v354_v17 = vmul.f32 0.0625, %v334_v13  ;;  %v355_v33 = vmul.f32 0.0625, %v337_v16 }
 0x1fa   :  { %v5083_v21 = vpop.eup %5082  ;;  %v370_v24 = vadd.f32 1e-05, %v354_v17  ;;  %v371_v48 = vadd.f32 1e-05, %v355_v33 }
 0x1fb   :  { %v397_v14 = vmul.f32 %v5083_v21, %v6261_v36  ;;  %v340_v28 = vpop.xlane.xlu1 %339  ;;  %v295_v29 = vpop.xlane.xlu0 %294 }
 0x1fc   :  { %5090 = vrsqrt.f32 %v370_v24  ;;  %v356_v31 = vmul.f32 0.0625, %v340_v28  ;;  %v341_v32 = vmul.f32 0.0625, %v295_v29 }
 0x1fd   :  { %5092 = vrsqrt.f32 %v369_v20  ;;  %v420_v38 = vmul.f32 %v6357_v30, %v397_v14 }
 0x1fe   :  { %v5085_v34 = vpop.eup %5084  ;;  %v357_v18 = vadd.f32 1e-05, %v341_v32  ;;  %v372_v40 = vadd.f32 1e-05, %v356_v31 }
 0x1ff   :  { %v398_v39 = vmul.f32 %v5085_v34, %v6269_v44  ;;  %v298_v41 = vpop.xlane.xlu1 %297  ;;  %v301_v42 = vpop.xlane.xlu0 %300  ;;  %v443_v26 = vadd.f32 %v6361_v43, %v420_v38 }
 0x200   :  { %v5087_v36 = vpop.eup %5086  ;;  %v342_v46 = vmul.f32 0.0625, %v298_v41  ;;  %v343_v22 = vmul.f32 0.0625, %v301_v42  ;;  %5094 = vrsqrt.f32 %v357_v18 }
 0x201   :  { %v421_v49 = vmul.f32 %v6357_v30, %v398_v39  ;;  %v399_v27 = vmul.f32 %v5087_v36, %v6263_v37  ;;  %5096 = vrsqrt.f32 %v372_v40 }
 0x202   :  { %v5089_v50 = vpop.eup %5088  ;;  %v358_v51 = vadd.f32 1e-05, %v342_v46  ;;  %v359_v52 = vadd.f32 1e-05, %v343_v22 }
 0x203   :  { %v400_v44 = vmul.f32 %v5089_v50, %v6271_v45  ;;  %v304_v53 = vpop.xlane.xlu1 %303  ;;  %v307_v57 = vpop.xlane.xlu0 %306  ;;  %v444_v59 = vadd.f32 %v6361_v43, %v421_v49  ;;  %v422_v6 = vmul.f32 %v6357_v30, %v399_v27  ;;  %v6405_v27 = vld [vmem:[#allocation12 + $0x24] ss:$16 sps:$4 sm:$0xff]  }
 0x204   :  { %5098 = vrsqrt.f32 %v358_v51  ;;  %v344_v60 = vmul.f32 0.0625, %v304_v53  ;;  %v345_v4 = vmul.f32 0.0625, %v307_v57 }
 0x205   :  { %5100 = vrsqrt.f32 %v371_v48  ;;  %v6368_v62 = vpack.c.bf16 %v444_v59, %v443_v26  ;;  %v423_v63 = vmul.f32 %v6357_v30, %v400_v44  ;;  %v445_v24 = vadd.f32 %v6361_v43, %v422_v6  ;;  %v6415_v59 = vld [vmem:[#allocation12 + $0x20] ss:$16 sps:$4 sm:$0xff]  }
 0x206   :  { %v5091_v3 = vpop.eup %5090  ;;  %5102 = vrsqrt.f32 %v359_v52  ;;  %v360_v37 = vadd.f32 1e-05, %v344_v60  ;;  %v361_v13 = vadd.f32 1e-05, %v345_v4 }
 0x207   :  { %v5093_v45 = vpop.eup %5092  ;;  %v310_v5 = vpop.xlane.xlu1 %309  ;;  %4386 = vmatmul.mubr.msk.bf16.vlgmr.msra.gmra.mrb[0].mxu1 %vm195_vm0, %v6368_v62  ;;  %v402_v8 = vmul.f32 %v5091_v3, %v6281_v55  ;;  %v446_v9 = vadd.f32 %v6361_v43, %v423_v63  ;;  %v6423_v3 = vld [vmem:[#allocation12 + $0x44] ss:$16 sps:$4 sm:$0xff]  }
 0x208   :  { %5104 = vrsqrt.f32 %v360_v37  ;;  %v346_v7 = vmul.f32 0.0625, %v310_v5  ;;  %675 = vmatpush1.bf16.msra.mxu1 %v4927_v61  ;;  %643 = vmatprep.mubr.bf16.mxu1 %v7734_v56  ;;  %v401_v12 = vmul.f32 %v5093_v45, %v6279_v54  ;;  %v313_v20 = vpop.xlane.xlu0 %312  ;;  %v6429_v5 = vld [vmem:[#allocation12 + $0x40] ss:$16 sps:$4 sm:$0xff]  }
 0x209   :  { %1062 = vmatprep.subr.bf16.mxu1 %v6371_v2  ;;  %v6383_v31 = vpack.c.bf16 %v446_v9, %v445_v24  ;;  %v425_v55 = vmul.f32 %v6357_v30, %v402_v8  ;;  %v347_v33 = vmul.f32 0.0625, %v313_v20  ;;  %v6449_v20 = vld [vmem:[#allocation12 + $0x84] ss:$16 sps:$4 sm:$0xff]  }
 0x20a   :  { %v362_v16 = vadd.f32 1e-05, %v346_v7  ;;  %v5095_v17 = vpop.eup %5094  ;;  %v424_v54 = vmul.f32 %v6357_v30, %v401_v12  ;;  %v6434_v7 = vld [vmem:[#allocation12 + $0x64] ss:$16 sps:$4 sm:$0xff]  }
 0x20b   :  { %v316_v21 = vpop.xlane.xlu1 %315  ;;  %v389_v14 = vmul.f32 %v5095_v17, %v6302_v10  ;;  %v5097_v29 = vpop.eup %5096  ;;  %v448_v42 = vadd.f32 %v6361_v43, %v425_v55  ;;  %v363_v22 = vadd.f32 1e-05, %v347_v33  ;;  %v6469_v33 = vld [vmem:[#allocation12 + $0xa0] ss:$16 sps:$4 sm:$0xff]  }
 0x20c   :  { %5106 = vrsqrt.f32 %v362_v16  ;;  %v348_v28 = vmul.f32 0.0625, %v316_v21  ;;  %v404_v40 = vmul.f32 %v5097_v29, %v6293_v1  ;;  %v6401_v1 = vld [vmem:[#allocation12] ss:$16 sps:$4 sm:$0xff]  }
 0x20d   :  { %5108 = vrsqrt.f32 %v361_v13  ;;  %v412_v10 = vmul.f32 %v6357_v30, %v389_v14  ;;  %v6442_v13 = vld [vmem:[#allocation12 + $0x60] ss:$16 sps:$4 sm:$0xff]   ;;  %v6454_v14 = vld [vmem:[#allocation12 + $0x8] ss:$16 sps:$4 sm:$0xff]  }
 0x20e   :  { %v5099_v32 = vpop.eup %5098  ;;  %v364_v39 = vadd.f32 1e-05, %v348_v28  ;;  %v427_v44 = vmul.f32 %v6357_v30, %v404_v40  ;;  %v6456_v28 = vld [vmem:[#allocation12 + $0x80] ss:$16 sps:$4 sm:$0xff]   ;;  %v6488_v40 = vld [vmem:[#allocation12 + $0xe4] ss:$16 sps:$4 sm:$0xff]  }
 0x20f   :  { %v5101_v34 = vpop.eup %5100  ;;  %v390_v18 = vmul.f32 %v5099_v32, %v6305_v11  ;;  %4387 = vmatmul.mubr.msk.bf16.gmra.mrb[4].mxu1 %vm195_vm0, %v6383_v31  ;;  %v447_v11 = vadd.f32 %v6361_v43, %v424_v54  ;;  %v435_v50 = vadd.f32 %v6361_v43, %v412_v10  ;;  %v6462_v32 = vld [vmem:[#allocation12 + $0x2c] ss:$16 sps:$4 sm:$0xff]   ;;  %v6471_v54 = vld [vmem:[#allocation12 + $0x28] ss:$16 sps:$4 sm:$0xff]  }
 0x210   :  { %v5103_v38 = vpop.eup %5102  ;;  %653 = vmatprep.mubr.bf16.mxu1 %v7734_v56  ;;  %v403_v46 = vmul.f32 %v5101_v34, %v6290_v0  ;;  %5110 = vrsqrt.f32 %v364_v39  ;;  %v450_v63 = vadd.f32 %v6361_v43, %v427_v44  ;;  %v6478_v10 = vld [vmem:[#allocation12 + $0x4c] ss:$16 sps:$4 sm:$0xff]  }
 0x211   :  { %v413_v41 = vmul.f32 %v6357_v30, %v390_v18  ;;  %v391_v48 = vmul.f32 %v5103_v38, %v6314_v25  ;;  %v6403_v26 = vpack.c.bf16 %v448_v42, %v447_v11  ;;  %5112 = vrsqrt.f32 %v363_v22  ;;  %v6476_v18 = vld [vmem:[#allocation12 + $0xc4] ss:$16 sps:$4 sm:$0xff]   ;;  %v6485_v38 = vld [vmem:[#allocation12 + $0xc0] ss:$16 sps:$4 sm:$0xff]   ;;  %v6512_v22 = vld [vmem:[#allocation12 + $0x88] ss:$16 sps:$4 sm:$0xff]  }
 0x212   :  { %v5105_v36 = vpop.eup %5104  ;;  %v6498_v42 = vld [vmem:[#allocation12 + $0xe0] ss:$16 sps:$4 sm:$0xff]   ;;  %v6516_v11 = vld [vmem:[#allocation12 + $0xac] ss:$16 sps:$4 sm:$0xff]  }
 0x213   :  { %v392_v49 = vmul.f32 %v5105_v36, %v6317_v15  ;;  %v436_v51 = vadd.f32 %v6361_v43, %v413_v41  ;;  %v414_v25 = vmul.f32 %v6357_v30, %v391_v48  ;;  %v426_v15 = vmul.f32 %v6357_v30, %v403_v46  ;;  %v6491_v41 = vld [vmem:[#allocation12 + $0x48] ss:$16 sps:$4 sm:$0xff]   ;;  %v6508_v46 = vld [vmem:[#allocation12 + $0x8c] ss:$16 sps:$4 sm:$0xff]  }
 0x214   :  { %v6504_v36 = vld [vmem:[#allocation12 + $0x68] ss:$16 sps:$4 sm:$0xff]  }
 0x215   :  { %v451_v52 = vpack.c.bf16 %v436_v51, %v435_v50  ;;  %v415_v0 = vmul.f32 %v6357_v30, %v392_v49  ;;  %v437_v4 = vadd.f32 %v6361_v43, %v414_v25  ;;  %v449_v45 = vadd.f32 %v6361_v43, %v426_v15  ;;  %v6523_v48 = vld [vmem:[#allocation12 + $0xa8] ss:$16 sps:$4 sm:$0xff]   ;;  %v6527_v49 = vld [vmem:[#allocation12 + $0xcc] ss:$16 sps:$4 sm:$0xff]  }
 0x216   :  { %v5107_v53 = vpop.eup %5106  ;;  %v6531_v50 = vld [vmem:[#allocation12 + $0xc8] ss:$16 sps:$4 sm:$0xff]   ;;  %v6536_v51 = vld [vmem:[#allocation12 + $0xec] ss:$16 sps:$4 sm:$0xff]  }
 0x217   :  { %4382 = vmatmul.mubr.msk.bf16.vlgmr.msra.gmra.mrb[0].mxu0 %vm195_vm0, %v451_v52  ;;  %4388 = vmatmul.mubr.msk.bf16.gmra.mrb[8].mxu1 %vm195_vm0, %v6403_v26  ;;  %v5109_v57 = vpop.eup %5108  ;;  %v394_v60 = vmul.f32 %v5107_v53, %v6329_v19  ;;  %v438_v61 = vadd.f32 %v6361_v43, %v415_v0  ;;  %v6431_v6 = vpack.c.bf16 %v450_v63, %v449_v45 }
 0x218   :  { %1020 = vmatpush1.bf16.msra.mxu0 %v6401_v1  ;;  %603 = vmatprep.mubr.bf16.mxu0 %v7734_v56  ;;  %v393_v37 = vmul.f32 %v5109_v57, %v6326_v35 }
 0x219   :  { %1021 = vmatprep.subr.bf16.mxu0 %v6405_v27  ;;  %663 = vmatprep.mubr.bf16.mxu1 %v7734_v56  ;;  %v452_v19 = vpack.c.bf16 %v438_v61, %v437_v4  ;;  %v417_v8 = vmul.f32 %v6357_v30, %v394_v60 }
 0x21a   :  { %v5111_v9 = vpop.eup %5110  ;;  %v416_v35 = vmul.f32 %v6357_v30, %v393_v37 }
 0x21b   :  { %v5113_v12 = vpop.eup %5112  ;;  %v396_v16 = vmul.f32 %v5111_v9, %v6341_v23  ;;  %v440_v17 = vadd.f32 %v6361_v43, %v417_v8  ;;  %v6459_v23 = vld [vmem:[#allocation12 + $0xa4] ss:$16 sps:$4 sm:$0xff]  }
 0x21c   :  { %1022 = vmatpush1.bf16.msra.mxu0 %v6415_v59  ;;  %v395_v21 = vmul.f32 %v5113_v12, %v6338_v47  ;;  %v439_v24 = vadd.f32 %v6361_v43, %v416_v35  ;;  %v497_v12 = vlaneseq }
 0x21d   :  { %1023 = vmatprep.subr.bf16.mxu0 %v6423_v3  ;;  %v419_v55 = vmul.f32 %v6357_v30, %v396_v16 }
 0x21e   :  { %v453_v29 = vpack.c.bf16 %v440_v17, %v439_v24  ;;  %v418_v47 = vmul.f32 %v6357_v30, %v395_v21  ;;  %v6619_v16 = vshrl.u32 %v497_v12, 7  ;;  %v495_v21 = vld [vmem:[#allocation13] sm:$0xf] }
 0x21f   :  { %4383 = vmatmul.mubr.msk.bf16.gmra.mrb[4].mxu0 %vm195_vm0, %v452_v19  ;;  %4389 = vmatmul.mubr.msk.bf16.gmra.mrb[12].mxu1 %vm195_vm0, %v6431_v6  ;;  %v442_v34 = vadd.f32 %v6361_v43, %v419_v55 }
 0x220   :  { %1024 = vmatpush1.bf16.msra.mxu0 %v6429_v5  ;;  %613 = vmatprep.mubr.bf16.mxu0 %v7734_v56  ;;  %v441_v30 = vadd.f32 %v6361_v43, %v418_v47  ;;  %v6495_v43 = vld [vmem:[#allocation12 + $0x6c] ss:$16 sps:$4 sm:$0xff]   ;;  %7754 = vst [vmem:[#allocation40_spill] sm:$0xff] %v6619_v16  ;;  %v7736_v17 = vsub.s32 0, %v6619_v16  ;;  %v7737_v24 = vsub.s32 1, %v6619_v16 }
 0x221   :  { %1025 = vmatprep.subr.bf16.mxu0 %v6434_v7  ;;  %706 = vmatprep.mubr.bf16.mxu1 %v7734_v56 }
 0x222   :  { %v454_v39 = vpack.c.bf16 %v442_v34, %v441_v30  ;;  %v6629_v55 = vrot.slane %v495_v21, %v7737_v24  ;;  %v7738_v24 = vsub.s32 2, %v6619_v16 }
 0x224   :  { %1026 = vmatpush1.bf16.msra.mxu0 %v6442_v13 }
 0x225   :  { %1027 = vmatprep.subr.bf16.mxu0 %v6449_v20 }
 0x227   :  { %4384 = vmatmul.mubr.msk.bf16.gmra.mrb[8].mxu0 %vm195_vm0, %v453_v29  ;;  %4390 = vmatmul.mubr.msk.bf16.vlgmr.msra.gmra.mrb[16].mxu1 %vm195_vm0, %v451_v52  ;;  %v6541_v52 = vld [vmem:[#allocation12 + $0xe8] ss:$16 sps:$4 sm:$0xff]  }
 0x228   :  { %1063 = vmatpush1.bf16.msra.mxu1 %v6454_v14  ;;  %1028 = vmatpush1.bf16.msra.mxu0 %v6456_v28 }
 0x229   :  { %1029 = vmatprep.subr.bf16.mxu0 %v6459_v23  ;;  %623 = vmatprep.mubr.bf16.mxu0 %v7734_v56 }
 0x22a   :  { %716 = vmatprep.mubr.bf16.mxu1 %v7734_v56  ;;  %1064 = vmatprep.subr.bf16.mxu1 %v6462_v32 }
 0x22c   :  { %1030 = vmatpush1.bf16.msra.mxu0 %v6469_v33  ;;  %1065 = vmatpush1.bf16.msra.mxu1 %v6471_v54 }
 0x22d   :  { %1031 = vmatprep.subr.bf16.mxu0 %v6476_v18  ;;  %1066 = vmatprep.subr.bf16.mxu1 %v6478_v10 }
 0x22f   :  { %4385 = vmatmul.mubr.msk.bf16.gmra.mrb[12].mxu0 %vm195_vm0, %v454_v39  ;;  %4391 = vmatmul.mubr.msk.bf16.gmra.mrb[20].mxu1 %vm195_vm0, %v452_v19 }
 0x230   :  { %1032 = vmatpush1.bf16.msra.mxu0 %v6485_v38  ;;  %726 = vmatprep.mubr.bf16.mxu1 %v7734_v56 }
 0x231   :  { %1033 = vmatprep.subr.bf16.mxu0 %v6488_v40  ;;  %1051 = vmatprep.mubr.bf16.mxu0 %v7734_v56 }
 0x232   :  { %1067 = vmatpush1.bf16.msra.mxu1 %v6491_v41 }
 0x233   :  { %1068 = vmatprep.subr.bf16.mxu1 %v6495_v43 }
 0x234   :  { %1034 = vmatpush1.bf16.msra.mxu0 %v6498_v42 }
 0x235   :  { %1172 = vmatprep.subr.bf16.mxu0 %v6353_v58 }
 0x236   :  { %1069 = vmatpush1.bf16.msra.mxu1 %v6504_v36 }
 0x237   :  { %4392 = vmatmul.mubr.msk.bf16.gmra.mrb[24].mxu1 %vm195_vm0, %v453_v29  ;;  %1052 = vmatmul.mubr.bf16.vlgmr.msra.gmra.mrb[0].mxu0 %v7734_v56  ;;  %v6625_v29 = vrot.slane %v495_v21, %v7736_v17 }
 0x238   :  { %736 = vmatprep.mubr.bf16.mxu1 %v7734_v56  ;;  %1070 = vmatprep.subr.bf16.mxu1 %v6508_v46 }
 0x239   :  { %1173 = vmatpush1.bf16.msra.mxu0 %v6401_v1  ;;  %1204 = vmatprep.mubr.bf16.mxu0 %v7734_v56 }
 0x23a   :  { %1071 = vmatpush1.bf16.msra.mxu1 %v6512_v22  ;;  %1174 = vmatprep.subr.bf16.mxu0 %v6405_v27 }
 0x23b   :  { %1072 = vmatprep.subr.bf16.mxu1 %v6516_v11 }
 0x23d   :  { %1175 = vmatpush1.bf16.msra.mxu0 %v6415_v59 }
 0x23e   :  { %1073 = vmatpush1.bf16.msra.mxu1 %v6523_v48  ;;  %1176 = vmatprep.subr.bf16.mxu0 %v6423_v3 }
 0x23f   :  { %4393 = vmatmul.mubr.msk.bf16.gmra.mrb[28].mxu1 %vm195_vm0, %v454_v39  ;;  %1074 = vmatprep.subr.bf16.mxu1 %v6527_v49 }
 0x240   :  { %746 = vmatprep.mubr.bf16.mxu1 %v7734_v56 }
 0x241   :  { %1177 = vmatpush1.bf16.msra.mxu0 %v6429_v5 }
 0x242   :  { %1075 = vmatpush1.bf16.msra.mxu1 %v6531_v50  ;;  %1178 = vmatprep.subr.bf16.mxu0 %v6434_v7 }
 0x243   :  { %1076 = vmatprep.subr.bf16.mxu1 %v6536_v51 }
 0x245   :  { %1179 = vmatpush1.bf16.msra.mxu0 %v6442_v13 }
 0x246   :  { %1077 = vmatpush1.bf16.msra.mxu1 %v6541_v52  ;;  %1180 = vmatprep.subr.bf16.mxu0 %v6449_v20 }
 0x247   :  { %4394 = vmatmul.mubr.msk.bf16.gmra.mrb[32].mxu1 %vm195_vm0, %v6368_v62  ;;  %1215 = vmatprep.subr.bf16.mxu1 %v6371_v2 }
 0x248   :  { %756 = vmatprep.mubr.bf16.mxu1 %v7734_v56 }
 0x249   :  { %1181 = vmatpush1.bf16.msra.mxu0 %v6456_v28 }
 0x24a   :  { %1182 = vmatprep.subr.bf16.mxu0 %v6459_v23 }
 0x24d   :  { %1183 = vmatpush1.bf16.msra.mxu0 %v6469_v33 }
 0x24e   :  { %1184 = vmatprep.subr.bf16.mxu0 %v6476_v18 }
 0x24f   :  { %4395 = vmatmul.mubr.msk.bf16.gmra.mrb[36].mxu1 %vm195_vm0, %v6383_v31 }
 0x250   :  { %766 = vmatprep.mubr.bf16.mxu1 %v7734_v56 }
 0x251   :  { %1185 = vmatpush1.bf16.msra.mxu0 %v6485_v38 }
 0x252   :  { %1186 = vmatprep.subr.bf16.mxu0 %v6488_v40 }
 0x255   :  { %1187 = vmatpush1.bf16.msra.mxu0 %v6498_v42 }
 0x256   :  { %1326 = vmatprep.subr.bf16.mxu0 %v6353_v58 }
 0x257   :  { %4396 = vmatmul.mubr.msk.bf16.gmra.mrb[40].mxu1 %vm195_vm0, %v6403_v26 }
 0x258   :  { %776 = vmatprep.mubr.bf16.mxu1 %v7734_v56 }
 0x25f   :  { %4397 = vmatmul.mubr.msk.bf16.gmra.mrb[44].mxu1 %vm195_vm0, %v6431_v6 }
 0x260   :  { %1094 = vmatprep.mubr.bf16.mxu1 %v7734_v56 }
 0x267   :  { %1095 = vmatmul.mubr.bf16.vlgmr.msra.gmra.mrb[16].mxu1 %v7734_v56 }
 0x268   :  { %1216 = vmatpush1.bf16.msra.mxu1 %v6454_v14  ;;  %1247 = vmatprep.mubr.bf16.mxu1 %v7734_v56 }
 0x269   :  { %1217 = vmatprep.subr.bf16.mxu1 %v6462_v32 }
 0x26c   :  { %1218 = vmatpush1.bf16.msra.mxu1 %v6471_v54 }
 0x26d   :  { %1219 = vmatprep.subr.bf16.mxu1 %v6478_v10 }
 0x270   :  { %1220 = vmatpush1.bf16.msra.mxu1 %v6491_v41 }
 0x271   :  { %1221 = vmatprep.subr.bf16.mxu1 %v6495_v43 }
 0x274   :  { %1222 = vmatpush1.bf16.msra.mxu1 %v6504_v36 }
 0x275   :  { %1223 = vmatprep.subr.bf16.mxu1 %v6508_v46 }
 0x278   :  { %1224 = vmatpush1.bf16.msra.mxu1 %v6512_v22 }
 0x279   :  { %1225 = vmatprep.subr.bf16.mxu1 %v6516_v11 }
 0x27c   :  { %1226 = vmatpush1.bf16.msra.mxu1 %v6523_v48 }
 0x27d   :  { %1227 = vmatprep.subr.bf16.mxu1 %v6527_v49 }
 0x280   :  { %1228 = vmatpush1.bf16.msra.mxu1 %v6531_v50 }
 0x281   :  { %1229 = vmatprep.subr.bf16.mxu1 %v6536_v51 }
 0x284   :  { %1230 = vmatpush1.bf16.msra.mxu1 %v6541_v52 }
 0x285   :  { %1369 = vmatprep.subr.bf16.mxu1 %v6371_v2 }
 0x2da   :  { %v6587_v62 = vpop.f32.mrb[0].mxu1 }
 0x2db   :  { %v6589_v31 = vpop.f32.mrb[1].mxu1 }
 0x2dc   :  { %v6591_v26 = vpop.f32.mrb[2].mxu1 }
 0x2dd   :  { %v6593_v0 = vpop.f32.mrb[3].mxu1 }
 0x2e2   :  { %v6595_v44 = vpop.f32.mrb[4].mxu1 }
 0x2e3   :  { %v6597_v53 = vpop.f32.mrb[5].mxu1 }
 0x2e4   :  { %v6599_v25 = vpop.f32.mrb[6].mxu1 }
 0x2e5   :  { %7744 = vst [vmem:[#allocation30_spill] sm:$0xff] %v6599_v25  ;;  %v6601_v15 = vpop.f32.mrb[7].mxu1 }
 0x2e6   :  { %7745 = vst [vmem:[#allocation31_spill] sm:$0xff] %v6601_v15 }
 0x2ea   :  { %v6603_v57 = vpop.f32.mrb[8].mxu1 }
 0x2eb   :  { %7746 = vst [vmem:[#allocation32_spill] sm:$0xff] %v6603_v57  ;;  %v6605_v60 = vpop.f32.mrb[9].mxu1 }
 0x2ec   :  { %7747 = vst [vmem:[#allocation33_spill] sm:$0xff] %v6605_v60  ;;  %v6607_v61 = vpop.f32.mrb[10].mxu1 }
 0x2ed   :  { %7748 = vst [vmem:[#allocation34_spill] sm:$0xff] %v6607_v61  ;;  %v6609_v63 = vpop.f32.mrb[11].mxu1 }
 0x2ee   :  { %7749 = vst [vmem:[#allocation35_spill] sm:$0xff] %v6609_v63 }
 0x2f2   :  { %v6611_v37 = vpop.f32.mrb[12].mxu1 }
 0x2f3   :  { %7750 = vst [vmem:[#allocation36_spill] sm:$0xff] %v6611_v37  ;;  %v6613_v4 = vpop.f32.mrb[13].mxu1 }
 0x2f4   :  { %7751 = vst [vmem:[#allocation37_spill] sm:$0xff] %v6613_v4  ;;  %v6615_v45 = vpop.f32.mrb[14].mxu1 }
 0x2f5   :  { %7752 = vst [vmem:[#allocation38_spill] sm:$0xff] %v6615_v45  ;;  %v6617_v19 = vpop.f32.mrb[15].mxu1 }
 0x2f6   :  { %7753 = vst [vmem:[#allocation39_spill] sm:$0xff] %v6617_v19 }
 0x30a   :  { %v1053_v6 = vpop.f32.mrb[0].mxu0 }
 0x30b   :  { %v1055_v8 = vpop.f32.mrb[1].mxu0  ;;  %v4649_v47 = vadd.f32 %v1053_v6, %v6625_v29  ;;  %v7739_v6 = vsub.s32 3, %v6619_v16 }
 0x30c   :  { %v1057_v9 = vpop.f32.mrb[2].mxu0  ;;  %v4650_v34 = vadd.f32 %v1055_v8, %v6629_v55 }
 0x30d   :  { %v1059_v35 = vpop.f32.mrb[3].mxu0  ;;  %v4430_v39 = vmul.f32 -1.442695, %v4649_v47  ;;  %v4651_v12 = vadd.f32 %v1057_v9, %v6625_v29  ;;  %v6639_v9 = vrot.slane %v495_v21, %v7738_v24 }
 0x30e   :  { %v4652_v30 = vadd.f32 %v1059_v35, %v6629_v55  ;;  %v4432_v56 = vmul.f32 -1.442695, %v4650_v34 }
 0x30f   :  { %5114 = vpow2.f32 %v4430_v39  ;;  %v4431_v45 = vmul.f32 -1.442695, %v4651_v12 }
 0x310   :  { %v4433_v19 = vmul.f32 -1.442695, %v4652_v30  ;;  %5116 = vpow2.f32 %v4432_v56  ;;  %v6643_v56 = vrot.slane %v495_v21, %v7739_v6 }
 0x312   :  { %5118 = vpow2.f32 %v4433_v19 }
 0x313   :  { %5120 = vpow2.f32 %v4431_v45 }
 0x319   :  { %v5115_v17 = vpop.eup %5114 }
 0x31a   :  { %v5117_v4 = vpop.eup %5116  ;;  %v1119_v8 = vadd.f32 1.0, %v5115_v17 }
 0x31b   :  { %v1131_v35 = vadd.f32 1.0, %v5117_v4 }
 0x31c   :  { %v5119_v37 = vpop.eup %5118  ;;  %5122 = vrcp.f32 %v1119_v8 }
 0x31d   :  { %v5121_v63 = vpop.eup %5120  ;;  %v1132_v47 = vadd.f32 1.0, %v5119_v37  ;;  %5124 = vrcp.f32 %v1131_v35 }
 0x31e   :  { %v1120_v45 = vadd.f32 1.0, %v5121_v63 }
 0x31f   :  { %5126 = vrcp.f32 %v1132_v47 }
 0x326   :  { %v5123_v8 = vpop.eup %5122 }
 0x327   :  { %v5125_v35 = vpop.eup %5124 }
 0x328   :  { %v1151_v6 = vmul.f32 0.0, %v5125_v35 }
 0x33a   :  { %v1096_v19 = vpop.f32.mrb[16].mxu1 }
 0x33b   :  { %v4697_v34 = vadd.f32 %v1096_v19, %v6639_v9  ;;  %v1098_v30 = vpop.f32.mrb[17].mxu1  ;;  %v5127_v19 = vpop.eup %5126 }
 0x33c   :  { %v4698_v17 = vadd.f32 %v1098_v30, %v6643_v56  ;;  %v1100_v4 = vpop.f32.mrb[18].mxu1  ;;  %v1152_v61 = vmul.f32 0.0, %v5127_v19 }
 0x33d   :  { %5128 = vtanh.f32 %v4697_v34  ;;  %v4699_v39 = vadd.f32 %v1100_v4, %v6639_v9  ;;  %v1102_v12 = vpop.f32.mrb[19].mxu1 }
 0x33e   :  { %5130 = vrcp.f32 %v1120_v45  ;;  %v4434_v37 = vmul.f32 -1.442695, %v4698_v17  ;;  %v4700_v21 = vadd.f32 %v1102_v12, %v6643_v56 }
 0x33f   :  { %5132 = vtanh.f32 %v4699_v39 }
 0x340   :  { %5134 = vpow2.f32 %v4434_v37  ;;  %v4435_v63 = vmul.f32 -1.442695, %v4700_v21 }
 0x342   :  { %5136 = vpow2.f32 %v4435_v63 }
 0x347   :  { %v5129_v24 = vpop.eup %5128 }
 0x348   :  { %v5131_v47 = vpop.eup %5130  ;;  %v1153_v30 = vmul.f32 %v5129_v24, %v5123_v8 }
 0x349   :  { %v5133_v16 = vpop.eup %5132 }
 0x34a   :  { %v5135_v34 = vpop.eup %5134  ;;  %v6649_v4 = vadd.f32 %v1153_v30, %v1151_v6  ;;  %v1154_v45 = vmul.f32 %v5133_v16, %v5131_v47 }
 0x34b   :  { %v1145_v17 = vadd.f32 1.0, %v5135_v34 }
 0x34c   :  { %v5137_v60 = vpop.eup %5136  ;;  %5138 = vtanh.f32 %v6649_v4  ;;  %v6652_v39 = vadd.f32 %v1154_v45, %v1152_v61 }
 0x34d   :  { %5140 = vrcp.f32 %v1145_v17  ;;  %v1146_v12 = vadd.f32 1.0, %v5137_v60  ;;  %v7756_v60 = vmov 0  }
 0x34e   :  { %5142 = vtanh.f32 %v6652_v39 }
 0x34f   :  { %5144 = vrcp.f32 %v1146_v12 }
 0x356   :  { %v5139_v37 = vpop.eup %5138 }
 0x357   :  { %v5141_v21 = vpop.eup %5140 }
 0x358   :  { %v5143_v24 = vpop.eup %5142  ;;  %v1159_v8 = vmul.f32 %v5141_v21, %v5139_v37 }
 0x359   :  { %v5145_v63 = vpop.eup %5144 }
 0x35a   :  { %v1160_v35 = vmul.f32 %v5145_v63, %v5143_v24 }
 0x35c   :  { %v6655_v6 = vpack.c.bf16 %v1160_v35, %v1159_v8 }
 0x35e   :  { %7755 = vst [vmem:[#allocation41_spill] sm:$0xff] %v6655_v6  ;;  %1205 = vmatmul.mubr.bf16.vlgmr.msra.gmra.mrb[4].mxu0 %v6655_v6  ;;  %1248 = vmatmul.mubr.bf16.vlgmr.msra.gmra.mrb[20].mxu1 %v6655_v6 }
 0x35f   :  { %1327 = vmatpush1.bf16.msra.mxu0 %v6401_v1  ;;  %1370 = vmatpush1.bf16.msra.mxu1 %v6454_v14 }
 0x360   :  { %1328 = vmatprep.subr.bf16.mxu0 %v6405_v27  ;;  %1371 = vmatprep.subr.bf16.mxu1 %v6462_v32 }
 0x361   :  { %1358 = vmatprep.mubr.bf16.mxu0 %v7756_v60  ;;  %1401 = vmatprep.mubr.bf16.mxu1 %v7756_v60 }
 0x363   :  { %1329 = vmatpush1.bf16.msra.mxu0 %v6415_v59  ;;  %1372 = vmatpush1.bf16.msra.mxu1 %v6471_v54 }
 0x364   :  { %1330 = vmatprep.subr.bf16.mxu0 %v6423_v3  ;;  %1373 = vmatprep.subr.bf16.mxu1 %v6478_v10 }
 0x367   :  { %1331 = vmatpush1.bf16.msra.mxu0 %v6429_v5  ;;  %1374 = vmatpush1.bf16.msra.mxu1 %v6491_v41 }
 0x368   :  { %1332 = vmatprep.subr.bf16.mxu0 %v6434_v7  ;;  %1375 = vmatprep.subr.bf16.mxu1 %v6495_v43 }
 0x36b   :  { %1333 = vmatpush1.bf16.msra.mxu0 %v6442_v13  ;;  %1376 = vmatpush1.bf16.msra.mxu1 %v6504_v36 }
 0x36c   :  { %1334 = vmatprep.subr.bf16.mxu0 %v6449_v20  ;;  %1377 = vmatprep.subr.bf16.mxu1 %v6508_v46 }
 0x36f   :  { %1335 = vmatpush1.bf16.msra.mxu0 %v6456_v28  ;;  %1378 = vmatpush1.bf16.msra.mxu1 %v6512_v22 }
 0x370   :  { %1336 = vmatprep.subr.bf16.mxu0 %v6459_v23  ;;  %1379 = vmatprep.subr.bf16.mxu1 %v6516_v11 }
 0x373   :  { %1337 = vmatpush1.bf16.msra.mxu0 %v6469_v33  ;;  %1380 = vmatpush1.bf16.msra.mxu1 %v6523_v48 }
 0x374   :  { %1338 = vmatprep.subr.bf16.mxu0 %v6476_v18  ;;  %1381 = vmatprep.subr.bf16.mxu1 %v6527_v49 }
 0x377   :  { %1339 = vmatpush1.bf16.msra.mxu0 %v6485_v38  ;;  %1382 = vmatpush1.bf16.msra.mxu1 %v6531_v50 }
 0x378   :  { %1340 = vmatprep.subr.bf16.mxu0 %v6488_v40  ;;  %1383 = vmatprep.subr.bf16.mxu1 %v6536_v51 }
 0x37b   :  { %1341 = vmatpush1.bf16.msra.mxu0 %v6498_v42  ;;  %1384 = vmatpush1.bf16.msra.mxu1 %v6541_v52 }
 0x37c   :  { %1480 = vmatprep.subr.bf16.mxu0 %v6353_v58  ;;  %1523 = vmatprep.subr.bf16.mxu1 %v6371_v2 }
 0x431   :  { %v1206_v61 = vpop.f32.mrb[4].mxu0  ;;  %v1249_v16 = vpop.f32.mrb[20].mxu1 }
 0x432   :  { %v4653_v19 = vadd.f32 %v1206_v61, %v6625_v29  ;;  %v1208_v47 = vpop.f32.mrb[5].mxu0  ;;  %v1251_v30 = vpop.f32.mrb[21].mxu1 }
 0x433   :  { %v4654_v34 = vadd.f32 %v1208_v47, %v6629_v55  ;;  %v1210_v45 = vpop.f32.mrb[6].mxu0  ;;  %v1253_v17 = vpop.f32.mrb[22].mxu1  ;;  %v4702_v61 = vadd.f32 %v1251_v30, %v6643_v56  ;;  %v4701_v47 = vadd.f32 %v1249_v16, %v6639_v9 }
 0x434   :  { %v4436_v12 = vmul.f32 -1.442695, %v4653_v19  ;;  %v4655_v37 = vadd.f32 %v1210_v45, %v6625_v29  ;;  %v1212_v21 = vpop.f32.mrb[7].mxu0  ;;  %v1255_v24 = vpop.f32.mrb[23].mxu1  ;;  %v4703_v45 = vadd.f32 %v1253_v17, %v6639_v9 }
 0x435   :  { %v4438_v63 = vmul.f32 -1.442695, %v4654_v34  ;;  %v4656_v8 = vadd.f32 %v1212_v21, %v6629_v55  ;;  %v4440_v57 = vmul.f32 -1.442695, %v4702_v61  ;;  %v4704_v19 = vadd.f32 %v1255_v24, %v6643_v56 }
 0x436   :  { %5146 = vpow2.f32 %v4436_v12  ;;  %v4437_v35 = vmul.f32 -1.442695, %v4655_v37 }
 0x437   :  { %5148 = vpow2.f32 %v4438_v63  ;;  %v4439_v6 = vmul.f32 -1.442695, %v4656_v8  ;;  %v4441_v12 = vmul.f32 -1.442695, %v4704_v19 }
 0x438   :  { %5150 = vpow2.f32 %v4437_v35 }
 0x439   :  { %5152 = vpow2.f32 %v4439_v6 }
 0x43a   :  { %5154 = vtanh.f32 %v4701_v47 }
 0x43b   :  { %5156 = vpow2.f32 %v4440_v57 }
 0x43c   :  { %5158 = vtanh.f32 %v4703_v45 }
 0x440   :  { %v5147_v15 = vpop.eup %5146 }
 0x441   :  { %v5149_v34 = vpop.eup %5148  ;;  %v1272_v25 = vadd.f32 1.0, %v5147_v15 }
 0x442   :  { %v1284_v37 = vadd.f32 1.0, %v5149_v34  ;;  %v5151_v21 = vpop.eup %5150 }
 0x443   :  { %5160 = vrcp.f32 %v1272_v25  ;;  %v1273_v30 = vadd.f32 1.0, %v5151_v21  ;;  %v5153_v6 = vpop.eup %5152 }
 0x444   :  { %5162 = vrcp.f32 %v1284_v37  ;;  %v1285_v16 = vadd.f32 1.0, %v5153_v6  ;;  %v5155_v24 = vpop.eup %5154 }
 0x445   :  { %5164 = vpow2.f32 %v4441_v12  ;;  %v5157_v63 = vpop.eup %5156 }
 0x446   :  { %5166 = vrcp.f32 %v1273_v30  ;;  %v5159_v17 = vpop.eup %5158  ;;  %v1298_v19 = vadd.f32 1.0, %v5157_v63 }
 0x447   :  { %5168 = vrcp.f32 %v1285_v16 }
 0x448   :  { %5170 = vrcp.f32 %v1298_v19 }
 0x44d   :  { %v5161_v8 = vpop.eup %5160 }
 0x44e   :  { %v5163_v35 = vpop.eup %5162  ;;  %v1306_v61 = vmul.f32 %v5161_v8, %v5155_v24 }
 0x44f   :  { %v5165_v15 = vpop.eup %5164  ;;  %v1304_v57 = vmul.f32 %v5163_v35, %v6649_v4 }
 0x450   :  { %v5167_v47 = vpop.eup %5166  ;;  %v1299_v37 = vadd.f32 1.0, %v5165_v15 }
 0x451   :  { %v6702_v45 = vadd.f32 %v1306_v61, %v1304_v57  ;;  %v1307_v25 = vmul.f32 %v5167_v47, %v5159_v17  ;;  %v5169_v34 = vpop.eup %5168 }
 0x452   :  { %v1305_v12 = vmul.f32 %v5169_v34, %v6652_v39  ;;  %v5171_v30 = vpop.eup %5170 }
 0x453   :  { %5172 = vtanh.f32 %v6702_v45 }
 0x454   :  { %v6706_v21 = vadd.f32 %v1307_v25, %v1305_v12  ;;  %5174 = vrcp.f32 %v1299_v37 }
 0x456   :  { %5176 = vtanh.f32 %v6706_v21 }
 0x45d   :  { %v5173_v6 = vpop.eup %5172 }
 0x45e   :  { %v5175_v4 = vpop.eup %5174  ;;  %v1312_v24 = vmul.f32 %v5173_v6, %v5171_v30 }
 0x460   :  { %v5177_v16 = vpop.eup %5176 }
 0x461   :  { %v1313_v63 = vmul.f32 %v5177_v16, %v5175_v4 }
 0x463   :  { %v6709_v8 = vpack.c.bf16 %v1313_v63, %v1312_v24 }
 0x465   :  { %1359 = vmatmul.mubr.bf16.vlgmr.msra.gmra.mrb[8].mxu0 %v6709_v8  ;;  %1402 = vmatmul.mubr.bf16.vlgmr.msra.gmra.mrb[24].mxu1 %v6709_v8 }
 0x466   :  { %1481 = vmatpush1.bf16.msra.mxu0 %v6401_v1  ;;  %1524 = vmatpush1.bf16.msra.mxu1 %v6454_v14 }
 0x467   :  { %1482 = vmatprep.subr.bf16.mxu0 %v6405_v27  ;;  %1525 = vmatprep.subr.bf16.mxu1 %v6462_v32 }
 0x468   :  { %1512 = vmatprep.mubr.bf16.mxu0 %v7756_v60  ;;  %1555 = vmatprep.mubr.bf16.mxu1 %v7756_v60 }
 0x46a   :  { %1483 = vmatpush1.bf16.msra.mxu0 %v6415_v59  ;;  %1526 = vmatpush1.bf16.msra.mxu1 %v6471_v54 }
 0x46b   :  { %1484 = vmatprep.subr.bf16.mxu0 %v6423_v3  ;;  %1527 = vmatprep.subr.bf16.mxu1 %v6478_v10 }
 0x46e   :  { %1485 = vmatpush1.bf16.msra.mxu0 %v6429_v5  ;;  %1528 = vmatpush1.bf16.msra.mxu1 %v6491_v41 }
 0x46f   :  { %1486 = vmatprep.subr.bf16.mxu0 %v6434_v7  ;;  %1529 = vmatprep.subr.bf16.mxu1 %v6495_v43 }
 0x472   :  { %1487 = vmatpush1.bf16.msra.mxu0 %v6442_v13  ;;  %1530 = vmatpush1.bf16.msra.mxu1 %v6504_v36 }
 0x473   :  { %1488 = vmatprep.subr.bf16.mxu0 %v6449_v20  ;;  %1531 = vmatprep.subr.bf16.mxu1 %v6508_v46 }
 0x476   :  { %1489 = vmatpush1.bf16.msra.mxu0 %v6456_v28  ;;  %1532 = vmatpush1.bf16.msra.mxu1 %v6512_v22 }
 0x477   :  { %1490 = vmatprep.subr.bf16.mxu0 %v6459_v23  ;;  %1533 = vmatprep.subr.bf16.mxu1 %v6516_v11 }
 0x47a   :  { %1491 = vmatpush1.bf16.msra.mxu0 %v6469_v33  ;;  %1534 = vmatpush1.bf16.msra.mxu1 %v6523_v48 }
 0x47b   :  { %1492 = vmatprep.subr.bf16.mxu0 %v6476_v18  ;;  %1535 = vmatprep.subr.bf16.mxu1 %v6527_v49 }
 0x47e   :  { %1493 = vmatpush1.bf16.msra.mxu0 %v6485_v38  ;;  %1536 = vmatpush1.bf16.msra.mxu1 %v6531_v50 }
 0x47f   :  { %1494 = vmatprep.subr.bf16.mxu0 %v6488_v40  ;;  %1537 = vmatprep.subr.bf16.mxu1 %v6536_v51 }
 0x482   :  { %1495 = vmatpush1.bf16.msra.mxu0 %v6498_v42  ;;  %1538 = vmatpush1.bf16.msra.mxu1 %v6541_v52 }
 0x483   :  { %1634 = vmatprep.subr.bf16.mxu0 %v6353_v58  ;;  %1677 = vmatprep.subr.bf16.mxu1 %v6371_v2 }
 0x538   :  { %v1360_v39 = vpop.f32.mrb[8].mxu0  ;;  %v1403_v17 = vpop.f32.mrb[24].mxu1 }
 0x539   :  { %v4657_v35 = vadd.f32 %v1360_v39, %v6625_v29  ;;  %v1362_v61 = vpop.f32.mrb[9].mxu0  ;;  %v1405_v15 = vpop.f32.mrb[25].mxu1  ;;  %v4705_v16 = vadd.f32 %v1403_v17, %v6639_v9 }
 0x53a   :  { %v4658_v57 = vadd.f32 %v1362_v61, %v6629_v55  ;;  %v1364_v47 = vpop.f32.mrb[10].mxu0  ;;  %v1407_v19 = vpop.f32.mrb[26].mxu1  ;;  %v4706_v4 = vadd.f32 %v1405_v15, %v6643_v56 }
 0x53b   :  { %v4442_v25 = vmul.f32 -1.442695, %v4657_v35  ;;  %v4659_v34 = vadd.f32 %v1364_v47, %v6625_v29  ;;  %v1366_v37 = vpop.f32.mrb[11].mxu0  ;;  %v1409_v12 = vpop.f32.mrb[27].mxu1  ;;  %v4707_v39 = vadd.f32 %v1407_v19, %v6639_v9 }
 0x53c   :  { %v4444_v30 = vmul.f32 -1.442695, %v4658_v57  ;;  %v4660_v58 = vadd.f32 %v1366_v37, %v6629_v55  ;;  %v4446_v24 = vmul.f32 -1.442695, %v4706_v4  ;;  %v4708_v63 = vadd.f32 %v1409_v12, %v6643_v56 }
 0x53d   :  { %5178 = vpow2.f32 %v4442_v25  ;;  %v4443_v2 = vmul.f32 -1.442695, %v4659_v34 }
 0x53e   :  { %5180 = vpow2.f32 %v4444_v30  ;;  %v4445_v6 = vmul.f32 -1.442695, %v4660_v58  ;;  %v4447_v47 = vmul.f32 -1.442695, %v4708_v63 }
 0x53f   :  { %5182 = vpow2.f32 %v4443_v2 }
 0x540   :  { %5184 = vpow2.f32 %v4445_v6 }
 0x541   :  { %5186 = vtanh.f32 %v4705_v16 }
 0x542   :  { %5188 = vpow2.f32 %v4446_v24 }
 0x543   :  { %5190 = vtanh.f32 %v4707_v39 }
 0x547   :  { %v5179_v35 = vpop.eup %5178 }
 0x548   :  { %v5181_v61 = vpop.eup %5180  ;;  %v1426_v57 = vadd.f32 1.0, %v5179_v35 }
 0x549   :  { %v1438_v25 = vadd.f32 1.0, %v5181_v61  ;;  %v5183_v34 = vpop.eup %5182 }
 0x54a   :  { %5192 = vrcp.f32 %v1426_v57  ;;  %v1427_v15 = vadd.f32 1.0, %v5183_v34  ;;  %v5185_v37 = vpop.eup %5184 }
 0x54b   :  { %5194 = vrcp.f32 %v1438_v25  ;;  %v1439_v17 = vadd.f32 1.0, %v5185_v37  ;;  %v5187_v12 = vpop.eup %5186 }
 0x54c   :  { %5196 = vpow2.f32 %v4447_v47  ;;  %v5189_v30 = vpop.eup %5188 }
 0x54d   :  { %5198 = vrcp.f32 %v1427_v15  ;;  %v5191_v19 = vpop.eup %5190  ;;  %v1452_v63 = vadd.f32 1.0, %v5189_v30 }
 0x54e   :  { %5200 = vrcp.f32 %v1439_v17 }
 0x54f   :  { %5202 = vrcp.f32 %v1452_v63 }
 0x554   :  { %v5193_v58 = vpop.eup %5192 }
 0x555   :  { %v5195_v2 = vpop.eup %5194  ;;  %v1460_v6 = vmul.f32 %v5193_v58, %v5187_v12 }
 0x556   :  { %v5197_v4 = vpop.eup %5196  ;;  %v1458_v16 = vmul.f32 %v5195_v2, %v6702_v45 }
 0x557   :  { %v5199_v24 = vpop.eup %5198  ;;  %v1453_v57 = vadd.f32 1.0, %v5197_v4 }
 0x558   :  { %v6756_v39 = vadd.f32 %v1460_v6, %v1458_v16  ;;  %v1461_v35 = vmul.f32 %v5199_v24, %v5191_v19  ;;  %v5201_v61 = vpop.eup %5200 }
 0x559   :  { %v1459_v47 = vmul.f32 %v5201_v61, %v6706_v21  ;;  %v5203_v34 = vpop.eup %5202 }
 0x55a   :  { %5204 = vtanh.f32 %v6756_v39 }
 0x55b   :  { %v6760_v25 = vadd.f32 %v1461_v35, %v1459_v47  ;;  %5206 = vrcp.f32 %v1453_v57 }
 0x55d   :  { %5208 = vtanh.f32 %v6760_v25 }
 0x564   :  { %v5205_v15 = vpop.eup %5204 }
 0x565   :  { %v5207_v45 = vpop.eup %5206  ;;  %v1466_v17 = vmul.f32 %v5205_v15, %v5203_v34 }
 0x567   :  { %v5209_v37 = vpop.eup %5208 }
 0x568   :  { %v1467_v12 = vmul.f32 %v5209_v37, %v5207_v45 }
 0x56a   :  { %v6763_v30 = vpack.c.bf16 %v1467_v12, %v1466_v17 }
 0x56c   :  { %1513 = vmatmul.mubr.bf16.vlgmr.msra.gmra.mrb[12].mxu0 %v6763_v30  ;;  %1556 = vmatmul.mubr.bf16.vlgmr.msra.gmra.mrb[28].mxu1 %v6763_v30 }
 0x56d   :  { %1635 = vmatpush1.bf16.msra.mxu0 %v6401_v1  ;;  %1678 = vmatpush1.bf16.msra.mxu1 %v6454_v14  ;;  %v6799_v1 = vld [vmem:[#allocation12 + $0x4] ss:$16 sps:$4 sm:$0xff]  }
 0x56e   :  { %1636 = vmatprep.subr.bf16.mxu0 %v6405_v27  ;;  %1679 = vmatprep.subr.bf16.mxu1 %v6462_v32  ;;  %v6802_v27 = vld [vmem:[#allocation12 + $0xc] ss:$16 sps:$4 sm:$0xff]  }
 0x56f   :  { %1666 = vmatprep.mubr.bf16.mxu0 %v7756_v60  ;;  %1709 = vmatprep.mubr.bf16.mxu1 %v7756_v60 }
 0x571   :  { %1637 = vmatpush1.bf16.msra.mxu0 %v6415_v59  ;;  %1680 = vmatpush1.bf16.msra.mxu1 %v6471_v54 }
 0x572   :  { %1638 = vmatprep.subr.bf16.mxu0 %v6423_v3  ;;  %1681 = vmatprep.subr.bf16.mxu1 %v6478_v10 }
 0x575   :  { %1639 = vmatpush1.bf16.msra.mxu0 %v6429_v5  ;;  %1682 = vmatpush1.bf16.msra.mxu1 %v6491_v41 }
 0x576   :  { %1640 = vmatprep.subr.bf16.mxu0 %v6434_v7  ;;  %1683 = vmatprep.subr.bf16.mxu1 %v6495_v43 }
 0x579   :  { %1641 = vmatpush1.bf16.msra.mxu0 %v6442_v13  ;;  %1684 = vmatpush1.bf16.msra.mxu1 %v6504_v36 }
 0x57a   :  { %1642 = vmatprep.subr.bf16.mxu0 %v6449_v20  ;;  %1685 = vmatprep.subr.bf16.mxu1 %v6508_v46 }
 0x57d   :  { %1643 = vmatpush1.bf16.msra.mxu0 %v6456_v28  ;;  %1686 = vmatpush1.bf16.msra.mxu1 %v6512_v22 }
 0x57e   :  { %1644 = vmatprep.subr.bf16.mxu0 %v6459_v23  ;;  %1687 = vmatprep.subr.bf16.mxu1 %v6516_v11 }
 0x581   :  { %1645 = vmatpush1.bf16.msra.mxu0 %v6469_v33  ;;  %1688 = vmatpush1.bf16.msra.mxu1 %v6523_v48 }
 0x582   :  { %1646 = vmatprep.subr.bf16.mxu0 %v6476_v18  ;;  %1689 = vmatprep.subr.bf16.mxu1 %v6527_v49 }
 0x585   :  { %1647 = vmatpush1.bf16.msra.mxu0 %v6485_v38  ;;  %1690 = vmatpush1.bf16.msra.mxu1 %v6531_v50 }
 0x586   :  { %1648 = vmatprep.subr.bf16.mxu0 %v6488_v40  ;;  %1691 = vmatprep.subr.bf16.mxu1 %v6536_v51 }
 0x589   :  { %1649 = vmatpush1.bf16.msra.mxu0 %v6498_v42  ;;  %1692 = vmatpush1.bf16.msra.mxu1 %v6541_v52 }
 0x58a   :  { %1788 = vmatprep.subr.bf16.mxu0 %v6799_v1  ;;  %1831 = vmatprep.subr.bf16.mxu1 %v6802_v27 }
 0x63f   :  { %v1514_v59 = vpop.f32.mrb[12].mxu0  ;;  %v1557_v3 = vpop.f32.mrb[28].mxu1 }
 0x640   :  { %v4661_v5 = vadd.f32 %v1514_v59, %v6625_v29  ;;  %v1516_v7 = vpop.f32.mrb[13].mxu0  ;;  %v1559_v13 = vpop.f32.mrb[29].mxu1  ;;  %v4709_v21 = vadd.f32 %v1557_v3, %v6639_v9 }
 0x641   :  { %v4662_v20 = vadd.f32 %v1516_v7, %v6629_v55  ;;  %v1518_v14 = vpop.f32.mrb[14].mxu0  ;;  %v1561_v28 = vpop.f32.mrb[30].mxu1  ;;  %v4710_v42 = vadd.f32 %v1559_v13, %v6643_v56 }
 0x642   :  { %v4448_v23 = vmul.f32 -1.442695, %v4661_v5  ;;  %v4663_v32 = vadd.f32 %v1518_v14, %v6625_v29  ;;  %v1520_v33 = vpop.f32.mrb[15].mxu0  ;;  %v1563_v54 = vpop.f32.mrb[31].mxu1  ;;  %v4711_v2 = vadd.f32 %v1561_v28, %v6639_v9 }
 0x643   :  { %v4450_v18 = vmul.f32 -1.442695, %v4662_v20  ;;  %v4664_v10 = vadd.f32 %v1520_v33, %v6629_v55  ;;  %v4452_v19 = vmul.f32 -1.442695, %v4710_v42  ;;  %v4712_v58 = vadd.f32 %v1563_v54, %v6643_v56  ;;  %v6828_v42 = vld [vmem:[#allocation12 + $0x8] ss:$16 sps:$4 sm:$0xff]  }
 0x644   :  { %5210 = vpow2.f32 %v4448_v23  ;;  %v4449_v38 = vmul.f32 -1.442695, %v4663_v32 }
 0x645   :  { %5212 = vpow2.f32 %v4450_v18  ;;  %v4451_v40 = vmul.f32 -1.442695, %v4664_v10  ;;  %v4453_v24 = vmul.f32 -1.442695, %v4712_v58  ;;  %v6839_v58 = vld [vmem:[#allocation12 + $0x20] ss:$16 sps:$4 sm:$0xff]  }
 0x646   :  { %5214 = vpow2.f32 %v4449_v38 }
 0x647   :  { %5216 = vpow2.f32 %v4451_v40 }
 0x648   :  { %5218 = vtanh.f32 %v4709_v21  ;;  %v6831_v21 = vld [vmem:[#allocation12 + $0x24] ss:$16 sps:$4 sm:$0xff]  }
 0x649   :  { %5220 = vpow2.f32 %v4452_v19  ;;  %v6834_v19 = vld [vmem:[#allocation12 + $0x2c] ss:$16 sps:$4 sm:$0xff]  }
 0x64a   :  { %5222 = vtanh.f32 %v4711_v2  ;;  %v6842_v2 = vld [vmem:[#allocation12 + $0x28] ss:$16 sps:$4 sm:$0xff]  }
 0x64e   :  { %v5211_v6 = vpop.eup %5210 }
 0x64f   :  { %v5213_v4 = vpop.eup %5212  ;;  %v1580_v16 = vadd.f32 1.0, %v5211_v6  ;;  %v6845_v6 = vld [vmem:[#allocation12 + $0x44] ss:$16 sps:$4 sm:$0xff]  }
 0x650   :  { %v1592_v63 = vadd.f32 1.0, %v5213_v4  ;;  %v5215_v35 = vpop.eup %5214  ;;  %v6848_v4 = vld [vmem:[#allocation12 + $0x4c] ss:$16 sps:$4 sm:$0xff]  }
 0x651   :  { %5224 = vrcp.f32 %v1580_v16  ;;  %v1581_v61 = vadd.f32 1.0, %v5215_v35  ;;  %v5217_v57 = vpop.eup %5216  ;;  %v6851_v16 = vld [vmem:[#allocation12 + $0x40] ss:$16 sps:$4 sm:$0xff]   ;;  %v6863_v35 = vld [vmem:[#allocation12 + $0x84] ss:$16 sps:$4 sm:$0xff]  }
 0x652   :  { %5226 = vrcp.f32 %v1592_v63  ;;  %v1593_v47 = vadd.f32 1.0, %v5217_v57  ;;  %v5219_v34 = vpop.eup %5218  ;;  %v6859_v63 = vld [vmem:[#allocation12 + $0x60] ss:$16 sps:$4 sm:$0xff]  }
 0x653   :  { %5228 = vpow2.f32 %v4453_v24  ;;  %v5221_v15 = vpop.eup %5220  ;;  %v6855_v24 = vld [vmem:[#allocation12 + $0x64] ss:$16 sps:$4 sm:$0xff]  }
 0x654   :  { %5230 = vrcp.f32 %v1581_v61  ;;  %v5223_v45 = vpop.eup %5222  ;;  %v1606_v7 = vadd.f32 1.0, %v5221_v15  ;;  %v6867_v61 = vld [vmem:[#allocation12 + $0x80] ss:$16 sps:$4 sm:$0xff]  }
 0x655   :  { %5232 = vrcp.f32 %v1593_v47 }
 0x656   :  { %5234 = vrcp.f32 %v1606_v7 }
 0x65b   :  { %v5225_v37 = vpop.eup %5224 }
 0x65c   :  { %v5227_v17 = vpop.eup %5226  ;;  %v1614_v12 = vmul.f32 %v5225_v37, %v5219_v34 }
 0x65d   :  { %v5229_v59 = vpop.eup %5228  ;;  %v1612_v3 = vmul.f32 %v5227_v17, %v6756_v39 }
 0x65e   :  { %v5231_v5 = vpop.eup %5230  ;;  %v1607_v28 = vadd.f32 1.0, %v5229_v59 }
 0x65f   :  { %v6814_v13 = vadd.f32 %v1614_v12, %v1612_v3  ;;  %v1615_v20 = vmul.f32 %v5231_v5, %v5223_v45  ;;  %v5233_v14 = vpop.eup %5232 }
 0x660   :  { %v1613_v23 = vmul.f32 %v5233_v14, %v6760_v25  ;;  %v5235_v33 = vpop.eup %5234  ;;  %v6825_v25 = vld [vmem:[#allocation12] ss:$16 sps:$4 sm:$0xff]  }
 0x661   :  { %5236 = vtanh.f32 %v6814_v13 }
 0x662   :  { %v6818_v32 = vadd.f32 %v1615_v20, %v1613_v23  ;;  %5238 = vrcp.f32 %v1607_v28 }
 0x664   :  { %5240 = vtanh.f32 %v6818_v32 }
 0x66b   :  { %v5237_v54 = vpop.eup %5236 }
 0x66c   :  { %v5239_v39 = vpop.eup %5238  ;;  %v1620_v10 = vmul.f32 %v5237_v54, %v5235_v33 }
 0x66e   :  { %v5241_v18 = vpop.eup %5240 }
 0x66f   :  { %v1621_v38 = vmul.f32 %v5241_v18, %v5239_v39 }
 0x671   :  { %v6821_v40 = vpack.c.bf16 %v1621_v38, %v1620_v10 }
 0x673   :  { %1667 = vmatmul.mubr.bf16.vlgmr.msra.gmra.mrb[16].mxu0 %v6821_v40  ;;  %1710 = vmatmul.mubr.bf16.vlgmr.msra.gmra.mrb[32].mxu1 %v6821_v40 }
 0x674   :  { %1789 = vmatpush1.bf16.msra.mxu0 %v6825_v25  ;;  %1832 = vmatpush1.bf16.msra.mxu1 %v6828_v42 }
 0x675   :  { %1790 = vmatprep.subr.bf16.mxu0 %v6831_v21  ;;  %1833 = vmatprep.subr.bf16.mxu1 %v6834_v19 }
 0x676   :  { %1820 = vmatprep.mubr.bf16.mxu0 %v7756_v60  ;;  %1863 = vmatprep.mubr.bf16.mxu1 %v7756_v60 }
 0x678   :  { %1791 = vmatpush1.bf16.msra.mxu0 %v6839_v58  ;;  %1834 = vmatpush1.bf16.msra.mxu1 %v6842_v2 }
 0x679   :  { %1792 = vmatprep.subr.bf16.mxu0 %v6845_v6  ;;  %1835 = vmatprep.subr.bf16.mxu1 %v6848_v4 }
 0x67c   :  { %1793 = vmatpush1.bf16.msra.mxu0 %v6851_v16  ;;  %1836 = vmatpush1.bf16.msra.mxu1 %v6491_v41  ;;  %v6871_v41 = vld [vmem:[#allocation12 + $0xa4] ss:$16 sps:$4 sm:$0xff]  }
 0x67d   :  { %1794 = vmatprep.subr.bf16.mxu0 %v6855_v24  ;;  %1837 = vmatprep.subr.bf16.mxu1 %v6495_v43  ;;  %v6875_v43 = vld [vmem:[#allocation12 + $0xa0] ss:$16 sps:$4 sm:$0xff]  }
 0x680   :  { %1795 = vmatpush1.bf16.msra.mxu0 %v6859_v63  ;;  %1838 = vmatpush1.bf16.msra.mxu1 %v6504_v36  ;;  %v6879_v36 = vld [vmem:[#allocation12 + $0xc4] ss:$16 sps:$4 sm:$0xff]  }
 0x681   :  { %1796 = vmatprep.subr.bf16.mxu0 %v6863_v35  ;;  %1839 = vmatprep.subr.bf16.mxu1 %v6508_v46  ;;  %v6883_v46 = vld [vmem:[#allocation12 + $0xc0] ss:$16 sps:$4 sm:$0xff]  }
 0x684   :  { %1797 = vmatpush1.bf16.msra.mxu0 %v6867_v61  ;;  %1840 = vmatpush1.bf16.msra.mxu1 %v6512_v22  ;;  %v6887_v22 = vld [vmem:[#allocation12 + $0xe4] ss:$16 sps:$4 sm:$0xff]  }
 0x685   :  { %1798 = vmatprep.subr.bf16.mxu0 %v6871_v41  ;;  %1841 = vmatprep.subr.bf16.mxu1 %v6516_v11  ;;  %v6891_v11 = vld [vmem:[#allocation12 + $0xe0] ss:$16 sps:$4 sm:$0xff]  }
 0x688   :  { %1799 = vmatpush1.bf16.msra.mxu0 %v6875_v43  ;;  %1842 = vmatpush1.bf16.msra.mxu1 %v6523_v48  ;;  %v636_v48 = vadd.f32 %v6587_v62, %v6625_v29 }
 0x689   :  { %1800 = vmatprep.subr.bf16.mxu0 %v6879_v36  ;;  %1843 = vmatprep.subr.bf16.mxu1 %v6527_v49  ;;  %v638_v49 = vadd.f32 %v6589_v31, %v6629_v55 }
 0x68c   :  { %1801 = vmatpush1.bf16.msra.mxu0 %v6883_v46  ;;  %1844 = vmatpush1.bf16.msra.mxu1 %v6531_v50 }
 0x68d   :  { %1802 = vmatprep.subr.bf16.mxu0 %v6887_v22  ;;  %1845 = vmatprep.subr.bf16.mxu1 %v6536_v51  ;;  %v640_v51 = vadd.f32 %v6591_v26, %v6625_v29 }
 0x690   :  { %1803 = vmatpush1.bf16.msra.mxu0 %v6891_v11  ;;  %1846 = vmatpush1.bf16.msra.mxu1 %v6541_v52  ;;  %v642_v52 = vadd.f32 %v6593_v0, %v6629_v55 }
 0x691   :  { %1942 = vmatprep.subr.bf16.mxu0 %v6799_v1  ;;  %1985 = vmatprep.subr.bf16.mxu1 %v6802_v27 }
 0x746   :  { %v1668_v50 = vpop.f32.mrb[16].mxu0  ;;  %v1711_v57 = vpop.f32.mrb[32].mxu1 }
 0x747   :  { %v1720_v47 = vadd.f32 %v1668_v50, %v636_v48  ;;  %v1670_v34 = vpop.f32.mrb[17].mxu0  ;;  %v1713_v15 = vpop.f32.mrb[33].mxu1  ;;  %v4713_v14 = vadd.f32 %v1711_v57, %v6639_v9 }
 0x748   :  { %v1721_v45 = vadd.f32 %v1670_v34, %v638_v49  ;;  %v1672_v37 = vpop.f32.mrb[18].mxu0  ;;  %v1715_v17 = vpop.f32.mrb[34].mxu1  ;;  %v4714_v26 = vadd.f32 %v1713_v15, %v6643_v56 }
 0x749   :  { %v4454_v12 = vmul.f32 -1.442695, %v1720_v47  ;;  %v1724_v59 = vadd.f32 %v1672_v37, %v640_v51  ;;  %v1674_v62 = vpop.f32.mrb[19].mxu0  ;;  %v1717_v3 = vpop.f32.mrb[35].mxu1  ;;  %v4715_v23 = vadd.f32 %v1715_v17, %v6639_v9 }
 0x74a   :  { %v4456_v5 = vmul.f32 -1.442695, %v1721_v45  ;;  %v1725_v31 = vadd.f32 %v1674_v62, %v642_v52  ;;  %v4458_v0 = vmul.f32 -1.442695, %v4714_v26  ;;  %v4716_v28 = vadd.f32 %v1717_v3, %v6643_v56 }
 0x74b   :  { %5242 = vpow2.f32 %v4454_v12  ;;  %v4455_v7 = vmul.f32 -1.442695, %v1724_v59 }
 0x74c   :  { %5244 = vpow2.f32 %v4456_v5  ;;  %v4457_v20 = vmul.f32 -1.442695, %v1725_v31  ;;  %v4459_v18 = vmul.f32 -1.442695, %v4716_v28 }
 0x74d   :  { %5246 = vpow2.f32 %v4455_v7 }
 0x74e   :  { %5248 = vpow2.f32 %v4457_v20 }
 0x74f   :  { %5250 = vtanh.f32 %v4713_v14 }
 0x750   :  { %5252 = vpow2.f32 %v4458_v0 }
 0x751   :  { %5254 = vtanh.f32 %v4715_v23 }
 0x755   :  { %v5243_v33 = vpop.eup %5242 }
 0x756   :  { %v5245_v54 = vpop.eup %5244  ;;  %v1734_v39 = vadd.f32 1.0, %v5243_v33  ;;  %v6936_v33 = vld [vmem:[#allocation12 + $0x6c] ss:$16 sps:$4 sm:$0xff]  }
 0x757   :  { %v1746_v10 = vadd.f32 1.0, %v5245_v54  ;;  %v5247_v38 = vpop.eup %5246  ;;  %v6940_v54 = vld [vmem:[#allocation12 + $0x68] ss:$16 sps:$4 sm:$0xff]  }
 0x758   :  { %5256 = vrcp.f32 %v1734_v39  ;;  %v1735_v48 = vadd.f32 1.0, %v5247_v38  ;;  %v5249_v49 = vpop.eup %5248  ;;  %v6944_v39 = vld [vmem:[#allocation12 + $0x8c] ss:$16 sps:$4 sm:$0xff]   ;;  %v6956_v38 = vld [vmem:[#allocation12 + $0xa8] ss:$16 sps:$4 sm:$0xff]  }
 0x759   :  { %5258 = vrcp.f32 %v1746_v10  ;;  %v1747_v50 = vadd.f32 1.0, %v5249_v49  ;;  %v5251_v57 = vpop.eup %5250  ;;  %v6952_v10 = vld [vmem:[#allocation12 + $0xac] ss:$16 sps:$4 sm:$0xff]   ;;  %v6964_v49 = vld [vmem:[#allocation12 + $0xc8] ss:$16 sps:$4 sm:$0xff]  }
 0x75a   :  { %5260 = vpow2.f32 %v4459_v18  ;;  %v5253_v51 = vpop.eup %5252  ;;  %v6948_v18 = vld [vmem:[#allocation12 + $0x88] ss:$16 sps:$4 sm:$0xff]  }
 0x75b   :  { %5262 = vrcp.f32 %v1735_v48  ;;  %v5255_v47 = vpop.eup %5254  ;;  %v1760_v12 = vadd.f32 1.0, %v5253_v51  ;;  %v6960_v48 = vld [vmem:[#allocation12 + $0xcc] ss:$16 sps:$4 sm:$0xff]   ;;  %v646_v51 = vadd.f32 %v6595_v44, %v6625_v29 }
 0x75c   :  { %5264 = vrcp.f32 %v1747_v50  ;;  %v6968_v50 = vld [vmem:[#allocation12 + $0xec] ss:$16 sps:$4 sm:$0xff]  }
 0x75d   :  { %5266 = vrcp.f32 %v1760_v12 }
 0x762   :  { %v5257_v34 = vpop.eup %5256 }
 0x763   :  { %v5259_v15 = vpop.eup %5258  ;;  %v1768_v52 = vmul.f32 %v5257_v34, %v5251_v57  ;;  %v6972_v57 = vld [vmem:[#allocation12 + $0xe8] ss:$16 sps:$4 sm:$0xff]  }
 0x764   :  { %v5261_v45 = vpop.eup %5260  ;;  %v1766_v37 = vmul.f32 %v5259_v15, %v6814_v13 }
 0x765   :  { %v5263_v17 = vpop.eup %5262  ;;  %v1761_v5 = vadd.f32 1.0, %v5261_v45 }
 0x766   :  { %v6910_v59 = vadd.f32 %v1768_v52, %v1766_v37  ;;  %v1769_v62 = vmul.f32 %v5263_v17, %v5255_v47  ;;  %v5265_v3 = vpop.eup %5264  ;;  %v648_v47 = vadd.f32 %v6597_v53, %v6629_v55  ;;  %v7757_v52 = vld [vmem:[#allocation30_spill] sm:$0xff] }
 0x767   :  { %v1767_v31 = vmul.f32 %v5265_v3, %v6818_v32  ;;  %v5267_v20 = vpop.eup %5266  ;;  %v6932_v32 = vld [vmem:[#allocation12 + $0x48] ss:$16 sps:$4 sm:$0xff]   ;;  %v650_v45 = vadd.f32 %v7757_v52, %v6625_v29 }
 0x768   :  { %5268 = vtanh.f32 %v6910_v59 }
 0x769   :  { %v6914_v7 = vadd.f32 %v1769_v62, %v1767_v31  ;;  %5270 = vrcp.f32 %v1761_v5  ;;  %v7758_v62 = vld [vmem:[#allocation31_spill] sm:$0xff] }
 0x76a   :  { %v652_v3 = vadd.f32 %v7758_v62, %v6629_v55 }
 0x76b   :  { %5272 = vtanh.f32 %v6914_v7 }
 0x772   :  { %v5269_v26 = vpop.eup %5268 }
 0x773   :  { %v5271_v13 = vpop.eup %5270  ;;  %v1774_v0 = vmul.f32 %v5269_v26, %v5267_v20 }
 0x775   :  { %v5273_v14 = vpop.eup %5272 }
 0x776   :  { %v1775_v28 = vmul.f32 %v5273_v14, %v5271_v13 }
 0x778   :  { %v6917_v23 = vpack.c.bf16 %v1775_v28, %v1774_v0 }
 0x77a   :  { %1821 = vmatmul.mubr.bf16.vlgmr.msra.gmra.mrb[20].mxu0 %v6917_v23  ;;  %1864 = vmatmul.mubr.bf16.vlgmr.msra.gmra.mrb[36].mxu1 %v6917_v23 }
 0x77b   :  { %1943 = vmatpush1.bf16.msra.mxu0 %v6825_v25  ;;  %1986 = vmatpush1.bf16.msra.mxu1 %v6828_v42 }
 0x77c   :  { %1944 = vmatprep.subr.bf16.mxu0 %v6831_v21  ;;  %1987 = vmatprep.subr.bf16.mxu1 %v6834_v19 }
 0x77d   :  { %1974 = vmatprep.mubr.bf16.mxu0 %v7756_v60  ;;  %2017 = vmatprep.mubr.bf16.mxu1 %v7756_v60 }
 0x77f   :  { %1945 = vmatpush1.bf16.msra.mxu0 %v6839_v58  ;;  %1988 = vmatpush1.bf16.msra.mxu1 %v6842_v2 }
 0x780   :  { %1946 = vmatprep.subr.bf16.mxu0 %v6845_v6  ;;  %1989 = vmatprep.subr.bf16.mxu1 %v6848_v4 }
 0x783   :  { %1947 = vmatpush1.bf16.msra.mxu0 %v6851_v16  ;;  %1990 = vmatpush1.bf16.msra.mxu1 %v6932_v32 }
 0x784   :  { %1948 = vmatprep.subr.bf16.mxu0 %v6855_v24  ;;  %1991 = vmatprep.subr.bf16.mxu1 %v6936_v33 }
 0x787   :  { %1949 = vmatpush1.bf16.msra.mxu0 %v6859_v63  ;;  %1992 = vmatpush1.bf16.msra.mxu1 %v6940_v54 }
 0x788   :  { %1950 = vmatprep.subr.bf16.mxu0 %v6863_v35  ;;  %1993 = vmatprep.subr.bf16.mxu1 %v6944_v39 }
 0x78b   :  { %1951 = vmatpush1.bf16.msra.mxu0 %v6867_v61  ;;  %1994 = vmatpush1.bf16.msra.mxu1 %v6948_v18 }
 0x78c   :  { %1952 = vmatprep.subr.bf16.mxu0 %v6871_v41  ;;  %1995 = vmatprep.subr.bf16.mxu1 %v6952_v10 }
 0x78f   :  { %1953 = vmatpush1.bf16.msra.mxu0 %v6875_v43  ;;  %1996 = vmatpush1.bf16.msra.mxu1 %v6956_v38 }
 0x790   :  { %1954 = vmatprep.subr.bf16.mxu0 %v6879_v36  ;;  %1997 = vmatprep.subr.bf16.mxu1 %v6960_v48 }
 0x793   :  { %1955 = vmatpush1.bf16.msra.mxu0 %v6883_v46  ;;  %1998 = vmatpush1.bf16.msra.mxu1 %v6964_v49 }
 0x794   :  { %1956 = vmatprep.subr.bf16.mxu0 %v6887_v22  ;;  %1999 = vmatprep.subr.bf16.mxu1 %v6968_v50 }
 0x797   :  { %1957 = vmatpush1.bf16.msra.mxu0 %v6891_v11  ;;  %2000 = vmatpush1.bf16.msra.mxu1 %v6972_v57 }
 0x798   :  { %2096 = vmatprep.subr.bf16.mxu0 %v6799_v1  ;;  %2139 = vmatprep.subr.bf16.mxu1 %v6802_v27 }
 0x84d   :  { %v1822_v34 = vpop.f32.mrb[20].mxu0  ;;  %v1865_v15 = vpop.f32.mrb[36].mxu1 }
 0x84e   :  { %v1874_v37 = vadd.f32 %v1822_v34, %v646_v51  ;;  %v1824_v17 = vpop.f32.mrb[21].mxu0  ;;  %v1867_v12 = vpop.f32.mrb[37].mxu1  ;;  %v4717_v51 = vadd.f32 %v1865_v15, %v6639_v9 }
 0x84f   :  { %v1875_v1 = vadd.f32 %v1824_v17, %v648_v47  ;;  %v1826_v5 = vpop.f32.mrb[22].mxu0  ;;  %v1869_v27 = vpop.f32.mrb[38].mxu1  ;;  %v4718_v28 = vadd.f32 %v1867_v12, %v6643_v56 }
 0x850   :  { %v4460_v31 = vmul.f32 -1.442695, %v1874_v37  ;;  %v1878_v20 = vadd.f32 %v1826_v5, %v650_v45  ;;  %v1828_v44 = vpop.f32.mrb[23].mxu0  ;;  %v1871_v26 = vpop.f32.mrb[39].mxu1  ;;  %v4719_v52 = vadd.f32 %v1869_v27, %v6639_v9 }
 0x851   :  { %v4462_v13 = vmul.f32 -1.442695, %v1875_v1  ;;  %v1879_v53 = vadd.f32 %v1828_v44, %v652_v3  ;;  %v4464_v34 = vmul.f32 -1.442695, %v4718_v28  ;;  %v4720_v47 = vadd.f32 %v1871_v26, %v6643_v56 }
 0x852   :  { %5274 = vpow2.f32 %v4460_v31  ;;  %v4461_v14 = vmul.f32 -1.442695, %v1878_v20 }
 0x853   :  { %5276 = vpow2.f32 %v4462_v13  ;;  %v4463_v0 = vmul.f32 -1.442695, %v1879_v53  ;;  %v4465_v62 = vmul.f32 -1.442695, %v4720_v47 }
 0x854   :  { %5278 = vpow2.f32 %v4461_v14 }
 0x855   :  { %5280 = vpow2.f32 %v4463_v0 }
 0x856   :  { %5282 = vtanh.f32 %v4717_v51 }
 0x857   :  { %5284 = vpow2.f32 %v4464_v34 }
 0x858   :  { %5286 = vtanh.f32 %v4719_v52 }
 0x85c   :  { %v5275_v45 = vpop.eup %5274 }
 0x85d   :  { %v5277_v37 = vpop.eup %5276  ;;  %v1888_v17 = vadd.f32 1.0, %v5275_v45 }
 0x85e   :  { %v1900_v3 = vadd.f32 1.0, %v5277_v37  ;;  %v5279_v1 = vpop.eup %5278 }
 0x85f   :  { %5288 = vrcp.f32 %v1888_v17  ;;  %v1889_v12 = vadd.f32 1.0, %v5279_v1  ;;  %v5281_v5 = vpop.eup %5280 }
 0x860   :  { %5290 = vrcp.f32 %v1900_v3  ;;  %v1901_v15 = vadd.f32 1.0, %v5281_v5  ;;  %v5283_v31 = vpop.eup %5282 }
 0x861   :  { %5292 = vpow2.f32 %v4465_v62  ;;  %v5285_v20 = vpop.eup %5284 }
 0x862   :  { %5294 = vrcp.f32 %v1889_v12  ;;  %v5287_v27 = vpop.eup %5286  ;;  %v1914_v28 = vadd.f32 1.0, %v5285_v20 }
 0x863   :  { %5296 = vrcp.f32 %v1901_v15 }
 0x864   :  { %5298 = vrcp.f32 %v1914_v28 }
 0x869   :  { %v5289_v44 = vpop.eup %5288 }
 0x86a   :  { %v5291_v26 = vpop.eup %5290  ;;  %v1922_v13 = vmul.f32 %v5289_v44, %v5283_v31 }
 0x86b   :  { %v5293_v53 = vpop.eup %5292  ;;  %v1920_v14 = vmul.f32 %v5291_v26, %v6910_v59 }
 0x86c   :  { %v5295_v0 = vpop.eup %5294  ;;  %v1915_v52 = vadd.f32 1.0, %v5293_v53 }
 0x86d   :  { %v6990_v51 = vadd.f32 %v1922_v13, %v1920_v14  ;;  %v1923_v34 = vmul.f32 %v5295_v0, %v5287_v27  ;;  %v5297_v47 = vpop.eup %5296 }
 0x86e   :  { %v1921_v45 = vmul.f32 %v5297_v47, %v6914_v7  ;;  %v5299_v17 = vpop.eup %5298 }
 0x86f   :  { %5300 = vtanh.f32 %v6990_v51 }
 0x870   :  { %v6994_v37 = vadd.f32 %v1923_v34, %v1921_v45  ;;  %5302 = vrcp.f32 %v1915_v52 }
 0x872   :  { %5304 = vtanh.f32 %v6994_v37 }
 0x879   :  { %v5301_v62 = vpop.eup %5300 }
 0x87a   :  { %v5303_v59 = vpop.eup %5302  ;;  %v1928_v1 = vmul.f32 %v5301_v62, %v5299_v17 }
 0x87c   :  { %v5305_v3 = vpop.eup %5304 }
 0x87d   :  { %v1929_v12 = vmul.f32 %v5305_v3, %v5303_v59 }
 0x87f   :  { %v6997_v5 = vpack.c.bf16 %v1929_v12, %v1928_v1 }
 0x881   :  { %1975 = vmatmul.mubr.bf16.vlgmr.msra.gmra.mrb[24].mxu0 %v6997_v5  ;;  %2018 = vmatmul.mubr.bf16.vlgmr.msra.gmra.mrb[40].mxu1 %v6997_v5 }
 0x882   :  { %2097 = vmatpush1.bf16.msra.mxu0 %v6825_v25  ;;  %2140 = vmatpush1.bf16.msra.mxu1 %v6828_v42  ;;  %v4980_v25 = vld [vmem:[#allocation15 + $0x4] ss:$16 sps:$4 sm:$0xff]   ;;  %v4983_v42 = vld [vmem:[#allocation15 + $0xc] ss:$16 sps:$4 sm:$0xff]  }
 0x883   :  { %2098 = vmatprep.subr.bf16.mxu0 %v6831_v21  ;;  %2141 = vmatprep.subr.bf16.mxu1 %v6834_v19  ;;  %v7759_v21 = vld [vmem:[#allocation32_spill] sm:$0xff] }
 0x884   :  { %2128 = vmatprep.mubr.bf16.mxu0 %v7756_v60  ;;  %2171 = vmatprep.mubr.bf16.mxu1 %v7756_v60  ;;  %v656_v19 = vadd.f32 %v7759_v21, %v6625_v29 }
 0x886   :  { %2099 = vmatpush1.bf16.msra.mxu0 %v6839_v58  ;;  %2142 = vmatpush1.bf16.msra.mxu1 %v6842_v2  ;;  %v7760_v58 = vld [vmem:[#allocation33_spill] sm:$0xff] }
 0x887   :  { %2100 = vmatprep.subr.bf16.mxu0 %v6845_v6  ;;  %2143 = vmatprep.subr.bf16.mxu1 %v6848_v4  ;;  %v658_v2 = vadd.f32 %v7760_v58, %v6629_v55 }
 0x88a   :  { %2101 = vmatpush1.bf16.msra.mxu0 %v6851_v16  ;;  %2144 = vmatpush1.bf16.msra.mxu1 %v6932_v32  ;;  %v7761_v16 = vld [vmem:[#allocation34_spill] sm:$0xff] }
 0x88b   :  { %2102 = vmatprep.subr.bf16.mxu0 %v6855_v24  ;;  %2145 = vmatprep.subr.bf16.mxu1 %v6936_v33  ;;  %v660_v24 = vadd.f32 %v7761_v16, %v6625_v29 }
 0x88e   :  { %2103 = vmatpush1.bf16.msra.mxu0 %v6859_v63  ;;  %2146 = vmatpush1.bf16.msra.mxu1 %v6940_v54 }
 0x88f   :  { %2104 = vmatprep.subr.bf16.mxu0 %v6863_v35  ;;  %2147 = vmatprep.subr.bf16.mxu1 %v6944_v39 }
 0x892   :  { %2105 = vmatpush1.bf16.msra.mxu0 %v6867_v61  ;;  %2148 = vmatpush1.bf16.msra.mxu1 %v6948_v18 }
 0x893   :  { %2106 = vmatprep.subr.bf16.mxu0 %v6871_v41  ;;  %2149 = vmatprep.subr.bf16.mxu1 %v6952_v10  ;;  %v7762_v41 = vld [vmem:[#allocation35_spill] sm:$0xff] }
 0x896   :  { %2107 = vmatpush1.bf16.msra.mxu0 %v6875_v43  ;;  %2150 = vmatpush1.bf16.msra.mxu1 %v6956_v38  ;;  %v662_v43 = vadd.f32 %v7762_v41, %v6629_v55  ;;  %v4984_v41 = vld [vmem:[#allocation15 + $0x20] ss:$16 sps:$4 sm:$0xff]  }
 0x897   :  { %2108 = vmatprep.subr.bf16.mxu0 %v6879_v36  ;;  %2151 = vmatprep.subr.bf16.mxu1 %v6960_v48 }
 0x89a   :  { %2109 = vmatpush1.bf16.msra.mxu0 %v6883_v46  ;;  %2152 = vmatpush1.bf16.msra.mxu1 %v6964_v49 }
 0x89b   :  { %2110 = vmatprep.subr.bf16.mxu0 %v6887_v22  ;;  %2153 = vmatprep.subr.bf16.mxu1 %v6968_v50 }
 0x89e   :  { %2111 = vmatpush1.bf16.msra.mxu0 %v6891_v11  ;;  %2154 = vmatpush1.bf16.msra.mxu1 %v6972_v57 }
 0x89f   :  { %2495 = vmatprep.subr.bf16.mxu0 %v4980_v25  ;;  %2608 = vmatprep.subr.bf16.mxu1 %v4983_v42 }
 0x954   :  { %v1976_v6 = vpop.f32.mrb[24].mxu0  ;;  %v2019_v4 = vpop.f32.mrb[40].mxu1 }
 0x955   :  { %v2028_v63 = vadd.f32 %v1976_v6, %v656_v19  ;;  %v1978_v35 = vpop.f32.mrb[25].mxu0  ;;  %v2021_v61 = vpop.f32.mrb[41].mxu1  ;;  %v4721_v48 = vadd.f32 %v2019_v4, %v6639_v9 }
 0x956   :  { %v2029_v36 = vadd.f32 %v1978_v35, %v658_v2  ;;  %v1980_v46 = vpop.f32.mrb[26].mxu0  ;;  %v2023_v22 = vpop.f32.mrb[42].mxu1  ;;  %v4722_v38 = vadd.f32 %v2021_v61, %v6643_v56  ;;  %v4986_v61 = vld [vmem:[#allocation15 + $0x24] ss:$16 sps:$4 sm:$0xff]  }
 0x957   :  { %v4466_v11 = vmul.f32 -1.442695, %v2028_v63  ;;  %v2032_v7 = vadd.f32 %v1980_v46, %v660_v24  ;;  %v1982_v32 = vpop.f32.mrb[27].mxu0  ;;  %v2025_v33 = vpop.f32.mrb[43].mxu1  ;;  %v4723_v57 = vadd.f32 %v2023_v22, %v6639_v9  ;;  %v4978_v24 = vld [vmem:[#allocation15] ss:$16 sps:$4 sm:$0xff]  }
 0x958   :  { %v4468_v54 = vmul.f32 -1.442695, %v2029_v36  ;;  %v2033_v39 = vadd.f32 %v1982_v32, %v662_v43  ;;  %v4470_v49 = vmul.f32 -1.442695, %v4722_v38  ;;  %v4724_v50 = vadd.f32 %v2025_v33, %v6643_v56  ;;  %v4981_v63 = vld [vmem:[#allocation15 + $0x8] ss:$16 sps:$4 sm:$0xff]  }
 0x959   :  { %5306 = vpow2.f32 %v4466_v11  ;;  %v4467_v18 = vmul.f32 -1.442695, %v2032_v7  ;;  %v4987_v43 = vld [vmem:[#allocation15 + $0x28] ss:$16 sps:$4 sm:$0xff]   ;;  %v4992_v36 = vld [vmem:[#allocation15 + $0x44] ss:$16 sps:$4 sm:$0xff]  }
 0x95a   :  { %5308 = vpow2.f32 %v4468_v54  ;;  %v4469_v10 = vmul.f32 -1.442695, %v2033_v39  ;;  %v4471_v27 = vmul.f32 -1.442695, %v4724_v50  ;;  %v4995_v46 = vld [vmem:[#allocation15 + $0x4c] ss:$16 sps:$4 sm:$0xff]  }
 0x95b   :  { %5310 = vpow2.f32 %v4467_v18  ;;  %v4990_v22 = vld [vmem:[#allocation15 + $0x40] ss:$16 sps:$4 sm:$0xff]   ;;  %v4993_v11 = vld [vmem:[#allocation15 + $0x48] ss:$16 sps:$4 sm:$0xff]   ;;  %v4998_v7 = vld [vmem:[#allocation15 + $0x64] ss:$16 sps:$4 sm:$0xff]  }
 0x95c   :  { %5312 = vpow2.f32 %v4469_v10  ;;  %v5001_v32 = vld [vmem:[#allocation15 + $0x6c] ss:$16 sps:$4 sm:$0xff]   ;;  %v4996_v33 = vld [vmem:[#allocation15 + $0x60] ss:$16 sps:$4 sm:$0xff]   ;;  %v4999_v54 = vld [vmem:[#allocation15 + $0x68] ss:$16 sps:$4 sm:$0xff]  }
 0x95d   :  { %5314 = vtanh.f32 %v4721_v48  ;;  %v5004_v39 = vld [vmem:[#allocation15 + $0x84] ss:$16 sps:$4 sm:$0xff]   ;;  %v5007_v18 = vld [vmem:[#allocation15 + $0x8c] ss:$16 sps:$4 sm:$0xff]   ;;  %v5002_v10 = vld [vmem:[#allocation15 + $0x80] ss:$16 sps:$4 sm:$0xff]  }
 0x95e   :  { %5316 = vpow2.f32 %v4470_v49  ;;  %v5005_v38 = vld [vmem:[#allocation15 + $0x88] ss:$16 sps:$4 sm:$0xff]   ;;  %v5010_v48 = vld [vmem:[#allocation15 + $0xa4] ss:$16 sps:$4 sm:$0xff]   ;;  %v5013_v49 = vld [vmem:[#allocation15 + $0xac] ss:$16 sps:$4 sm:$0xff]  }
 0x95f   :  { %5318 = vtanh.f32 %v4723_v57  ;;  %v5008_v50 = vld [vmem:[#allocation15 + $0xa0] ss:$16 sps:$4 sm:$0xff]   ;;  %v5011_v57 = vld [vmem:[#allocation15 + $0xa8] ss:$16 sps:$4 sm:$0xff]  }
 0x963   :  { %v5307_v15 = vpop.eup %5306 }
 0x964   :  { %v5309_v31 = vpop.eup %5308  ;;  %v2042_v20 = vadd.f32 1.0, %v5307_v15  ;;  %v5016_v15 = vld [vmem:[#allocation15 + $0xc4] ss:$16 sps:$4 sm:$0xff]  }
 0x965   :  { %v2054_v44 = vadd.f32 1.0, %v5309_v31  ;;  %v5311_v26 = vpop.eup %5310  ;;  %v5019_v31 = vld [vmem:[#allocation15 + $0xcc] ss:$16 sps:$4 sm:$0xff]  }
 0x966   :  { %5320 = vrcp.f32 %v2042_v20  ;;  %v2043_v13 = vadd.f32 1.0, %v5311_v26  ;;  %v5313_v53 = vpop.eup %5312  ;;  %v5014_v20 = vld [vmem:[#allocation15 + $0xc0] ss:$16 sps:$4 sm:$0xff]   ;;  %v5025_v26 = vld [vmem:[#allocation15 + $0xec] ss:$16 sps:$4 sm:$0xff]  }
 0x967   :  { %5322 = vrcp.f32 %v2054_v44  ;;  %v2055_v14 = vadd.f32 1.0, %v5313_v53  ;;  %v5315_v0 = vpop.eup %5314  ;;  %v5022_v44 = vld [vmem:[#allocation15 + $0xe4] ss:$16 sps:$4 sm:$0xff]   ;;  %v5023_v53 = vld [vmem:[#allocation15 + $0xe8] ss:$16 sps:$4 sm:$0xff]  }
 0x968   :  { %5324 = vpow2.f32 %v4471_v27  ;;  %v5317_v28 = vpop.eup %5316  ;;  %v5017_v27 = vld [vmem:[#allocation15 + $0xc8] ss:$16 sps:$4 sm:$0xff]  }
 0x969   :  { %5326 = vrcp.f32 %v2043_v13  ;;  %v5319_v34 = vpop.eup %5318  ;;  %v2068_v3 = vadd.f32 1.0, %v5317_v28  ;;  %v5020_v13 = vld [vmem:[#allocation15 + $0xe0] ss:$16 sps:$4 sm:$0xff]  }
 0x96a   :  { %5328 = vrcp.f32 %v2055_v14  ;;  %v7059_v14 = vld [vmem:[#allocation16 + $0x4] ss:$16 sps:$4 sm:$0xff]  }
 0x96b   :  { %5330 = vrcp.f32 %v2068_v3  ;;  %v7763_v28 = vld [vmem:[#allocation41_spill] sm:$0xff] }
 0x96c   :  { %v7126_v3 = vld [vmem:[#allocation16 + $0x60] ss:$16 sps:$4 sm:$0xff]  }
 0x970   :  { %v5321_v47 = vpop.eup %5320 }
 0x971   :  { %v5323_v52 = vpop.eup %5322  ;;  %v2076_v45 = vmul.f32 %v5321_v47, %v5315_v0  ;;  %v7062_v0 = vld [vmem:[#allocation16] ss:$16 sps:$4 sm:$0xff]   ;;  %v7109_v47 = vld [vmem:[#allocation16 + $0x28] ss:$16 sps:$4 sm:$0xff]  }
 0x972   :  { %v5325_v17 = vpop.eup %5324  ;;  %v2074_v62 = vmul.f32 %v5323_v52, %v6990_v51  ;;  %v7112_v52 = vld [vmem:[#allocation16 + $0x40] ss:$16 sps:$4 sm:$0xff]  }
 0x973   :  { %v5327_v59 = vpop.eup %5326  ;;  %v2069_v42 = vadd.f32 1.0, %v5325_v17  ;;  %v7117_v17 = vld [vmem:[#allocation16 + $0x64] ss:$16 sps:$4 sm:$0xff]  }
 0x974   :  { %v7046_v1 = vadd.f32 %v2076_v45, %v2074_v62  ;;  %v2077_v12 = vmul.f32 %v5327_v59, %v5319_v34  ;;  %v5329_v25 = vpop.eup %5328  ;;  %v7106_v34 = vld [vmem:[#allocation16 + $0x44] ss:$16 sps:$4 sm:$0xff]   ;;  %v7114_v45 = vld [vmem:[#allocation16 + $0x4c] ss:$16 sps:$4 sm:$0xff]   ;;  %v7120_v62 = vld [vmem:[#allocation16 + $0x48] ss:$16 sps:$4 sm:$0xff]  }
 0x975   :  { %v2075_v21 = vmul.f32 %v5329_v25, %v6994_v37  ;;  %v5331_v58 = vpop.eup %5330  ;;  %v4989_v37 = vld [vmem:[#allocation15 + $0x2c] ss:$16 sps:$4 sm:$0xff]   ;;  %v7132_v25 = vld [vmem:[#allocation16 + $0x68] ss:$16 sps:$4 sm:$0xff]  }
 0x976   :  { %5332 = vtanh.f32 %v7046_v1  ;;  %v7123_v59 = vld [vmem:[#allocation16 + $0x6c] ss:$16 sps:$4 sm:$0xff]  }
 0x977   :  { %v7050_v19 = vadd.f32 %v2077_v12, %v2075_v21  ;;  %5334 = vrcp.f32 %v2069_v42  ;;  %v7129_v12 = vld [vmem:[#allocation16 + $0x84] ss:$16 sps:$4 sm:$0xff]   ;;  %v7135_v42 = vld [vmem:[#allocation16 + $0x8c] ss:$16 sps:$4 sm:$0xff]   ;;  %v7138_v21 = vld [vmem:[#allocation16 + $0x80] ss:$16 sps:$4 sm:$0xff]  }
 0x979   :  { %5336 = vtanh.f32 %v7050_v19 }
 0x980   :  { %v5333_v2 = vpop.eup %5332 }
 0x981   :  { %v5335_v51 = vpop.eup %5334  ;;  %v2082_v4 = vmul.f32 %v5333_v2, %v5331_v58  ;;  %v7141_v58 = vld [vmem:[#allocation16 + $0xa4] ss:$16 sps:$4 sm:$0xff]   ;;  %v7144_v2 = vld [vmem:[#allocation16 + $0x88] ss:$16 sps:$4 sm:$0xff]  }
 0x983   :  { %v5337_v6 = vpop.eup %5336 }
 0x984   :  { %v2083_v16 = vmul.f32 %v5337_v6, %v5335_v51  ;;  %v7147_v51 = vld [vmem:[#allocation16 + $0xac] ss:$16 sps:$4 sm:$0xff]   ;;  %v7150_v6 = vld [vmem:[#allocation16 + $0xa0] ss:$16 sps:$4 sm:$0xff]  }
 0x986   :  { %v7053_v35 = vpack.c.bf16 %v2083_v16, %v2082_v4  ;;  %v7153_v4 = vld [vmem:[#allocation16 + $0xc4] ss:$16 sps:$4 sm:$0xff]   ;;  %v7156_v16 = vld [vmem:[#allocation16 + $0xa8] ss:$16 sps:$4 sm:$0xff]  }
 0x988   :  { %2129 = vmatmul.mubr.bf16.vlgmr.msra.gmra.mrb[28].mxu0 %v7053_v35  ;;  %2172 = vmatmul.mubr.bf16.vlgmr.msra.gmra.mrb[44].mxu1 %v7053_v35 }
 0x989   :  { %2496 = vmatpush1.bf16.msra.mxu0 %v4978_v24  ;;  %2609 = vmatpush1.bf16.msra.mxu1 %v4981_v63  ;;  %v7160_v24 = vld [vmem:[#allocation16 + $0xc0] ss:$16 sps:$4 sm:$0xff]   ;;  %v7164_v63 = vld [vmem:[#allocation16 + $0xe4] ss:$16 sps:$4 sm:$0xff]  }
 0x98a   :  { %2497 = vmatprep.subr.bf16.mxu0 %v4986_v61  ;;  %2610 = vmatprep.subr.bf16.mxu1 %v4989_v37  ;;  %v7168_v61 = vld [vmem:[#allocation16 + $0xc8] ss:$16 sps:$4 sm:$0xff]   ;;  %v7170_v37 = vld [vmem:[#allocation16 + $0xec] ss:$16 sps:$4 sm:$0xff]  }
 0x98b   :  { %2527 = vmatprep.mubr.bf16.mxu0 %v7756_v60  ;;  %2640 = vmatprep.mubr.bf16.mxu1 %v7756_v60 }
 0x98d   :  { %2498 = vmatpush1.bf16.msra.mxu0 %v4984_v41  ;;  %2611 = vmatpush1.bf16.msra.mxu1 %v4987_v43  ;;  %v7174_v41 = vld [vmem:[#allocation16 + $0xe0] ss:$16 sps:$4 sm:$0xff]   ;;  %v7178_v43 = vld [vmem:[#allocation16 + $0xe8] ss:$16 sps:$4 sm:$0xff]  }
 0x98e   :  { %2499 = vmatprep.subr.bf16.mxu0 %v4992_v36  ;;  %2612 = vmatprep.subr.bf16.mxu1 %v4995_v46  ;;  %v7764_v36 = vld [vmem:[#allocation36_spill] sm:$0xff] }
 0x98f   :  { %v666_v46 = vadd.f32 %v7764_v36, %v6625_v29 }
 0x991   :  { %2500 = vmatpush1.bf16.msra.mxu0 %v4990_v22  ;;  %2613 = vmatpush1.bf16.msra.mxu1 %v4993_v11  ;;  %v7765_v22 = vld [vmem:[#allocation37_spill] sm:$0xff] }
 0x992   :  { %2501 = vmatprep.subr.bf16.mxu0 %v4998_v7  ;;  %2614 = vmatprep.subr.bf16.mxu1 %v5001_v32  ;;  %v668_v11 = vadd.f32 %v7765_v22, %v6629_v55 }
 0x995   :  { %2502 = vmatpush1.bf16.msra.mxu0 %v4996_v33  ;;  %2615 = vmatpush1.bf16.msra.mxu1 %v4999_v54  ;;  %v7766_v33 = vld [vmem:[#allocation38_spill] sm:$0xff] }
 0x996   :  { %2503 = vmatprep.subr.bf16.mxu0 %v5004_v39  ;;  %2616 = vmatprep.subr.bf16.mxu1 %v5007_v18  ;;  %v670_v54 = vadd.f32 %v7766_v33, %v6625_v29 }
 0x999   :  { %2504 = vmatpush1.bf16.msra.mxu0 %v5002_v10  ;;  %2617 = vmatpush1.bf16.msra.mxu1 %v5005_v38  ;;  %v7767_v38 = vld [vmem:[#allocation39_spill] sm:$0xff] }
 0x99a   :  { %2505 = vmatprep.subr.bf16.mxu0 %v5010_v48  ;;  %2618 = vmatprep.subr.bf16.mxu1 %v5013_v49  ;;  %v672_v48 = vadd.f32 %v7767_v38, %v6629_v55 }
 0x99d   :  { %2506 = vmatpush1.bf16.msra.mxu0 %v5008_v50  ;;  %2619 = vmatpush1.bf16.msra.mxu1 %v5011_v57 }
 0x99e   :  { %2507 = vmatprep.subr.bf16.mxu0 %v5016_v15  ;;  %2620 = vmatprep.subr.bf16.mxu1 %v5019_v31 }
 0x9a1   :  { %2508 = vmatpush1.bf16.msra.mxu0 %v5014_v20  ;;  %2621 = vmatpush1.bf16.msra.mxu1 %v5017_v27 }
 0x9a2   :  { %2509 = vmatprep.subr.bf16.mxu0 %v5022_v44  ;;  %2622 = vmatprep.subr.bf16.mxu1 %v5025_v26 }
 0x9a5   :  { %2510 = vmatpush1.bf16.msra.mxu0 %v5020_v13  ;;  %2623 = vmatpush1.bf16.msra.mxu1 %v5023_v53 }
 0x9a6   :  { %2953 = vmatprep.subr.bf16.mxu0 %v7059_v14 }
 0x9a8   :  { %2528 = vmatmul.mubr.bf16.vlgmr.msra.gmra.mrb[32].mxu0 %v7763_v28  ;;  %2641 = vmatmul.mubr.bf16.vlgmr.msra.gmra.mrb[48].mxu1 %v7763_v28 }
 0x9a9   :  { %2537 = vmatprep.mubr.bf16.mxu0 %v7756_v60  ;;  %2650 = vmatprep.mubr.bf16.mxu1 %v7756_v60 }
 0x9aa   :  { %2954 = vmatpush1.bf16.msra.mxu0 %v7062_v0 }
 0x9b0   :  { %2538 = vmatmul.mubr.bf16.gmra.mrb[36].mxu0 %v6709_v8  ;;  %2651 = vmatmul.mubr.bf16.gmra.mrb[52].mxu1 %v6709_v8  ;;  %v7093_v8 = vld [vmem:[#allocation16 + $0xc] ss:$16 sps:$4 sm:$0xff]  }
 0x9b1   :  { %2547 = vmatprep.mubr.bf16.mxu0 %v7756_v60  ;;  %2660 = vmatprep.mubr.bf16.mxu1 %v7756_v60 }
 0x9b2   :  { %2996 = vmatprep.subr.bf16.mxu1 %v7093_v8 }
 0x9b8   :  { %2548 = vmatmul.mubr.bf16.gmra.mrb[40].mxu0 %v6763_v30  ;;  %2661 = vmatmul.mubr.bf16.gmra.mrb[56].mxu1 %v6763_v30  ;;  %v7095_v30 = vld [vmem:[#allocation16 + $0x8] ss:$16 sps:$4 sm:$0xff]  }
 0x9b9   :  { %2557 = vmatprep.mubr.bf16.mxu0 %v7756_v60  ;;  %2670 = vmatprep.mubr.bf16.mxu1 %v7756_v60 }
 0x9ba   :  { %2997 = vmatpush1.bf16.msra.mxu1 %v7095_v30 }
 0x9c0   :  { %2558 = vmatmul.mubr.bf16.gmra.mrb[44].mxu0 %v6821_v40  ;;  %2671 = vmatmul.mubr.bf16.gmra.mrb[60].mxu1 %v6821_v40  ;;  %v7098_v40 = vld [vmem:[#allocation16 + $0x24] ss:$16 sps:$4 sm:$0xff]  }
 0x9c1   :  { %2567 = vmatprep.mubr.bf16.mxu0 %v7756_v60  ;;  %2680 = vmatprep.mubr.bf16.mxu1 %v7756_v60 }
 0x9c2   :  { %2955 = vmatprep.subr.bf16.mxu0 %v7098_v40 }
 0x9c8   :  { %2568 = vmatmul.mubr.bf16.gmra.mrb[48].mxu0 %v6917_v23  ;;  %2681 = vmatmul.mubr.bf16.gmra.mrb[64].mxu1 %v6917_v23  ;;  %v7101_v23 = vld [vmem:[#allocation16 + $0x2c] ss:$16 sps:$4 sm:$0xff]  }
 0x9c9   :  { %2577 = vmatprep.mubr.bf16.mxu0 %v7756_v60  ;;  %2690 = vmatprep.mubr.bf16.mxu1 %v7756_v60 }
 0x9ca   :  { %2998 = vmatprep.subr.bf16.mxu1 %v7101_v23 }
 0x9cb   :  { %2999 = vmatpush1.bf16.msra.mxu1 %v7109_v47 }
 0x9cc   :  { %3000 = vmatprep.subr.bf16.mxu1 %v7114_v45 }
 0x9cf   :  { %3001 = vmatpush1.bf16.msra.mxu1 %v7120_v62 }
 0x9d0   :  { %2578 = vmatmul.mubr.bf16.gmra.mrb[52].mxu0 %v6997_v5  ;;  %2691 = vmatmul.mubr.bf16.gmra.mrb[68].mxu1 %v6997_v5  ;;  %v7104_v5 = vld [vmem:[#allocation16 + $0x20] ss:$16 sps:$4 sm:$0xff]  }
 0x9d1   :  { %2587 = vmatprep.mubr.bf16.mxu0 %v7756_v60  ;;  %2700 = vmatprep.mubr.bf16.mxu1 %v7756_v60 }
 0x9d2   :  { %2956 = vmatpush1.bf16.msra.mxu0 %v7104_v5  ;;  %3002 = vmatprep.subr.bf16.mxu1 %v7123_v59 }
 0x9d3   :  { %2957 = vmatprep.subr.bf16.mxu0 %v7106_v34  ;;  %3003 = vmatpush1.bf16.msra.mxu1 %v7132_v25 }
 0x9d4   :  { %3004 = vmatprep.subr.bf16.mxu1 %v7135_v42 }
 0x9d6   :  { %2958 = vmatpush1.bf16.msra.mxu0 %v7112_v52 }
 0x9d7   :  { %2959 = vmatprep.subr.bf16.mxu0 %v7117_v17  ;;  %3005 = vmatpush1.bf16.msra.mxu1 %v7144_v2 }
 0x9d8   :  { %2588 = vmatmul.mubr.bf16.gmra.mrb[56].mxu0 %v7053_v35  ;;  %2701 = vmatmul.mubr.bf16.gmra.mrb[72].mxu1 %v7053_v35  ;;  %v7166_v35 = vld [vmem:[#allocation16 + $0xcc] ss:$16 sps:$4 sm:$0xff]  }
 0x9d9   :  { %2597 = vmatprep.mubr.bf16.mxu0 %v7756_v60  ;;  %2710 = vmatprep.mubr.bf16.mxu1 %v7756_v60 }
 0x9da   :  { %2960 = vmatpush1.bf16.msra.mxu0 %v7126_v3  ;;  %3006 = vmatprep.subr.bf16.mxu1 %v7147_v51 }
 0x9db   :  { %2961 = vmatprep.subr.bf16.mxu0 %v7129_v12  ;;  %3007 = vmatpush1.bf16.msra.mxu1 %v7156_v16 }
 0x9dc   :  { %3008 = vmatprep.subr.bf16.mxu1 %v7166_v35 }
 0x9de   :  { %2962 = vmatpush1.bf16.msra.mxu0 %v7138_v21 }
 0x9df   :  { %2963 = vmatprep.subr.bf16.mxu0 %v7141_v58  ;;  %3009 = vmatpush1.bf16.msra.mxu1 %v7168_v61 }
 0x9e0   :  { %3010 = vmatprep.subr.bf16.mxu1 %v7170_v37 }
 0x9e2   :  { %2964 = vmatpush1.bf16.msra.mxu0 %v7150_v6 }
 0x9e3   :  { %2965 = vmatprep.subr.bf16.mxu0 %v7153_v4  ;;  %3011 = vmatpush1.bf16.msra.mxu1 %v7178_v43 }
 0x9e4   :  { %3148 = vmatprep.subr.bf16.mxu1 %v7093_v8 }
 0x9e6   :  { %2966 = vmatpush1.bf16.msra.mxu0 %v7160_v24 }
 0x9e7   :  { %2967 = vmatprep.subr.bf16.mxu0 %v7164_v63 }
 0x9ea   :  { %2968 = vmatpush1.bf16.msra.mxu0 %v7174_v41 }
 0x9eb   :  { %3105 = vmatprep.subr.bf16.mxu0 %v7059_v14 }
 0xa5b   :  { %v2130_v7 = vpop.f32.mrb[28].mxu0  ;;  %v2173_v32 = vpop.f32.mrb[44].mxu1 }
 0xa5c   :  { %v2182_v39 = vadd.f32 %v2130_v7, %v666_v46  ;;  %v2132_v18 = vpop.f32.mrb[29].mxu0  ;;  %v2175_v10 = vpop.f32.mrb[45].mxu1  ;;  %v4725_v28 = vadd.f32 %v2173_v32, %v6639_v9 }
 0xa5d   :  { %v2183_v49 = vadd.f32 %v2132_v18, %v668_v11  ;;  %v2134_v50 = vpop.f32.mrb[30].mxu0  ;;  %v2177_v57 = vpop.f32.mrb[46].mxu1  ;;  %v4726_v29 = vadd.f32 %v2175_v10, %v6643_v56 }
 0xa5e   :  { %v4472_v15 = vmul.f32 -1.442695, %v2182_v39  ;;  %v2186_v31 = vadd.f32 %v2134_v50, %v670_v54  ;;  %v2136_v20 = vpop.f32.mrb[31].mxu0  ;;  %v2179_v27 = vpop.f32.mrb[47].mxu1  ;;  %v4727_v46 = vadd.f32 %v2177_v57, %v6639_v9 }
 0xa5f   :  { %v4474_v44 = vmul.f32 -1.442695, %v2183_v49  ;;  %v2187_v26 = vadd.f32 %v2136_v20, %v672_v48  ;;  %v4476_v55 = vmul.f32 -1.442695, %v4726_v29  ;;  %v4728_v36 = vadd.f32 %v2179_v27, %v6643_v56 }
 0xa60   :  { %5338 = vpow2.f32 %v4472_v15  ;;  %v4473_v13 = vmul.f32 -1.442695, %v2186_v31 }
 0xa61   :  { %5340 = vpow2.f32 %v4474_v44  ;;  %v4475_v53 = vmul.f32 -1.442695, %v2187_v26  ;;  %v4477_v33 = vmul.f32 -1.442695, %v4728_v36 }
 0xa62   :  { %5342 = vpow2.f32 %v4473_v13 }
 0xa63   :  { %5344 = vpow2.f32 %v4475_v53 }
 0xa64   :  { %5346 = vtanh.f32 %v4725_v28 }
 0xa65   :  { %5348 = vpow2.f32 %v4476_v55 }
 0xa66   :  { %5350 = vtanh.f32 %v4727_v46 }
 0xa6a   :  { %v5339_v22 = vpop.eup %5338 }
 0xa6b   :  { %v5341_v11 = vpop.eup %5340  ;;  %v2196_v7 = vadd.f32 1.0, %v5339_v22 }
 0xa6c   :  { %v2208_v54 = vadd.f32 1.0, %v5341_v11  ;;  %v5343_v39 = vpop.eup %5342 }
 0xa6d   :  { %5352 = vrcp.f32 %v2196_v7  ;;  %v2197_v18 = vadd.f32 1.0, %v5343_v39  ;;  %v5345_v10 = vpop.eup %5344 }
 0xa6e   :  { %5354 = vrcp.f32 %v2208_v54  ;;  %v2209_v32 = vadd.f32 1.0, %v5345_v10  ;;  %v5347_v56 = vpop.eup %5346 }
 0xa6f   :  { %5356 = vpow2.f32 %v4477_v33  ;;  %v5349_v38 = vpop.eup %5348 }
 0xa70   :  { %5358 = vrcp.f32 %v2197_v18  ;;  %v5351_v9 = vpop.eup %5350  ;;  %v2222_v57 = vadd.f32 1.0, %v5349_v38 }
 0xa71   :  { %5360 = vrcp.f32 %v2209_v32 }
 0xa72   :  { %5362 = vrcp.f32 %v2222_v57 }
 0xa77   :  { %v5353_v48 = vpop.eup %5352 }
 0xa78   :  { %v5355_v49 = vpop.eup %5354  ;;  %v2230_v50 = vmul.f32 %v5353_v48, %v5347_v56 }
 0xa79   :  { %v5357_v15 = vpop.eup %5356  ;;  %v2228_v31 = vmul.f32 %v5355_v49, %v7046_v1  ;;  %v2305_v1 = vld [vmem:[#allocation18] sm:$0xf] }
 0xa7a   :  { %v5359_v20 = vpop.eup %5358  ;;  %v2223_v13 = vadd.f32 1.0, %v5357_v15 }
 0xa7b   :  { %v2231_v27 = vmul.f32 %v5359_v20, %v5351_v9  ;;  %v2232_v44 = vadd.f32 %v2230_v50, %v2228_v31  ;;  %v5361_v26 = vpop.eup %5360 }
 0xa7c   :  { %v2229_v53 = vmul.f32 %v5361_v26, %v7050_v19  ;;  %v5363_v28 = vpop.eup %5362  ;;  %v7768_v19 = vld [vmem:[#allocation40_spill] sm:$0xff] }
 0xa7d   :  { %5364 = vtanh.f32 %v2232_v44  ;;  %v7769_v33 = vsub.s32 0, %v7768_v19  ;;  %v7770_v39 = vsub.s32 1, %v7768_v19  ;;  %v7771_v44 = vsub.s32 3, %v7768_v19 }
 0xa7e   :  { %v2233_v29 = vadd.f32 %v2231_v27, %v2229_v53  ;;  %5366 = vrcp.f32 %v2223_v13 }
 0xa7f   :  { %v7239_v54 = vrot.slane %v2305_v1, %v7769_v33  ;;  %v7243_v18 = vrot.slane %v2305_v1, %v7770_v39  ;;  %v7250_v26 = vrot.slane %v2305_v1, %v7771_v44 }
 0xa80   :  { %5368 = vtanh.f32 %v2233_v29 }
 0xa87   :  { %v5365_v55 = vpop.eup %5364 }
 0xa88   :  { %v2236_v36 = vmul.f32 %v5365_v55, %v5363_v28  ;;  %v5367_v46 = vpop.eup %5366  ;;  %v7772_v28 = vsub.s32 2, %v7768_v19 }
 0xa8a   :  { %v5369_v22 = vpop.eup %5368  ;;  %v7255_v55 = vrot.slane %v2305_v1, %v7772_v28 }
 0xa8b   :  { %v2237_v11 = vmul.f32 %v5369_v22, %v5367_v46 }
 0xa8d   :  { %v2238_v7 = vpack.c.bf16 %v2237_v11, %v2236_v36 }
 0xa8f   :  { %2598 = vmatmul.mubr.bf16.gmra.mrb[60].mxu0 %v2238_v7  ;;  %2711 = vmatmul.mubr.bf16.gmra.mrb[76].mxu1 %v2238_v7 }
 0xa90   :  { %2985 = vmatprep.mubr.bf16.mxu0 %v7756_v60  ;;  %3028 = vmatprep.mubr.bf16.mxu1 %v7756_v60 }
 0xa97   :  { %2986 = vmatmul.mubr.bf16.vlgmr.msra.gmra.mrb[32].mxu0 %v7756_v60  ;;  %3029 = vmatmul.mubr.bf16.vlgmr.msra.gmra.mrb[48].mxu1 %v7756_v60 }
 0xa98   :  { %3106 = vmatpush1.bf16.msra.mxu0 %v7062_v0  ;;  %3149 = vmatpush1.bf16.msra.mxu1 %v7095_v30 }
 0xa99   :  { %3107 = vmatprep.subr.bf16.mxu0 %v7098_v40  ;;  %3150 = vmatprep.subr.bf16.mxu1 %v7101_v23 }
 0xa9a   :  { %3137 = vmatprep.mubr.bf16.mxu0 %v7756_v60  ;;  %3180 = vmatprep.mubr.bf16.mxu1 %v7756_v60 }
 0xa9c   :  { %3108 = vmatpush1.bf16.msra.mxu0 %v7104_v5  ;;  %3151 = vmatpush1.bf16.msra.mxu1 %v7109_v47 }
 0xa9d   :  { %3109 = vmatprep.subr.bf16.mxu0 %v7106_v34  ;;  %3152 = vmatprep.subr.bf16.mxu1 %v7114_v45 }
 0xaa0   :  { %3110 = vmatpush1.bf16.msra.mxu0 %v7112_v52  ;;  %3153 = vmatpush1.bf16.msra.mxu1 %v7120_v62 }
 0xaa1   :  { %3111 = vmatprep.subr.bf16.mxu0 %v7117_v17  ;;  %3154 = vmatprep.subr.bf16.mxu1 %v7123_v59 }
 0xaa4   :  { %3112 = vmatpush1.bf16.msra.mxu0 %v7126_v3  ;;  %3155 = vmatpush1.bf16.msra.mxu1 %v7132_v25 }
 0xaa5   :  { %3113 = vmatprep.subr.bf16.mxu0 %v7129_v12  ;;  %3156 = vmatprep.subr.bf16.mxu1 %v7135_v42 }
 0xaa8   :  { %3114 = vmatpush1.bf16.msra.mxu0 %v7138_v21  ;;  %3157 = vmatpush1.bf16.msra.mxu1 %v7144_v2 }
 0xaa9   :  { %3115 = vmatprep.subr.bf16.mxu0 %v7141_v58  ;;  %3158 = vmatprep.subr.bf16.mxu1 %v7147_v51 }
 0xaac   :  { %3116 = vmatpush1.bf16.msra.mxu0 %v7150_v6  ;;  %3159 = vmatpush1.bf16.msra.mxu1 %v7156_v16 }
 0xaad   :  { %3117 = vmatprep.subr.bf16.mxu0 %v7153_v4  ;;  %3160 = vmatprep.subr.bf16.mxu1 %v7166_v35 }
 0xab0   :  { %3118 = vmatpush1.bf16.msra.mxu0 %v7160_v24  ;;  %3161 = vmatpush1.bf16.msra.mxu1 %v7168_v61 }
 0xab1   :  { %3119 = vmatprep.subr.bf16.mxu0 %v7164_v63  ;;  %3162 = vmatprep.subr.bf16.mxu1 %v7170_v37 }
 0xab4   :  { %3120 = vmatpush1.bf16.msra.mxu0 %v7174_v41  ;;  %3163 = vmatpush1.bf16.msra.mxu1 %v7178_v43 }
 0xab5   :  { %3257 = vmatprep.subr.bf16.mxu0 %v7059_v14  ;;  %3300 = vmatprep.subr.bf16.mxu1 %v7093_v8 }
 0xb6a   :  { %v2987_v10 = vpop.f32.mrb[32].mxu0  ;;  %v3030_v32 = vpop.f32.mrb[48].mxu1 }
 0xb6b   :  { %v4729_v56 = vadd.f32 %v2987_v10, %v7239_v54  ;;  %v2989_v38 = vpop.f32.mrb[33].mxu0  ;;  %v3032_v9 = vpop.f32.mrb[49].mxu1  ;;  %v4761_v46 = vadd.f32 %v3030_v32, %v7255_v55 }
 0xb6c   :  { %v4730_v48 = vadd.f32 %v2989_v38, %v7243_v18  ;;  %v2991_v49 = vpop.f32.mrb[34].mxu0  ;;  %v3034_v50 = vpop.f32.mrb[50].mxu1  ;;  %v4762_v36 = vadd.f32 %v3032_v9, %v7250_v26 }
 0xb6d   :  { %v4542_v57 = vmul.f32 -1.442695, %v4729_v56  ;;  %v4731_v15 = vadd.f32 %v2991_v49, %v7239_v54  ;;  %v2993_v31 = vpop.f32.mrb[35].mxu0  ;;  %v3036_v20 = vpop.f32.mrb[51].mxu1  ;;  %v4763_v7 = vadd.f32 %v3034_v50, %v7255_v55 }
 0xb6e   :  { %v4544_v27 = vmul.f32 -1.442695, %v4730_v48  ;;  %v4732_v13 = vadd.f32 %v2993_v31, %v7243_v18  ;;  %v4546_v22 = vmul.f32 -1.442695, %v4762_v36  ;;  %v4764_v11 = vadd.f32 %v3036_v20, %v7250_v26 }
 0xb6f   :  { %5370 = vpow2.f32 %v4542_v57  ;;  %v4543_v53 = vmul.f32 -1.442695, %v4731_v15 }
 0xb70   :  { %5372 = vpow2.f32 %v4544_v27  ;;  %v4545_v29 = vmul.f32 -1.442695, %v4732_v13  ;;  %v4547_v56 = vmul.f32 -1.442695, %v4764_v11 }
 0xb71   :  { %5374 = vpow2.f32 %v4543_v53 }
 0xb72   :  { %5376 = vpow2.f32 %v4545_v29 }
 0xb73   :  { %5378 = vtanh.f32 %v4761_v46 }
 0xb74   :  { %5380 = vpow2.f32 %v4546_v22 }
 0xb75   :  { %5382 = vtanh.f32 %v4763_v7 }
 0xb79   :  { %v5371_v33 = vpop.eup %5370 }
 0xb7a   :  { %v5373_v39 = vpop.eup %5372  ;;  %v3053_v10 = vadd.f32 1.0, %v5371_v33 }
 0xb7b   :  { %v3065_v19 = vadd.f32 1.0, %v5373_v39  ;;  %v5375_v1 = vpop.eup %5374 }
 0xb7c   :  { %5384 = vrcp.f32 %v3053_v10  ;;  %v3054_v38 = vadd.f32 1.0, %v5375_v1  ;;  %v5377_v9 = vpop.eup %5376 }
 0xb7d   :  { %5386 = vrcp.f32 %v3065_v19  ;;  %v3066_v32 = vadd.f32 1.0, %v5377_v9  ;;  %v5379_v48 = vpop.eup %5378 }
 0xb7e   :  { %5388 = vpow2.f32 %v4547_v56  ;;  %v5381_v49 = vpop.eup %5380 }
 0xb7f   :  { %5390 = vrcp.f32 %v3054_v38  ;;  %v5383_v50 = vpop.eup %5382  ;;  %v3079_v13 = vadd.f32 1.0, %v5381_v49 }
 0xb80   :  { %5392 = vrcp.f32 %v3066_v32 }
 0xb81   :  { %5394 = vrcp.f32 %v3079_v13 }
 0xb86   :  { %v5385_v57 = vpop.eup %5384 }
 0xb87   :  { %v5387_v15 = vpop.eup %5386  ;;  %v3087_v31 = vmul.f32 %v5385_v57, %v5379_v48 }
 0xb88   :  { %v5389_v20 = vpop.eup %5388  ;;  %v3085_v27 = vmul.f32 0.0, %v5387_v15 }
 0xb89   :  { %v5391_v44 = vpop.eup %5390  ;;  %v3080_v36 = vadd.f32 1.0, %v5389_v20 }
 0xb8a   :  { %v7261_v53 = vadd.f32 %v3087_v31, %v3085_v27  ;;  %v3088_v29 = vmul.f32 %v5391_v44, %v5383_v50  ;;  %v5393_v28 = vpop.eup %5392 }
 0xb8b   :  { %v3086_v46 = vmul.f32 0.0, %v5393_v28  ;;  %v5395_v11 = vpop.eup %5394 }
 0xb8c   :  { %5396 = vtanh.f32 %v7261_v53 }
 0xb8d   :  { %v7264_v22 = vadd.f32 %v3088_v29, %v3086_v46  ;;  %5398 = vrcp.f32 %v3080_v36 }
 0xb8f   :  { %5400 = vtanh.f32 %v7264_v22 }
 0xb96   :  { %v5397_v7 = vpop.eup %5396 }
 0xb97   :  { %v5399_v33 = vpop.eup %5398  ;;  %v3093_v10 = vmul.f32 %v5397_v7, %v5395_v11 }
 0xb99   :  { %v5401_v39 = vpop.eup %5400 }
 0xb9a   :  { %v3094_v56 = vmul.f32 %v5401_v39, %v5399_v33 }
 0xb9c   :  { %v7267_v19 = vpack.c.bf16 %v3094_v56, %v3093_v10 }
 0xb9e   :  { %3138 = vmatmul.mubr.bf16.vlgmr.msra.gmra.mrb[36].mxu0 %v7267_v19  ;;  %3181 = vmatmul.mubr.bf16.vlgmr.msra.gmra.mrb[52].mxu1 %v7267_v19 }
 0xb9f   :  { %3258 = vmatpush1.bf16.msra.mxu0 %v7062_v0  ;;  %3301 = vmatpush1.bf16.msra.mxu1 %v7095_v30 }
 0xba0   :  { %3259 = vmatprep.subr.bf16.mxu0 %v7098_v40  ;;  %3302 = vmatprep.subr.bf16.mxu1 %v7101_v23 }
 0xba1   :  { %3289 = vmatprep.mubr.bf16.mxu0 %v7756_v60  ;;  %3332 = vmatprep.mubr.bf16.mxu1 %v7756_v60 }
 0xba3   :  { %3260 = vmatpush1.bf16.msra.mxu0 %v7104_v5  ;;  %3303 = vmatpush1.bf16.msra.mxu1 %v7109_v47 }
 0xba4   :  { %3261 = vmatprep.subr.bf16.mxu0 %v7106_v34  ;;  %3304 = vmatprep.subr.bf16.mxu1 %v7114_v45 }
 0xba7   :  { %3262 = vmatpush1.bf16.msra.mxu0 %v7112_v52  ;;  %3305 = vmatpush1.bf16.msra.mxu1 %v7120_v62 }
 0xba8   :  { %3263 = vmatprep.subr.bf16.mxu0 %v7117_v17  ;;  %3306 = vmatprep.subr.bf16.mxu1 %v7123_v59 }
 0xbab   :  { %3264 = vmatpush1.bf16.msra.mxu0 %v7126_v3  ;;  %3307 = vmatpush1.bf16.msra.mxu1 %v7132_v25 }
 0xbac   :  { %3265 = vmatprep.subr.bf16.mxu0 %v7129_v12  ;;  %3308 = vmatprep.subr.bf16.mxu1 %v7135_v42 }
 0xbaf   :  { %3266 = vmatpush1.bf16.msra.mxu0 %v7138_v21  ;;  %3309 = vmatpush1.bf16.msra.mxu1 %v7144_v2 }
 0xbb0   :  { %3267 = vmatprep.subr.bf16.mxu0 %v7141_v58  ;;  %3310 = vmatprep.subr.bf16.mxu1 %v7147_v51 }
 0xbb3   :  { %3268 = vmatpush1.bf16.msra.mxu0 %v7150_v6  ;;  %3311 = vmatpush1.bf16.msra.mxu1 %v7156_v16 }
 0xbb4   :  { %3269 = vmatprep.subr.bf16.mxu0 %v7153_v4  ;;  %3312 = vmatprep.subr.bf16.mxu1 %v7166_v35 }
 0xbb7   :  { %3270 = vmatpush1.bf16.msra.mxu0 %v7160_v24  ;;  %3313 = vmatpush1.bf16.msra.mxu1 %v7168_v61 }
 0xbb8   :  { %3271 = vmatprep.subr.bf16.mxu0 %v7164_v63  ;;  %3314 = vmatprep.subr.bf16.mxu1 %v7170_v37 }
 0xbbb   :  { %3272 = vmatpush1.bf16.msra.mxu0 %v7174_v41  ;;  %3315 = vmatpush1.bf16.msra.mxu1 %v7178_v43 }
 0xbbc   :  { %3409 = vmatprep.subr.bf16.mxu0 %v7059_v14  ;;  %3452 = vmatprep.subr.bf16.mxu1 %v7093_v8 }
 0xc71   :  { %v3139_v1 = vpop.f32.mrb[36].mxu0  ;;  %v3182_v38 = vpop.f32.mrb[52].mxu1 }
 0xc72   :  { %v4733_v9 = vadd.f32 %v3139_v1, %v7239_v54  ;;  %v3141_v32 = vpop.f32.mrb[37].mxu0  ;;  %v3184_v48 = vpop.f32.mrb[53].mxu1  ;;  %v4765_v46 = vadd.f32 %v3182_v38, %v7255_v55 }
 0xc73   :  { %v4734_v49 = vadd.f32 %v3141_v32, %v7243_v18  ;;  %v3143_v50 = vpop.f32.mrb[38].mxu0  ;;  %v3186_v57 = vpop.f32.mrb[54].mxu1  ;;  %v4766_v36 = vadd.f32 %v3184_v48, %v7250_v26 }
 0xc74   :  { %v4548_v15 = vmul.f32 -1.442695, %v4733_v9  ;;  %v4735_v31 = vadd.f32 %v3143_v50, %v7239_v54  ;;  %v3145_v20 = vpop.f32.mrb[39].mxu0  ;;  %v3188_v27 = vpop.f32.mrb[55].mxu1  ;;  %v4767_v33 = vadd.f32 %v3186_v57, %v7255_v55 }
 0xc75   :  { %v4550_v44 = vmul.f32 -1.442695, %v4734_v49  ;;  %v4736_v13 = vadd.f32 %v3145_v20, %v7243_v18  ;;  %v4552_v11 = vmul.f32 -1.442695, %v4766_v36  ;;  %v4768_v7 = vadd.f32 %v3188_v27, %v7250_v26 }
 0xc76   :  { %5402 = vpow2.f32 %v4548_v15  ;;  %v4549_v29 = vmul.f32 -1.442695, %v4735_v31 }
 0xc77   :  { %5404 = vpow2.f32 %v4550_v44  ;;  %v4551_v28 = vmul.f32 -1.442695, %v4736_v13  ;;  %v4553_v1 = vmul.f32 -1.442695, %v4768_v7 }
 0xc78   :  { %5406 = vpow2.f32 %v4549_v29 }
 0xc79   :  { %5408 = vpow2.f32 %v4551_v28 }
 0xc7a   :  { %5410 = vtanh.f32 %v4765_v46 }
 0xc7b   :  { %5412 = vpow2.f32 %v4552_v11 }
 0xc7c   :  { %5414 = vtanh.f32 %v4767_v33 }
 0xc80   :  { %v5403_v39 = vpop.eup %5402 }
 0xc81   :  { %v5405_v10 = vpop.eup %5404  ;;  %v3205_v56 = vadd.f32 1.0, %v5403_v39 }
 0xc82   :  { %v3217_v9 = vadd.f32 1.0, %v5405_v10  ;;  %v5407_v32 = vpop.eup %5406 }
 0xc83   :  { %5416 = vrcp.f32 %v3205_v56  ;;  %v3206_v48 = vadd.f32 1.0, %v5407_v32  ;;  %v5409_v49 = vpop.eup %5408 }
 0xc84   :  { %5418 = vrcp.f32 %v3217_v9  ;;  %v3218_v38 = vadd.f32 1.0, %v5409_v49  ;;  %v5411_v50 = vpop.eup %5410 }
 0xc85   :  { %5420 = vpow2.f32 %v4553_v1  ;;  %v5413_v15 = vpop.eup %5412 }
 0xc86   :  { %5422 = vrcp.f32 %v3206_v48  ;;  %v5415_v57 = vpop.eup %5414  ;;  %v3231_v28 = vadd.f32 1.0, %v5413_v15 }
 0xc87   :  { %5424 = vrcp.f32 %v3218_v38 }
 0xc88   :  { %5426 = vrcp.f32 %v3231_v28 }
 0xc8d   :  { %v5417_v31 = vpop.eup %5416 }
 0xc8e   :  { %v5419_v20 = vpop.eup %5418  ;;  %v3239_v27 = vmul.f32 %v5417_v31, %v5411_v50 }
 0xc8f   :  { %v5421_v44 = vpop.eup %5420  ;;  %v3237_v13 = vmul.f32 %v5419_v20, %v7261_v53 }
 0xc90   :  { %v5423_v29 = vpop.eup %5422  ;;  %v3232_v7 = vadd.f32 1.0, %v5421_v44 }
 0xc91   :  { %v7314_v36 = vadd.f32 %v3239_v27, %v3237_v13  ;;  %v3240_v46 = vmul.f32 %v5423_v29, %v5415_v57  ;;  %v5425_v11 = vpop.eup %5424 }
 0xc92   :  { %v3238_v33 = vmul.f32 %v5425_v11, %v7264_v22  ;;  %v5427_v10 = vpop.eup %5426 }
 0xc93   :  { %5428 = vtanh.f32 %v7314_v36 }
 0xc94   :  { %v7318_v39 = vadd.f32 %v3240_v46, %v3238_v33  ;;  %5430 = vrcp.f32 %v3232_v7 }
 0xc96   :  { %5432 = vtanh.f32 %v7318_v39 }
 0xc9d   :  { %v5429_v56 = vpop.eup %5428 }
 0xc9e   :  { %v5431_v53 = vpop.eup %5430  ;;  %v3245_v9 = vmul.f32 %v5429_v56, %v5427_v10 }
 0xca0   :  { %v5433_v1 = vpop.eup %5432 }
 0xca1   :  { %v3246_v32 = vmul.f32 %v5433_v1, %v5431_v53 }
 0xca3   :  { %v7321_v48 = vpack.c.bf16 %v3246_v32, %v3245_v9 }
 0xca5   :  { %3290 = vmatmul.mubr.bf16.vlgmr.msra.gmra.mrb[40].mxu0 %v7321_v48  ;;  %3333 = vmatmul.mubr.bf16.vlgmr.msra.gmra.mrb[56].mxu1 %v7321_v48 }
 0xca6   :  { %3410 = vmatpush1.bf16.msra.mxu0 %v7062_v0  ;;  %3453 = vmatpush1.bf16.msra.mxu1 %v7095_v30 }
 0xca7   :  { %3411 = vmatprep.subr.bf16.mxu0 %v7098_v40  ;;  %3454 = vmatprep.subr.bf16.mxu1 %v7101_v23 }
 0xca8   :  { %3441 = vmatprep.mubr.bf16.mxu0 %v7756_v60  ;;  %3484 = vmatprep.mubr.bf16.mxu1 %v7756_v60 }
 0xcaa   :  { %3412 = vmatpush1.bf16.msra.mxu0 %v7104_v5  ;;  %3455 = vmatpush1.bf16.msra.mxu1 %v7109_v47 }
 0xcab   :  { %3413 = vmatprep.subr.bf16.mxu0 %v7106_v34  ;;  %3456 = vmatprep.subr.bf16.mxu1 %v7114_v45 }
 0xcae   :  { %3414 = vmatpush1.bf16.msra.mxu0 %v7112_v52  ;;  %3457 = vmatpush1.bf16.msra.mxu1 %v7120_v62 }
 0xcaf   :  { %3415 = vmatprep.subr.bf16.mxu0 %v7117_v17  ;;  %3458 = vmatprep.subr.bf16.mxu1 %v7123_v59 }
 0xcb2   :  { %3416 = vmatpush1.bf16.msra.mxu0 %v7126_v3  ;;  %3459 = vmatpush1.bf16.msra.mxu1 %v7132_v25 }
 0xcb3   :  { %3417 = vmatprep.subr.bf16.mxu0 %v7129_v12  ;;  %3460 = vmatprep.subr.bf16.mxu1 %v7135_v42 }
 0xcb6   :  { %3418 = vmatpush1.bf16.msra.mxu0 %v7138_v21  ;;  %3461 = vmatpush1.bf16.msra.mxu1 %v7144_v2 }
 0xcb7   :  { %3419 = vmatprep.subr.bf16.mxu0 %v7141_v58  ;;  %3462 = vmatprep.subr.bf16.mxu1 %v7147_v51 }
 0xcba   :  { %3420 = vmatpush1.bf16.msra.mxu0 %v7150_v6  ;;  %3463 = vmatpush1.bf16.msra.mxu1 %v7156_v16 }
 0xcbb   :  { %3421 = vmatprep.subr.bf16.mxu0 %v7153_v4  ;;  %3464 = vmatprep.subr.bf16.mxu1 %v7166_v35 }
 0xcbe   :  { %3422 = vmatpush1.bf16.msra.mxu0 %v7160_v24  ;;  %3465 = vmatpush1.bf16.msra.mxu1 %v7168_v61 }
 0xcbf   :  { %3423 = vmatprep.subr.bf16.mxu0 %v7164_v63  ;;  %3466 = vmatprep.subr.bf16.mxu1 %v7170_v37 }
 0xcc2   :  { %3424 = vmatpush1.bf16.msra.mxu0 %v7174_v41  ;;  %3467 = vmatpush1.bf16.msra.mxu1 %v7178_v43 }
 0xcc3   :  { %3561 = vmatprep.subr.bf16.mxu0 %v7059_v14  ;;  %3604 = vmatprep.subr.bf16.mxu1 %v7093_v8 }
 0xd78   :  { %v3291_v22 = vpop.f32.mrb[40].mxu0  ;;  %v3334_v49 = vpop.f32.mrb[56].mxu1 }
 0xd79   :  { %v4737_v38 = vadd.f32 %v3291_v22, %v7239_v54  ;;  %v3293_v50 = vpop.f32.mrb[41].mxu0  ;;  %v3336_v15 = vpop.f32.mrb[57].mxu1  ;;  %v4769_v33 = vadd.f32 %v3334_v49, %v7255_v55 }
 0xd7a   :  { %v4738_v57 = vadd.f32 %v3293_v50, %v7243_v18  ;;  %v3295_v31 = vpop.f32.mrb[42].mxu0  ;;  %v3338_v20 = vpop.f32.mrb[58].mxu1  ;;  %v4770_v7 = vadd.f32 %v3336_v15, %v7250_v26 }
 0xd7b   :  { %v4554_v27 = vmul.f32 -1.442695, %v4737_v38  ;;  %v4739_v44 = vadd.f32 %v3295_v31, %v7239_v54  ;;  %v3297_v13 = vpop.f32.mrb[43].mxu0  ;;  %v3340_v29 = vpop.f32.mrb[59].mxu1  ;;  %v4771_v53 = vadd.f32 %v3338_v20, %v7255_v55 }
 0xd7c   :  { %v4556_v28 = vmul.f32 -1.442695, %v4738_v57  ;;  %v4740_v14 = vadd.f32 %v3297_v13, %v7243_v18  ;;  %v4558_v10 = vmul.f32 -1.442695, %v4770_v7  ;;  %v4772_v56 = vadd.f32 %v3340_v29, %v7250_v26 }
 0xd7d   :  { %5434 = vpow2.f32 %v4554_v27  ;;  %v4555_v46 = vmul.f32 -1.442695, %v4739_v44 }
 0xd7e   :  { %5436 = vpow2.f32 %v4556_v28  ;;  %v4557_v11 = vmul.f32 -1.442695, %v4740_v14  ;;  %v4559_v22 = vmul.f32 -1.442695, %v4772_v56 }
 0xd7f   :  { %5438 = vpow2.f32 %v4555_v46 }
 0xd80   :  { %5440 = vpow2.f32 %v4557_v11 }
 0xd81   :  { %5442 = vtanh.f32 %v4769_v33 }
 0xd82   :  { %5444 = vpow2.f32 %v4558_v10 }
 0xd83   :  { %5446 = vtanh.f32 %v4771_v53 }
 0xd87   :  { %v5435_v1 = vpop.eup %5434 }
 0xd88   :  { %v5437_v9 = vpop.eup %5436  ;;  %v3357_v32 = vadd.f32 1.0, %v5435_v1 }
 0xd89   :  { %v3369_v38 = vadd.f32 1.0, %v5437_v9  ;;  %v5439_v50 = vpop.eup %5438 }
 0xd8a   :  { %5448 = vrcp.f32 %v3357_v32  ;;  %v3358_v15 = vadd.f32 1.0, %v5439_v50  ;;  %v5441_v57 = vpop.eup %5440 }
 0xd8b   :  { %5450 = vrcp.f32 %v3369_v38  ;;  %v3370_v49 = vadd.f32 1.0, %v5441_v57  ;;  %v5443_v31 = vpop.eup %5442 }
 0xd8c   :  { %5452 = vpow2.f32 %v4559_v22  ;;  %v5445_v27 = vpop.eup %5444 }
 0xd8d   :  { %5454 = vrcp.f32 %v3358_v15  ;;  %v5447_v20 = vpop.eup %5446  ;;  %v3383_v11 = vadd.f32 1.0, %v5445_v27 }
 0xd8e   :  { %5456 = vrcp.f32 %v3370_v49 }
 0xd8f   :  { %5458 = vrcp.f32 %v3383_v11 }
 0xd94   :  { %v5449_v44 = vpop.eup %5448 }
 0xd95   :  { %v5451_v13 = vpop.eup %5450  ;;  %v3391_v29 = vmul.f32 %v5449_v44, %v5443_v31 }
 0xd96   :  { %v5453_v28 = vpop.eup %5452  ;;  %v3389_v14 = vmul.f32 %v5451_v13, %v7314_v36 }
 0xd97   :  { %v5455_v46 = vpop.eup %5454  ;;  %v3384_v56 = vadd.f32 1.0, %v5453_v28 }
 0xd98   :  { %v7368_v7 = vadd.f32 %v3391_v29, %v3389_v14  ;;  %v3392_v33 = vmul.f32 %v5455_v46, %v5447_v20  ;;  %v5457_v10 = vpop.eup %5456 }
 0xd99   :  { %v3390_v53 = vmul.f32 %v5457_v10, %v7318_v39  ;;  %v5459_v9 = vpop.eup %5458 }
 0xd9a   :  { %5460 = vtanh.f32 %v7368_v7 }
 0xd9b   :  { %v7372_v1 = vadd.f32 %v3392_v33, %v3390_v53  ;;  %5462 = vrcp.f32 %v3384_v56 }
 0xd9d   :  { %5464 = vtanh.f32 %v7372_v1 }
 0xda4   :  { %v5461_v32 = vpop.eup %5460 }
 0xda5   :  { %v5463_v36 = vpop.eup %5462  ;;  %v3397_v38 = vmul.f32 %v5461_v32, %v5459_v9 }
 0xda7   :  { %v5465_v22 = vpop.eup %5464 }
 0xda8   :  { %v3398_v50 = vmul.f32 %v5465_v22, %v5463_v36 }
 0xdaa   :  { %v7375_v15 = vpack.c.bf16 %v3398_v50, %v3397_v38  ;;  %v7438_v50 = vld [vmem:[#allocation16 + $0x8] ss:$16 sps:$4 sm:$0xff]  }
 0xdac   :  { %3442 = vmatmul.mubr.bf16.vlgmr.msra.gmra.mrb[44].mxu0 %v7375_v15  ;;  %3485 = vmatmul.mubr.bf16.vlgmr.msra.gmra.mrb[60].mxu1 %v7375_v15 }
 0xdad   :  { %3562 = vmatpush1.bf16.msra.mxu0 %v7062_v0  ;;  %3605 = vmatpush1.bf16.msra.mxu1 %v7095_v30  ;;  %v7411_v0 = vld [vmem:[#allocation16 + $0x4] ss:$16 sps:$4 sm:$0xff]  }
 0xdae   :  { %3563 = vmatprep.subr.bf16.mxu0 %v7098_v40  ;;  %3606 = vmatprep.subr.bf16.mxu1 %v7101_v23 }
 0xdaf   :  { %3593 = vmatprep.mubr.bf16.mxu0 %v7756_v60  ;;  %3636 = vmatprep.mubr.bf16.mxu1 %v7756_v60 }
 0xdb1   :  { %3564 = vmatpush1.bf16.msra.mxu0 %v7104_v5  ;;  %3607 = vmatpush1.bf16.msra.mxu1 %v7109_v47 }
 0xdb2   :  { %3565 = vmatprep.subr.bf16.mxu0 %v7106_v34  ;;  %3608 = vmatprep.subr.bf16.mxu1 %v7114_v45 }
 0xdb5   :  { %3566 = vmatpush1.bf16.msra.mxu0 %v7112_v52  ;;  %3609 = vmatpush1.bf16.msra.mxu1 %v7120_v62 }
 0xdb6   :  { %3567 = vmatprep.subr.bf16.mxu0 %v7117_v17  ;;  %3610 = vmatprep.subr.bf16.mxu1 %v7123_v59 }
 0xdb9   :  { %3568 = vmatpush1.bf16.msra.mxu0 %v7126_v3  ;;  %3611 = vmatpush1.bf16.msra.mxu1 %v7132_v25 }
 0xdba   :  { %3569 = vmatprep.subr.bf16.mxu0 %v7129_v12  ;;  %3612 = vmatprep.subr.bf16.mxu1 %v7135_v42 }
 0xdbd   :  { %3570 = vmatpush1.bf16.msra.mxu0 %v7138_v21  ;;  %3613 = vmatpush1.bf16.msra.mxu1 %v7144_v2 }
 0xdbe   :  { %3571 = vmatprep.subr.bf16.mxu0 %v7141_v58  ;;  %3614 = vmatprep.subr.bf16.mxu1 %v7147_v51 }
 0xdc1   :  { %3572 = vmatpush1.bf16.msra.mxu0 %v7150_v6  ;;  %3615 = vmatpush1.bf16.msra.mxu1 %v7156_v16 }
 0xdc2   :  { %3573 = vmatprep.subr.bf16.mxu0 %v7153_v4  ;;  %3616 = vmatprep.subr.bf16.mxu1 %v7166_v35 }
 0xdc5   :  { %3574 = vmatpush1.bf16.msra.mxu0 %v7160_v24  ;;  %3617 = vmatpush1.bf16.msra.mxu1 %v7168_v61 }
 0xdc6   :  { %3575 = vmatprep.subr.bf16.mxu0 %v7164_v63  ;;  %3618 = vmatprep.subr.bf16.mxu1 %v7170_v37 }
 0xdc9   :  { %3576 = vmatpush1.bf16.msra.mxu0 %v7174_v41  ;;  %3619 = vmatpush1.bf16.msra.mxu1 %v7178_v43 }
 0xdca   :  { %3713 = vmatprep.subr.bf16.mxu0 %v7411_v0  ;;  %3756 = vmatprep.subr.bf16.mxu1 %v7093_v8 }
 0xe7f   :  { %v3443_v30 = vpop.f32.mrb[44].mxu0  ;;  %v3486_v40 = vpop.f32.mrb[60].mxu1 }
 0xe80   :  { %v4741_v23 = vadd.f32 %v3443_v30, %v7239_v54  ;;  %v3445_v5 = vpop.f32.mrb[45].mxu0  ;;  %v3488_v34 = vpop.f32.mrb[61].mxu1  ;;  %v4773_v58 = vadd.f32 %v3486_v40, %v7255_v55  ;;  %v7441_v30 = vld [vmem:[#allocation16 + $0x24] ss:$16 sps:$4 sm:$0xff]   ;;  %v7444_v40 = vld [vmem:[#allocation16 + $0x2c] ss:$16 sps:$4 sm:$0xff]  }
 0xe81   :  { %v4742_v47 = vadd.f32 %v3445_v5, %v7243_v18  ;;  %v3447_v52 = vpop.f32.mrb[46].mxu0  ;;  %v3490_v45 = vpop.f32.mrb[62].mxu1  ;;  %v4774_v21 = vadd.f32 %v3488_v34, %v7250_v26  ;;  %v7452_v5 = vld [vmem:[#allocation16 + $0x28] ss:$16 sps:$4 sm:$0xff]   ;;  %v7455_v34 = vld [vmem:[#allocation16 + $0x44] ss:$16 sps:$4 sm:$0xff]  }
 0xe82   :  { %v4560_v17 = vmul.f32 -1.442695, %v4741_v23  ;;  %v4743_v62 = vadd.f32 %v3447_v52, %v7239_v54  ;;  %v3449_v59 = vpop.f32.mrb[47].mxu0  ;;  %v3492_v3 = vpop.f32.mrb[63].mxu1  ;;  %v4775_v6 = vadd.f32 %v3490_v45, %v7255_v55  ;;  %v7449_v23 = vld [vmem:[#allocation16 + $0x20] ss:$16 sps:$4 sm:$0xff]  }
 0xe83   :  { %v4562_v12 = vmul.f32 -1.442695, %v4742_v47  ;;  %v4744_v25 = vadd.f32 %v3449_v59, %v7243_v18  ;;  %v4564_v2 = vmul.f32 -1.442695, %v4774_v21  ;;  %v4776_v51 = vadd.f32 %v3492_v3, %v7250_v26  ;;  %v7458_v47 = vld [vmem:[#allocation16 + $0x4c] ss:$16 sps:$4 sm:$0xff]  }
 0xe84   :  { %5466 = vpow2.f32 %v4560_v17  ;;  %v4561_v8 = vmul.f32 -1.442695, %v4743_v62  ;;  %v7461_v52 = vld [vmem:[#allocation16 + $0x40] ss:$16 sps:$4 sm:$0xff]   ;;  %v7464_v45 = vld [vmem:[#allocation16 + $0x48] ss:$16 sps:$4 sm:$0xff]  }
 0xe85   :  { %5468 = vpow2.f32 %v4562_v12  ;;  %v4563_v42 = vmul.f32 -1.442695, %v4744_v25  ;;  %v4565_v63 = vmul.f32 -1.442695, %v4776_v51  ;;  %v7467_v17 = vld [vmem:[#allocation16 + $0x64] ss:$16 sps:$4 sm:$0xff]  }
 0xe86   :  { %5470 = vpow2.f32 %v4561_v8  ;;  %v7470_v62 = vld [vmem:[#allocation16 + $0x6c] ss:$16 sps:$4 sm:$0xff]   ;;  %v7473_v59 = vld [vmem:[#allocation16 + $0x60] ss:$16 sps:$4 sm:$0xff]   ;;  %v7476_v3 = vld [vmem:[#allocation16 + $0x68] ss:$16 sps:$4 sm:$0xff]  }
 0xe87   :  { %5472 = vpow2.f32 %v4563_v42  ;;  %v7479_v12 = vld [vmem:[#allocation16 + $0x84] ss:$16 sps:$4 sm:$0xff]   ;;  %v7482_v25 = vld [vmem:[#allocation16 + $0x8c] ss:$16 sps:$4 sm:$0xff]   ;;  %v7485_v8 = vld [vmem:[#allocation16 + $0x80] ss:$16 sps:$4 sm:$0xff]  }
 0xe88   :  { %5474 = vtanh.f32 %v4773_v58  ;;  %v7488_v42 = vld [vmem:[#allocation16 + $0x88] ss:$16 sps:$4 sm:$0xff]   ;;  %v7491_v21 = vld [vmem:[#allocation16 + $0xa4] ss:$16 sps:$4 sm:$0xff]   ;;  %v7494_v58 = vld [vmem:[#allocation16 + $0xac] ss:$16 sps:$4 sm:$0xff]  }
 0xe89   :  { %5476 = vpow2.f32 %v4564_v2  ;;  %v7497_v2 = vld [vmem:[#allocation16 + $0xa0] ss:$16 sps:$4 sm:$0xff]   ;;  %v7500_v51 = vld [vmem:[#allocation16 + $0xa8] ss:$16 sps:$4 sm:$0xff]  }
 0xe8a   :  { %5478 = vtanh.f32 %v4775_v6  ;;  %v7503_v6 = vld [vmem:[#allocation16 + $0xc4] ss:$16 sps:$4 sm:$0xff]  }
 0xe8e   :  { %v5467_v4 = vpop.eup %5466 }
 0xe8f   :  { %v5469_v16 = vpop.eup %5468  ;;  %v3509_v24 = vadd.f32 1.0, %v5467_v4  ;;  %v7506_v4 = vld [vmem:[#allocation16 + $0xcc] ss:$16 sps:$4 sm:$0xff]  }
 0xe90   :  { %v3521_v35 = vadd.f32 1.0, %v5469_v16  ;;  %v5471_v61 = vpop.eup %5470  ;;  %v7509_v16 = vld [vmem:[#allocation16 + $0xc0] ss:$16 sps:$4 sm:$0xff]  }
 0xe91   :  { %5480 = vrcp.f32 %v3509_v24  ;;  %v3510_v37 = vadd.f32 1.0, %v5471_v61  ;;  %v5473_v41 = vpop.eup %5472  ;;  %v7512_v24 = vld [vmem:[#allocation16 + $0xc8] ss:$16 sps:$4 sm:$0xff]   ;;  %v7521_v61 = vld [vmem:[#allocation16 + $0xe0] ss:$16 sps:$4 sm:$0xff]  }
 0xe92   :  { %5482 = vrcp.f32 %v3521_v35  ;;  %v3522_v43 = vadd.f32 1.0, %v5473_v41  ;;  %v5475_v39 = vpop.eup %5474  ;;  %v7518_v35 = vld [vmem:[#allocation16 + $0xec] ss:$16 sps:$4 sm:$0xff]  }
 0xe93   :  { %5484 = vpow2.f32 %v4565_v63  ;;  %v5477_v57 = vpop.eup %5476  ;;  %v7515_v63 = vld [vmem:[#allocation16 + $0xe4] ss:$16 sps:$4 sm:$0xff]   ;;  %v7528_v41 = vld [vmem:[#allocation16 + $0xc] ss:$16 sps:$4 sm:$0xff]  }
 0xe94   :  { %5486 = vrcp.f32 %v3510_v37  ;;  %v5479_v49 = vpop.eup %5478  ;;  %v3535_v28 = vadd.f32 1.0, %v5477_v57  ;;  %v7524_v37 = vld [vmem:[#allocation16 + $0xe8] ss:$16 sps:$4 sm:$0xff]  }
 0xe95   :  { %5488 = vrcp.f32 %v3522_v43 }
 0xe96   :  { %5490 = vrcp.f32 %v3535_v28 }
 0xe9b   :  { %v5481_v31 = vpop.eup %5480 }
 0xe9c   :  { %v5483_v27 = vpop.eup %5482  ;;  %v3543_v20 = vmul.f32 %v5481_v31, %v5475_v39 }
 0xe9d   :  { %v5485_v44 = vpop.eup %5484  ;;  %v3541_v13 = vmul.f32 %v5483_v27, %v7368_v7 }
 0xe9e   :  { %v5487_v29 = vpop.eup %5486  ;;  %v3536_v33 = vadd.f32 1.0, %v5485_v44 }
 0xe9f   :  { %v7424_v14 = vadd.f32 %v3543_v20, %v3541_v13  ;;  %v3544_v46 = vmul.f32 %v5487_v29, %v5479_v49  ;;  %v5489_v11 = vpop.eup %5488 }
 0xea0   :  { %v3542_v10 = vmul.f32 %v5489_v11, %v7372_v1  ;;  %v5491_v53 = vpop.eup %5490  ;;  %v7435_v1 = vld [vmem:[#allocation16] ss:$16 sps:$4 sm:$0xff]  }
 0xea1   :  { %5492 = vtanh.f32 %v7424_v14 }
 0xea2   :  { %v7428_v56 = vadd.f32 %v3544_v46, %v3542_v10  ;;  %5494 = vrcp.f32 %v3536_v33 }
 0xea4   :  { %5496 = vtanh.f32 %v7428_v56 }
 0xeab   :  { %v5493_v9 = vpop.eup %5492 }
 0xeac   :  { %v5495_v7 = vpop.eup %5494  ;;  %v3549_v36 = vmul.f32 %v5493_v9, %v5491_v53 }
 0xeae   :  { %v5497_v32 = vpop.eup %5496 }
 0xeaf   :  { %v3550_v22 = vmul.f32 %v5497_v32, %v5495_v7 }
 0xeb1   :  { %v7431_v38 = vpack.c.bf16 %v3550_v22, %v3549_v36 }
 0xeb3   :  { %3594 = vmatmul.mubr.bf16.vlgmr.msra.gmra.mrb[48].mxu0 %v7431_v38  ;;  %3637 = vmatmul.mubr.bf16.vlgmr.msra.gmra.mrb[64].mxu1 %v7431_v38 }
 0xeb4   :  { %3714 = vmatpush1.bf16.msra.mxu0 %v7435_v1  ;;  %3757 = vmatpush1.bf16.msra.mxu1 %v7438_v50 }
 0xeb5   :  { %3715 = vmatprep.subr.bf16.mxu0 %v7441_v30  ;;  %3758 = vmatprep.subr.bf16.mxu1 %v7444_v40 }
 0xeb6   :  { %3745 = vmatprep.mubr.bf16.mxu0 %v7756_v60  ;;  %3788 = vmatprep.mubr.bf16.mxu1 %v7756_v60 }
 0xeb8   :  { %3716 = vmatpush1.bf16.msra.mxu0 %v7449_v23  ;;  %3759 = vmatpush1.bf16.msra.mxu1 %v7452_v5 }
 0xeb9   :  { %3717 = vmatprep.subr.bf16.mxu0 %v7455_v34  ;;  %3760 = vmatprep.subr.bf16.mxu1 %v7458_v47 }
 0xebc   :  { %3718 = vmatpush1.bf16.msra.mxu0 %v7461_v52  ;;  %3761 = vmatpush1.bf16.msra.mxu1 %v7464_v45 }
 0xebd   :  { %3719 = vmatprep.subr.bf16.mxu0 %v7467_v17  ;;  %3762 = vmatprep.subr.bf16.mxu1 %v7470_v62 }
 0xec0   :  { %3720 = vmatpush1.bf16.msra.mxu0 %v7473_v59  ;;  %3763 = vmatpush1.bf16.msra.mxu1 %v7476_v3 }
 0xec1   :  { %3721 = vmatprep.subr.bf16.mxu0 %v7479_v12  ;;  %3764 = vmatprep.subr.bf16.mxu1 %v7482_v25 }
 0xec4   :  { %3722 = vmatpush1.bf16.msra.mxu0 %v7485_v8  ;;  %3765 = vmatpush1.bf16.msra.mxu1 %v7488_v42 }
 0xec5   :  { %3723 = vmatprep.subr.bf16.mxu0 %v7491_v21  ;;  %3766 = vmatprep.subr.bf16.mxu1 %v7494_v58 }
 0xec8   :  { %3724 = vmatpush1.bf16.msra.mxu0 %v7497_v2  ;;  %3767 = vmatpush1.bf16.msra.mxu1 %v7500_v51 }
 0xec9   :  { %3725 = vmatprep.subr.bf16.mxu0 %v7503_v6  ;;  %3768 = vmatprep.subr.bf16.mxu1 %v7506_v4 }
 0xecc   :  { %3726 = vmatpush1.bf16.msra.mxu0 %v7509_v16  ;;  %3769 = vmatpush1.bf16.msra.mxu1 %v7512_v24 }
 0xecd   :  { %3727 = vmatprep.subr.bf16.mxu0 %v7515_v63  ;;  %3770 = vmatprep.subr.bf16.mxu1 %v7518_v35 }
 0xed0   :  { %3728 = vmatpush1.bf16.msra.mxu0 %v7521_v61  ;;  %3771 = vmatpush1.bf16.msra.mxu1 %v7524_v37 }
 0xed1   :  { %3865 = vmatprep.subr.bf16.mxu0 %v7411_v0  ;;  %3908 = vmatprep.subr.bf16.mxu1 %v7528_v41 }
 0xf86   :  { %v3595_v43 = vpop.f32.mrb[48].mxu0  ;;  %v3638_v39 = vpop.f32.mrb[64].mxu1 }
 0xf87   :  { %v4745_v57 = vadd.f32 %v3595_v43, %v7239_v54  ;;  %v3597_v49 = vpop.f32.mrb[49].mxu0  ;;  %v3640_v31 = vpop.f32.mrb[65].mxu1  ;;  %v4777_v7 = vadd.f32 %v3638_v39, %v7255_v55 }
 0xf88   :  { %v4746_v27 = vadd.f32 %v3597_v49, %v7243_v18  ;;  %v3599_v20 = vpop.f32.mrb[50].mxu0  ;;  %v3642_v44 = vpop.f32.mrb[66].mxu1  ;;  %v4778_v9 = vadd.f32 %v3640_v31, %v7250_v26 }
 0xf89   :  { %v4566_v13 = vmul.f32 -1.442695, %v4745_v57  ;;  %v4747_v29 = vadd.f32 %v3599_v20, %v7239_v54  ;;  %v3601_v28 = vpop.f32.mrb[51].mxu0  ;;  %v3644_v46 = vpop.f32.mrb[67].mxu1  ;;  %v4779_v22 = vadd.f32 %v3642_v44, %v7255_v55 }
 0xf8a   :  { %v4568_v11 = vmul.f32 -1.442695, %v4746_v27  ;;  %v4748_v33 = vadd.f32 %v3601_v28, %v7243_v18  ;;  %v4570_v32 = vmul.f32 -1.442695, %v4778_v9  ;;  %v4780_v36 = vadd.f32 %v3644_v46, %v7250_v26 }
 0xf8b   :  { %5498 = vpow2.f32 %v4566_v13  ;;  %v4567_v10 = vmul.f32 -1.442695, %v4747_v29 }
 0xf8c   :  { %5500 = vpow2.f32 %v4568_v11  ;;  %v4569_v53 = vmul.f32 -1.442695, %v4748_v33  ;;  %v4571_v27 = vmul.f32 -1.442695, %v4780_v36 }
 0xf8d   :  { %5502 = vpow2.f32 %v4567_v10 }
 0xf8e   :  { %5504 = vpow2.f32 %v4569_v53 }
 0xf8f   :  { %5506 = vtanh.f32 %v4777_v7 }
 0xf90   :  { %5508 = vpow2.f32 %v4570_v32 }
 0xf91   :  { %5510 = vtanh.f32 %v4779_v22 }
 0xf95   :  { %v5499_v43 = vpop.eup %5498 }
 0xf96   :  { %v5501_v57 = vpop.eup %5500  ;;  %v3661_v49 = vadd.f32 1.0, %v5499_v43 }
 0xf97   :  { %v3673_v20 = vadd.f32 1.0, %v5501_v57  ;;  %v5503_v13 = vpop.eup %5502 }
 0xf98   :  { %5512 = vrcp.f32 %v3661_v49  ;;  %v3662_v31 = vadd.f32 1.0, %v5503_v13  ;;  %v5505_v29 = vpop.eup %5504 }
 0xf99   :  { %5514 = vrcp.f32 %v3673_v20  ;;  %v3674_v39 = vadd.f32 1.0, %v5505_v29  ;;  %v5507_v28 = vpop.eup %5506 }
 0xf9a   :  { %5516 = vpow2.f32 %v4571_v27  ;;  %v5509_v46 = vpop.eup %5508 }
 0xf9b   :  { %5518 = vrcp.f32 %v3662_v31  ;;  %v5511_v44 = vpop.eup %5510  ;;  %v3687_v32 = vadd.f32 1.0, %v5509_v46 }
 0xf9c   :  { %5520 = vrcp.f32 %v3674_v39 }
 0xf9d   :  { %5522 = vrcp.f32 %v3687_v32 }
 0xfa2   :  { %v5513_v11 = vpop.eup %5512 }
 0xfa3   :  { %v5515_v33 = vpop.eup %5514  ;;  %v3695_v10 = vmul.f32 %v5513_v11, %v5507_v28 }
 0xfa4   :  { %v5517_v53 = vpop.eup %5516  ;;  %v3693_v9 = vmul.f32 %v5515_v33, %v7424_v14 }
 0xfa5   :  { %v5519_v7 = vpop.eup %5518  ;;  %v3688_v57 = vadd.f32 1.0, %v5517_v53 }
 0xfa6   :  { %v7540_v36 = vadd.f32 %v3695_v10, %v3693_v9  ;;  %v3696_v22 = vmul.f32 %v5519_v7, %v5511_v44  ;;  %v5521_v43 = vpop.eup %5520 }
 0xfa7   :  { %v3694_v49 = vmul.f32 %v5521_v43, %v7428_v56  ;;  %v5523_v20 = vpop.eup %5522 }
 0xfa8   :  { %5524 = vtanh.f32 %v7540_v36 }
 0xfa9   :  { %v7544_v27 = vadd.f32 %v3696_v22, %v3694_v49  ;;  %5526 = vrcp.f32 %v3688_v57 }
 0xfab   :  { %5528 = vtanh.f32 %v7544_v27 }
 0xfb2   :  { %v5525_v13 = vpop.eup %5524 }
 0xfb3   :  { %v5527_v14 = vpop.eup %5526  ;;  %v3701_v29 = vmul.f32 %v5525_v13, %v5523_v20 }
 0xfb5   :  { %v5529_v31 = vpop.eup %5528 }
 0xfb6   :  { %v3702_v39 = vmul.f32 %v5529_v31, %v5527_v14 }
 0xfb8   :  { %v7547_v28 = vpack.c.bf16 %v3702_v39, %v3701_v29 }
 0xfba   :  { %3746 = vmatmul.mubr.bf16.vlgmr.msra.gmra.mrb[52].mxu0 %v7547_v28  ;;  %3789 = vmatmul.mubr.bf16.vlgmr.msra.gmra.mrb[68].mxu1 %v7547_v28 }
 0xfbb   :  { %3866 = vmatpush1.bf16.msra.mxu0 %v7435_v1  ;;  %3909 = vmatpush1.bf16.msra.mxu1 %v7438_v50 }
 0xfbc   :  { %3867 = vmatprep.subr.bf16.mxu0 %v7441_v30  ;;  %3910 = vmatprep.subr.bf16.mxu1 %v7444_v40 }
 0xfbd   :  { %3897 = vmatprep.mubr.bf16.mxu0 %v7756_v60  ;;  %3940 = vmatprep.mubr.bf16.mxu1 %v7756_v60 }
 0xfbf   :  { %3868 = vmatpush1.bf16.msra.mxu0 %v7449_v23  ;;  %3911 = vmatpush1.bf16.msra.mxu1 %v7452_v5 }
 0xfc0   :  { %3869 = vmatprep.subr.bf16.mxu0 %v7455_v34  ;;  %3912 = vmatprep.subr.bf16.mxu1 %v7458_v47 }
 0xfc3   :  { %3870 = vmatpush1.bf16.msra.mxu0 %v7461_v52  ;;  %3913 = vmatpush1.bf16.msra.mxu1 %v7464_v45 }
 0xfc4   :  { %3871 = vmatprep.subr.bf16.mxu0 %v7467_v17  ;;  %3914 = vmatprep.subr.bf16.mxu1 %v7470_v62 }
 0xfc7   :  { %3872 = vmatpush1.bf16.msra.mxu0 %v7473_v59  ;;  %3915 = vmatpush1.bf16.msra.mxu1 %v7476_v3 }
 0xfc8   :  { %3873 = vmatprep.subr.bf16.mxu0 %v7479_v12  ;;  %3916 = vmatprep.subr.bf16.mxu1 %v7482_v25 }
 0xfcb   :  { %3874 = vmatpush1.bf16.msra.mxu0 %v7485_v8  ;;  %3917 = vmatpush1.bf16.msra.mxu1 %v7488_v42 }
 0xfcc   :  { %3875 = vmatprep.subr.bf16.mxu0 %v7491_v21  ;;  %3918 = vmatprep.subr.bf16.mxu1 %v7494_v58 }
 0xfcf   :  { %3876 = vmatpush1.bf16.msra.mxu0 %v7497_v2  ;;  %3919 = vmatpush1.bf16.msra.mxu1 %v7500_v51 }
 0xfd0   :  { %3877 = vmatprep.subr.bf16.mxu0 %v7503_v6  ;;  %3920 = vmatprep.subr.bf16.mxu1 %v7506_v4 }
 0xfd3   :  { %3878 = vmatpush1.bf16.msra.mxu0 %v7509_v16  ;;  %3921 = vmatpush1.bf16.msra.mxu1 %v7512_v24 }
 0xfd4   :  { %3879 = vmatprep.subr.bf16.mxu0 %v7515_v63  ;;  %3922 = vmatprep.subr.bf16.mxu1 %v7518_v35 }
 0xfd7   :  { %3880 = vmatpush1.bf16.msra.mxu0 %v7521_v61  ;;  %3923 = vmatpush1.bf16.msra.mxu1 %v7524_v37 }
 0xfd8   :  { %4017 = vmatprep.subr.bf16.mxu0 %v7411_v0  ;;  %4060 = vmatprep.subr.bf16.mxu1 %v7528_v41 }
0x108d   :  { %v3747_v56 = vpop.f32.mrb[52].mxu0  ;;  %v3790_v46 = vpop.f32.mrb[68].mxu1 }
0x108e   :  { %v4749_v44 = vadd.f32 %v3747_v56, %v7239_v54  ;;  %v3749_v11 = vpop.f32.mrb[53].mxu0  ;;  %v3792_v33 = vpop.f32.mrb[69].mxu1  ;;  %v4781_v13 = vadd.f32 %v3790_v46, %v7255_v55 }
0x108f   :  { %v4750_v10 = vadd.f32 %v3749_v11, %v7243_v18  ;;  %v3751_v53 = vpop.f32.mrb[54].mxu0  ;;  %v3794_v9 = vpop.f32.mrb[70].mxu1  ;;  %v4782_v20 = vadd.f32 %v3792_v33, %v7250_v26 }
0x1090   :  { %v4572_v7 = vmul.f32 -1.442695, %v4749_v44  ;;  %v4751_v32 = vadd.f32 %v3751_v53, %v7239_v54  ;;  %v3753_v22 = vpop.f32.mrb[55].mxu0  ;;  %v3796_v43 = vpop.f32.mrb[71].mxu1  ;;  %v4783_v29 = vadd.f32 %v3794_v9, %v7255_v55 }
0x1091   :  { %v4574_v57 = vmul.f32 -1.442695, %v4750_v10  ;;  %v4752_v0 = vadd.f32 %v3753_v22, %v7243_v18  ;;  %v4576_v14 = vmul.f32 -1.442695, %v4782_v20  ;;  %v4784_v31 = vadd.f32 %v3796_v43, %v7250_v26 }
0x1092   :  { %5530 = vpow2.f32 %v4572_v7  ;;  %v4573_v41 = vmul.f32 -1.442695, %v4751_v32 }
0x1093   :  { %5532 = vpow2.f32 %v4574_v57  ;;  %v4575_v49 = vmul.f32 -1.442695, %v4752_v0  ;;  %v4577_v11 = vmul.f32 -1.442695, %v4784_v31 }
0x1094   :  { %5534 = vpow2.f32 %v4573_v41 }
0x1095   :  { %5536 = vpow2.f32 %v4575_v49 }
0x1096   :  { %5538 = vtanh.f32 %v4781_v13 }
0x1097   :  { %5540 = vpow2.f32 %v4576_v14 }
0x1098   :  { %5542 = vtanh.f32 %v4783_v29 }
0x109c   :  { %v5531_v39 = vpop.eup %5530 }
0x109d   :  { %v5533_v56 = vpop.eup %5532  ;;  %v3813_v44 = vadd.f32 1.0, %v5531_v39 }
0x109e   :  { %v3825_v10 = vadd.f32 1.0, %v5533_v56  ;;  %v5535_v53 = vpop.eup %5534 }
0x109f   :  { %5544 = vrcp.f32 %v3813_v44  ;;  %v3814_v33 = vadd.f32 1.0, %v5535_v53  ;;  %v5537_v7 = vpop.eup %5536 }
0x10a0   :  { %5546 = vrcp.f32 %v3825_v10  ;;  %v3826_v46 = vadd.f32 1.0, %v5537_v7  ;;  %v5539_v32 = vpop.eup %5538 }
0x10a1   :  { %5548 = vpow2.f32 %v4577_v11  ;;  %v5541_v22 = vpop.eup %5540 }
0x10a2   :  { %5550 = vrcp.f32 %v3814_v33  ;;  %v5543_v9 = vpop.eup %5542  ;;  %v3839_v13 = vadd.f32 1.0, %v5541_v22 }
0x10a3   :  { %5552 = vrcp.f32 %v3826_v46 }
0x10a4   :  { %5554 = vrcp.f32 %v3839_v13 }
0x10a9   :  { %v5545_v43 = vpop.eup %5544 }
0x10aa   :  { %v5547_v57 = vpop.eup %5546  ;;  %v3847_v0 = vmul.f32 %v5545_v43, %v5539_v32 }
0x10ab   :  { %v5549_v41 = vpop.eup %5548  ;;  %v3845_v49 = vmul.f32 %v5547_v57, %v7540_v36 }
0x10ac   :  { %v5551_v20 = vpop.eup %5550  ;;  %v3840_v39 = vadd.f32 1.0, %v5549_v41 }
0x10ad   :  { %v7594_v14 = vadd.f32 %v3847_v0, %v3845_v49  ;;  %v3848_v31 = vmul.f32 %v5551_v20, %v5543_v9  ;;  %v5553_v29 = vpop.eup %5552 }
0x10ae   :  { %v3846_v56 = vmul.f32 %v5553_v29, %v7544_v27  ;;  %v5555_v11 = vpop.eup %5554 }
0x10af   :  { %5556 = vtanh.f32 %v7594_v14 }
0x10b0   :  { %v7598_v44 = vadd.f32 %v3848_v31, %v3846_v56  ;;  %5558 = vrcp.f32 %v3840_v39 }
0x10b2   :  { %5560 = vtanh.f32 %v7598_v44 }
0x10b9   :  { %v5557_v10 = vpop.eup %5556 }
0x10ba   :  { %v5559_v36 = vpop.eup %5558  ;;  %v3853_v33 = vmul.f32 %v5557_v10, %v5555_v11 }
0x10bc   :  { %v5561_v53 = vpop.eup %5560 }
0x10bd   :  { %v3854_v7 = vmul.f32 %v5561_v53, %v5559_v36 }
0x10bf   :  { %v7601_v46 = vpack.c.bf16 %v3854_v7, %v3853_v33 }
0x10c1   :  { %3898 = vmatmul.mubr.bf16.vlgmr.msra.gmra.mrb[56].mxu0 %v7601_v46  ;;  %3941 = vmatmul.mubr.bf16.vlgmr.msra.gmra.mrb[72].mxu1 %v7601_v46 }
0x10c2   :  { %4018 = vmatpush1.bf16.msra.mxu0 %v7435_v1  ;;  %4061 = vmatpush1.bf16.msra.mxu1 %v7438_v50 }
0x10c3   :  { %4019 = vmatprep.subr.bf16.mxu0 %v7441_v30  ;;  %4062 = vmatprep.subr.bf16.mxu1 %v7444_v40 }
0x10c4   :  { %4049 = vmatprep.mubr.bf16.mxu0 %v7756_v60  ;;  %4092 = vmatprep.mubr.bf16.mxu1 %v7756_v60  ;;  %v7637_v60 = vld [vmem:[#allocation19] sm:$0xff]  }
0x10c6   :  { %4020 = vmatpush1.bf16.msra.mxu0 %v7449_v23  ;;  %4063 = vmatpush1.bf16.msra.mxu1 %v7452_v5 }
0x10c7   :  { %4021 = vmatprep.subr.bf16.mxu0 %v7455_v34  ;;  %4064 = vmatprep.subr.bf16.mxu1 %v7458_v47 }
0x10ca   :  { %4022 = vmatpush1.bf16.msra.mxu0 %v7461_v52  ;;  %4065 = vmatpush1.bf16.msra.mxu1 %v7464_v45 }
0x10cb   :  { %4023 = vmatprep.subr.bf16.mxu0 %v7467_v17  ;;  %4066 = vmatprep.subr.bf16.mxu1 %v7470_v62 }
0x10ce   :  { %4024 = vmatpush1.bf16.msra.mxu0 %v7473_v59  ;;  %4067 = vmatpush1.bf16.msra.mxu1 %v7476_v3 }
0x10cf   :  { %4025 = vmatprep.subr.bf16.mxu0 %v7479_v12  ;;  %4068 = vmatprep.subr.bf16.mxu1 %v7482_v25 }
0x10d2   :  { %4026 = vmatpush1.bf16.msra.mxu0 %v7485_v8  ;;  %4069 = vmatpush1.bf16.msra.mxu1 %v7488_v42 }
0x10d3   :  { %4027 = vmatprep.subr.bf16.mxu0 %v7491_v21  ;;  %4070 = vmatprep.subr.bf16.mxu1 %v7494_v58 }
0x10d6   :  { %4028 = vmatpush1.bf16.msra.mxu0 %v7497_v2  ;;  %4071 = vmatpush1.bf16.msra.mxu1 %v7500_v51 }
0x10d7   :  { %4029 = vmatprep.subr.bf16.mxu0 %v7503_v6  ;;  %4072 = vmatprep.subr.bf16.mxu1 %v7506_v4 }
0x10da   :  { %4030 = vmatpush1.bf16.msra.mxu0 %v7509_v16  ;;  %4073 = vmatpush1.bf16.msra.mxu1 %v7512_v24 }
0x10db   :  { %4031 = vmatprep.subr.bf16.mxu0 %v7515_v63  ;;  %4074 = vmatprep.subr.bf16.mxu1 %v7518_v35 }
0x10de   :  { %4032 = vmatpush1.bf16.msra.mxu0 %v7521_v61  ;;  %4075 = vmatpush1.bf16.msra.mxu1 %v7524_v37 }
0x10df   :  { %4615 = vmatprep.subr.bf16.mxu0 %v7637_v60 }
0x1194   :  { %v3899_v1 = vpop.f32.mrb[56].mxu0  ;;  %v3942_v50 = vpop.f32.mrb[72].mxu1 }
0x1195   :  { %v4753_v30 = vadd.f32 %v3899_v1, %v7239_v54  ;;  %v3901_v40 = vpop.f32.mrb[57].mxu0  ;;  %v3944_v23 = vpop.f32.mrb[73].mxu1  ;;  %v4785_v42 = vadd.f32 %v3942_v50, %v7255_v55  ;;  %v5075_v50 = vld [vmem:[#allocation19 + $0x8] sm:$0xff]  }
0x1196   :  { %v4754_v5 = vadd.f32 %v3901_v40, %v7243_v18  ;;  %v3903_v34 = vpop.f32.mrb[58].mxu0  ;;  %v3946_v47 = vpop.f32.mrb[74].mxu1  ;;  %v4786_v8 = vadd.f32 %v3944_v23, %v7250_v26  ;;  %v5078_v40 = vld [vmem:[#allocation19 + $0x20] sm:$0xff]   ;;  %v5079_v23 = vld [vmem:[#allocation19 + $0x28] sm:$0xff]  }
0x1197   :  { %v4578_v52 = vmul.f32 -1.442695, %v4753_v30  ;;  %v4755_v45 = vadd.f32 %v3903_v34, %v7239_v54  ;;  %v3905_v17 = vpop.f32.mrb[59].mxu0  ;;  %v3948_v62 = vpop.f32.mrb[75].mxu1  ;;  %v4787_v2 = vadd.f32 %v3946_v47, %v7255_v55  ;;  %v5077_v30 = vld [vmem:[#allocation19 + $0x18] sm:$0xff]  }
0x1198   :  { %v4580_v59 = vmul.f32 -1.442695, %v4754_v5  ;;  %v4756_v3 = vadd.f32 %v3905_v17, %v7243_v18  ;;  %v4582_v21 = vmul.f32 -1.442695, %v4786_v8  ;;  %v4788_v58 = vadd.f32 %v3948_v62, %v7250_v26  ;;  %v5080_v5 = vld [vmem:[#allocation19 + $0x30] sm:$0xff]   ;;  %v5081_v34 = vld [vmem:[#allocation19 + $0x38] sm:$0xff]  }
0x1199   :  { %5562 = vpow2.f32 %v4578_v52  ;;  %v4579_v12 = vmul.f32 -1.442695, %v4755_v45 }
0x119a   :  { %5564 = vpow2.f32 %v4580_v59  ;;  %v4581_v25 = vmul.f32 -1.442695, %v4756_v3  ;;  %v4583_v16 = vmul.f32 -1.442695, %v4788_v58 }
0x119b   :  { %5566 = vpow2.f32 %v4579_v12 }
0x119c   :  { %5568 = vpow2.f32 %v4581_v25 }
0x119d   :  { %5570 = vtanh.f32 %v4785_v42 }
0x119e   :  { %5572 = vpow2.f32 %v4582_v21 }
0x119f   :  { %5574 = vtanh.f32 %v4787_v2 }
0x11a3   :  { %v5563_v51 = vpop.eup %5562 }
0x11a4   :  { %v5565_v6 = vpop.eup %5564  ;;  %v3965_v4 = vadd.f32 1.0, %v5563_v51 }
0x11a5   :  { %v3977_v24 = vadd.f32 1.0, %v5565_v6  ;;  %v5567_v63 = vpop.eup %5566 }
0x11a6   :  { %5576 = vrcp.f32 %v3965_v4  ;;  %v3966_v35 = vadd.f32 1.0, %v5567_v63  ;;  %v5569_v61 = vpop.eup %5568 }
0x11a7   :  { %5578 = vrcp.f32 %v3977_v24  ;;  %v3978_v37 = vadd.f32 1.0, %v5569_v61  ;;  %v5571_v27 = vpop.eup %5570 }
0x11a8   :  { %5580 = vpow2.f32 %v4583_v16  ;;  %v5573_v32 = vpop.eup %5572 }
0x11a9   :  { %5582 = vrcp.f32 %v3966_v35  ;;  %v5575_v22 = vpop.eup %5574  ;;  %v3991_v20 = vadd.f32 1.0, %v5573_v32 }
0x11aa   :  { %5584 = vrcp.f32 %v3978_v37 }
0x11ab   :  { %5586 = vrcp.f32 %v3991_v20 }
0x11b0   :  { %v5577_v9 = vpop.eup %5576 }
0x11b1   :  { %v5579_v43 = vpop.eup %5578  ;;  %v3999_v57 = vmul.f32 %v5577_v9, %v5571_v27 }
0x11b2   :  { %v5581_v0 = vpop.eup %5580  ;;  %v3997_v41 = vmul.f32 %v5579_v43, %v7594_v14 }
0x11b3   :  { %v5583_v49 = vpop.eup %5582  ;;  %v3992_v39 = vadd.f32 1.0, %v5581_v0 }
0x11b4   :  { %v7649_v13 = vadd.f32 %v3999_v57, %v3997_v41  ;;  %v4000_v31 = vmul.f32 %v5583_v49, %v5575_v22  ;;  %v5585_v29 = vpop.eup %5584  ;;  %v7672_v57 = vld [vmem:[#allocation21] ss:$0 sm:$0xff] }
0x11b5   :  { %v3998_v56 = vmul.f32 %v5585_v29, %v7598_v44  ;;  %v5587_v10 = vpop.eup %5586  ;;  %v5076_v44 = vld [vmem:[#allocation19 + $0x10] sm:$0xff]  }
0x11b6   :  { %5588 = vtanh.f32 %v7649_v13 }
0x11b7   :  { %v7653_v11 = vadd.f32 %v4000_v31, %v3998_v56  ;;  %5590 = vrcp.f32 %v3992_v39 }
0x11b9   :  { %5592 = vtanh.f32 %v7653_v11 }
0x11c0   :  { %v5589_v36 = vpop.eup %5588 }
0x11c1   :  { %v5591_v14 = vpop.eup %5590  ;;  %v4005_v33 = vmul.f32 %v5589_v36, %v5587_v10 }
0x11c3   :  { %v5593_v53 = vpop.eup %5592 }
0x11c4   :  { %v4006_v7 = vmul.f32 %v5593_v53, %v5591_v14 }
0x11c6   :  { %v4007_v1 = vpack.c.bf16 %v4006_v7, %v4005_v33 }
0x11c8   :  { %4050 = vmatmul.mubr.bf16.vlgmr.msra.gmra.mrb[60].mxu0 %v4007_v1  ;;  %4093 = vmatmul.mubr.bf16.vlgmr.msra.gmra.mrb[76].mxu1 %v4007_v1 }
0x11c9   :  { %4616 = vmatpush3.bf16.msra.mxu0 %v7637_v60  ;;  %4631 = vmatprep.mubr.bf16.mxu0 %v7267_v19 }
0x11ca   :  { %4617 = vmatprep.subr.bf16.mxu0 %v5075_v50 }
0x11cd   :  { %4618 = vmatpush3.bf16.msra.mxu0 %v5075_v50 }
0x11ce   :  { %4619 = vmatprep.subr.bf16.mxu0 %v5076_v44 }
0x11d1   :  { %4620 = vmatpush3.bf16.msra.mxu0 %v5076_v44 }
0x11d2   :  { %4621 = vmatprep.subr.bf16.mxu0 %v5077_v30 }
0x11d5   :  { %4622 = vmatpush3.bf16.msra.mxu0 %v5077_v30 }
0x11d6   :  { %4623 = vmatprep.subr.bf16.mxu0 %v5078_v40 }
0x11d9   :  { %4624 = vmatpush3.bf16.msra.mxu0 %v5078_v40 }
0x11da   :  { %4625 = vmatprep.subr.bf16.mxu0 %v5079_v23 }
0x11dd   :  { %4626 = vmatpush3.bf16.msra.mxu0 %v5079_v23 }
0x11de   :  { %4627 = vmatprep.subr.bf16.mxu0 %v5080_v5 }
0x11e1   :  { %4628 = vmatpush3.bf16.msra.mxu0 %v5080_v5 }
0x11e2   :  { %4629 = vmatprep.subr.bf16.mxu0 %v5081_v34 }
0x11e5   :  { %4630 = vmatpush3.bf16.msra.mxu0 %v5081_v34 }
0x11e8   :  { %4632 = vmatmul.mubr.bf16.vlgmr.msra.gmra.mrb[64].mxu0 %v7321_v48 }
0x11e9   :  { %4635 = vmatprep.mubr.bf16.mxu0 %v7375_v15 }
0x11f0   :  { %4636 = vmatmul.mubr.bf16.gmra.mrb[68].mxu0 %v7431_v38 }
0x11f1   :  { %4639 = vmatprep.mubr.bf16.mxu0 %v7547_v28 }
0x11f8   :  { %4640 = vmatmul.mubr.bf16.gmra.mrb[72].mxu0 %v7601_v46 }
0x11f9   :  { %4643 = vmatprep.mubr.bf16.mxu0 %v4007_v1 }
0x129b   :  { %v4051_v19 = vpop.f32.mrb[60].mxu0  ;;  %v4094_v60 = vpop.f32.mrb[76].mxu1 }
0x129c   :  { %v4757_v47 = vadd.f32 %v4051_v19, %v7239_v54  ;;  %v4053_v52 = vpop.f32.mrb[61].mxu0  ;;  %v4096_v45 = vpop.f32.mrb[77].mxu1  ;;  %v4789_v42 = vadd.f32 %v4094_v60, %v7255_v55 }
0x129d   :  { %v4758_v17 = vadd.f32 %v4053_v52, %v7243_v18  ;;  %v4055_v62 = vpop.f32.mrb[62].mxu0  ;;  %v4098_v59 = vpop.f32.mrb[78].mxu1  ;;  %v4790_v8 = vadd.f32 %v4096_v45, %v7250_v26 }
0x129e   :  { %v4584_v48 = vmul.f32 -1.442695, %v4757_v47  ;;  %v4759_v15 = vadd.f32 %v4055_v62, %v7239_v54  ;;  %v4057_v3 = vpop.f32.mrb[63].mxu0  ;;  %v4100_v38 = vpop.f32.mrb[79].mxu1  ;;  %v4791_v54 = vadd.f32 %v4098_v59, %v7255_v55 }
0x129f   :  { %v4586_v12 = vmul.f32 -1.442695, %v4758_v17  ;;  %v4760_v28 = vadd.f32 %v4057_v3, %v7243_v18  ;;  %v4588_v21 = vmul.f32 -1.442695, %v4790_v8  ;;  %v4792_v58 = vadd.f32 %v4100_v38, %v7250_v26 }
0x12a0   :  { %5594 = vpow2.f32 %v4584_v48  ;;  %v4585_v46 = vmul.f32 -1.442695, %v4759_v15 }
0x12a1   :  { %5596 = vpow2.f32 %v4586_v12  ;;  %v4587_v25 = vmul.f32 -1.442695, %v4760_v28  ;;  %v4589_v18 = vmul.f32 -1.442695, %v4792_v58 }
0x12a2   :  { %5598 = vpow2.f32 %v4585_v46 }
0x12a3   :  { %5600 = vpow2.f32 %v4587_v25 }
0x12a4   :  { %5602 = vtanh.f32 %v4789_v42 }
0x12a5   :  { %5604 = vpow2.f32 %v4588_v21 }
0x12a6   :  { %5606 = vtanh.f32 %v4791_v54 }
0x12aa   :  { %v5595_v2 = vpop.eup %5594 }
0x12ab   :  { %v5597_v51 = vpop.eup %5596  ;;  %v4117_v6 = vadd.f32 1.0, %v5595_v2 }
0x12ac   :  { %v4129_v4 = vadd.f32 1.0, %v5597_v51  ;;  %v5599_v16 = vpop.eup %5598 }
0x12ad   :  { %5608 = vrcp.f32 %v4117_v6  ;;  %v4118_v24 = vadd.f32 1.0, %v5599_v16  ;;  %v5601_v63 = vpop.eup %5600 }
0x12ae   :  { %5610 = vrcp.f32 %v4129_v4  ;;  %v4130_v35 = vadd.f32 1.0, %v5601_v63  ;;  %v5603_v26 = vpop.eup %5602 }
0x12af   :  { %5612 = vpow2.f32 %v4589_v18  ;;  %v5605_v61 = vpop.eup %5604 }
0x12b0   :  { %5614 = vrcp.f32 %v4118_v24  ;;  %v5607_v55 = vpop.eup %5606  ;;  %v4143_v22 = vadd.f32 1.0, %v5605_v61 }
0x12b1   :  { %5616 = vrcp.f32 %v4130_v35 }
0x12b2   :  { %5618 = vrcp.f32 %v4143_v22 }
0x12b7   :  { %v5609_v37 = vpop.eup %5608 }
0x12b8   :  { %v5611_v27 = vpop.eup %5610  ;;  %v4151_v32 = vmul.f32 %v5609_v37, %v5603_v26 }
0x12b9   :  { %v5613_v9 = vpop.eup %5612  ;;  %v4149_v43 = vmul.f32 %v5611_v27, %v7649_v13 }
0x12ba   :  { %v5615_v0 = vpop.eup %5614  ;;  %v4144_v29 = vadd.f32 1.0, %v5613_v9 }
0x12bb   :  { %v4152_v41 = vmul.f32 %v5615_v0, %v5607_v55  ;;  %v4633_v49 = vpop.f32.mrb[64].mxu0  ;;  %v4153_v20 = vadd.f32 %v4151_v32, %v4149_v43  ;;  %v5617_v31 = vpop.eup %5616 }
0x12bc   :  { %v4283_v39 = vadd.f32 %v4633_v49, %v7672_v57  ;;  %v4274_v56 = vpop.f32.mrb[65].mxu0  ;;  %v4150_v10 = vmul.f32 %v5617_v31, %v7653_v11  ;;  %v5619_v40 = vpop.eup %5618 }
0x12bd   :  { %v4275_v36 = vadd.f32 %v7672_v57, %v4274_v56  ;;  %v4634_v14 = vpop.f32.mrb[66].mxu0  ;;  %5620 = vtanh.f32 %v4153_v20 }
0x12be   :  { %4340 = vst.msk [vmem:[#allocation22 + $0x10] sm:$0xff] %vm4337_vm1, %v4283_v39  ;;  %v4286_v13 = vadd.f32 %v4634_v14, %v7672_v57  ;;  %v4277_v53 = vpop.f32.mrb[67].mxu0  ;;  %v4154_v7 = vadd.f32 %v4152_v41, %v4150_v10  ;;  %5622 = vrcp.f32 %v4144_v29 }
0x12bf   :  { %4338 = vst.msk [vmem:[#allocation22] sm:$0xff] %vm4337_vm1, %v4275_v36  ;;  %v4278_v33 = vadd.f32 %v7672_v57, %v4277_v53 }
0x12c0   :  { %4341 = vst.msk [vmem:[#allocation22 + $0x18] sm:$0xff] %vm4337_vm1, %v4286_v13  ;;  %5624 = vtanh.f32 %v4154_v7 }
0x12c1   :  { %4339 = vst.msk [vmem:[#allocation22 + $0x8] sm:$0xff] %vm4337_vm1, %v4278_v33 }
0x12c3   :  { %v4637_v11 = vpop.f32.mrb[68].mxu0 }
0x12c4   :  { %v4299_v1 = vadd.f32 %v4637_v11, %v7672_v57  ;;  %v4290_v50 = vpop.f32.mrb[69].mxu0 }
0x12c5   :  { %v4291_v44 = vadd.f32 %v7672_v57, %v4290_v50  ;;  %v4638_v30 = vpop.f32.mrb[70].mxu0 }
0x12c6   :  { %4344 = vst.msk [vmem:[#allocation22 + $0x30] sm:$0xff] %vm4337_vm1, %v4299_v1  ;;  %v4302_v23 = vadd.f32 %v4638_v30, %v7672_v57  ;;  %v4293_v5 = vpop.f32.mrb[71].mxu0 }
0x12c7   :  { %v5621_v34 = vpop.eup %5620  ;;  %4342 = vst.msk [vmem:[#allocation22 + $0x20] sm:$0xff] %vm4337_vm1, %v4291_v44  ;;  %v4294_v19 = vadd.f32 %v7672_v57, %v4293_v5 }
0x12c8   :  { %4345 = vst.msk [vmem:[#allocation22 + $0x38] sm:$0xff] %vm4337_vm1, %v4302_v23  ;;  %v4157_v60 = vmul.f32 %v5621_v34, %v5619_v40  ;;  %v5623_v47 = vpop.eup %5622 }
0x12c9   :  { %4343 = vst.msk [vmem:[#allocation22 + $0x28] sm:$0xff] %vm4337_vm1, %v4294_v19 }
0x12ca   :  { %v5625_v52 = vpop.eup %5624 }
0x12cb   :  { %v4641_v45 = vpop.f32.mrb[72].mxu0  ;;  %v4158_v59 = vmul.f32 %v5625_v52, %v5623_v47 }
0x12cc   :  { %v4315_v17 = vadd.f32 %v4641_v45, %v7672_v57  ;;  %v4306_v62 = vpop.f32.mrb[73].mxu0 }
0x12cd   :  { %v4307_v48 = vadd.f32 %v7672_v57, %v4306_v62  ;;  %v4642_v15 = vpop.f32.mrb[74].mxu0  ;;  %v4159_v12 = vpack.c.bf16 %v4158_v59, %v4157_v60 }
0x12ce   :  { %4348 = vst.msk [vmem:[#allocation22 + $0x50] sm:$0xff] %vm4337_vm1, %v4315_v17  ;;  %v4318_v3 = vadd.f32 %v4642_v15, %v7672_v57  ;;  %v4309_v38 = vpop.f32.mrb[75].mxu0 }
0x12cf   :  { %4346 = vst.msk [vmem:[#allocation22 + $0x40] sm:$0xff] %vm4337_vm1, %v4307_v48  ;;  %v4310_v28 = vadd.f32 %v7672_v57, %v4309_v38  ;;  %4644 = vmatmul.mubr.bf16.gmra.mrb[76].mxu0 %v4159_v12 }
0x12d0   :  { %4349 = vst.msk [vmem:[#allocation22 + $0x58] sm:$0xff] %vm4337_vm1, %v4318_v3 }
0x12d1   :  { %4347 = vst.msk [vmem:[#allocation22 + $0x48] sm:$0xff] %vm4337_vm1, %v4310_v28 }
0x13a2   :  { %v4645_v46 = vpop.f32.mrb[76].mxu0 }
0x13a3   :  { %v4331_v25 = vadd.f32 %v4645_v46, %v7672_v57  ;;  %v4322_v8 = vpop.f32.mrb[77].mxu0 }
0x13a4   :  { %v4323_v42 = vadd.f32 %v7672_v57, %v4322_v8  ;;  %v4646_v21 = vpop.f32.mrb[78].mxu0 }
0x13a5   :  { %4352 = vst.msk [vmem:[#allocation22 + $0x70] sm:$0xff] %vm4337_vm1, %v4331_v25  ;;  %v4334_v58 = vadd.f32 %v4646_v21, %v7672_v57  ;;  %v4325_v54 = vpop.f32.mrb[79].mxu0 }
0x13a6   :  { %4350 = vst.msk [vmem:[#allocation22 + $0x60] sm:$0xff] %vm4337_vm1, %v4323_v42  ;;  %v4326_v2 = vadd.f32 %v7672_v57, %v4325_v54 }
0x13a7   :  { %4353 = vst.msk [vmem:[#allocation22 + $0x78] sm:$0xff] %vm4337_vm1, %v4334_v58 }
0x13a8   :  { %4351 = vst.msk [vmem:[#allocation22 + $0x68] sm:$0xff] %vm4337_vm1, %v4326_v2 }
0x13a9   :  { %5943 = shalt.err (!%p5940_p8)
}
0x13aa   :  { %s5944_s30 = scalar_lea.hbm %s7733_s11, 2048 }
0x13ab   :  { %p5945_p9 = scmp.ne.s32.totalorder %s7733_s11, %s5944_s30  ;;  %p5948_p10 = scmp.lt.u32.totalorder %s5944_s30, %s7733_s11 }
0x13ad   :  { %p5950_p11 = pnand %p5948_p10, %p5945_p9 }
0x13af   :  { %5953 = shalt.err (!%p5950_p11)
}
0x13b0   :  { %4365 = dma.vmem_to_hbm [thread:$0]  %s4360_s5, 2048, %s7733_s11, [#allocation6], %s5978_s9, %s5978_s9, %s5979_s12  }
0x13b1   :  { %5966 = dma.done.wait [#allocation6], 2048  }
0x13b2   :  { %5967 = vsyncadd [#allocation6], 4294965248 }
0x13b3   :  { %4369 = vsyncpa [#allocation5], 1 }
0x13b4   :  { %4370 = vsyncpa [#allocation8], 1 }
0x13b5   :  { %4371 = vsyncpa [#allocation11], 1 }
0x13b6   :  { %4372 = vsyncpa [#allocation14], 1 }
0x13b7   :  { %4373 = vsyncpa [#allocation17], 1 }
0x13b8   :  { %4374 = vsyncpa [#allocation20], 1 }
0x13b9   :  { %4375 = vsyncpa [#allocation6], 1 }

</bundles_post_ra>
